<compile_context>
chip_gen: v5e
topology: v5e:2x2
jax: 0.10.0
libtpu: 0.0.40
codegen_flags: <defaults>
</compile_context>

<pallas_src>
import functools

import jax
import jax.numpy as jnp
from jax.experimental import pallas as pl
from jax.experimental.pallas import tpu as pltpu  # imported for parity; defaults suffice here

HIDDEN = 64  # LSTM hidden size (module: nn.LSTM(320, 64, bidirectional=True))


# ----------------------------- Pallas kernels ------------------------------

def _conv_pool_relu_kernel(pt_ref, w_ref, b_ref, o_ref):
    """Fused 5x5 valid conv (one transposed im2col matmul) + 2x2 max-pool + bias + ReLU.

    pt_ref: (K, 4*NP) bf16   K = Cin*5*5; columns are quad-major, then (frame, ph, pw)
    w_ref : (Cout, K) bf16
    b_ref : (Cout, 1) f32
    o_ref : (Cout, NP) f32   lane-dense output (NP is a multiple of 128)
    """
    npos = o_ref.shape[1]
    # Single MXU push: M=Cout, contraction K, N = 4 * frames * pooled_positions.
    s = jnp.dot(w_ref[...], pt_ref[...], preferred_element_type=jnp.float32)
    # 2x2 max-pool = elementwise max of the 4 lane-aligned quad blocks (VPU).
    m = jnp.maximum(jnp.maximum(s[:, 0:npos], s[:, npos:2 * npos]),
                    jnp.maximum(s[:, 2 * npos:3 * npos], s[:, 3 * npos:4 * npos]))
    # bias is constant over positions, so adding after the max is equivalent
    o_ref[...] = jnp.maximum(m + b_ref[...], 0.0)


def conv_pool_relu(patches_t, w_t, b):
    # patches_t: (K, 4*NP) bf16   w_t: (Cout, K) bf16   b: (Cout, 1) f32  ->  (Cout, NP) f32
    _, m4 = patches_t.shape
    cout = w_t.shape[0]
    npos = m4 // 4
    return pl.pallas_call(
        _conv_pool_relu_kernel,
        out_shape=jax.ShapeDtypeStruct((cout, npos), jnp.float32),
    )(patches_t, w_t, b)


def _sigmoid(z):
    return 1.0 / (1.0 + jnp.exp(-z))


def _lstm_head_kernel(x_ref, wih_ref, whh_f_ref, whh_b_ref, b_ref,
                      wl_ref, bl_ref, logp_ref, feat_ref, *, seq, batch):
    """Bidirectional LSTM (PyTorch gate order i,f,g,o) fused with Linear + log_softmax.

    x_ref   : (seq*batch, 320) bf16, rows ordered (seq, lstm_batch) row-major
    wih_ref : (320, 8H) bf16  = [Wih_fwd | Wih_bwd]
    whh_*   : (H, 4H) bf16
    b_ref   : (1, 8H)  f32    = [b_fwd | b_bwd] (ih+hh biases summed)
    wl_ref  : (H, n_cls) f32, bl_ref: (1, n_cls) f32
    logp_ref: (seq, n_cls) f32, feat_ref: (seq, 2H) f32 (= r_out[:, -1, :])
    Zero initial states.
    """
    H = HIDDEN

    # Hoisted input projection for BOTH directions: one (seq*batch, 320) @ (320, 8H)
    # matmul off the recurrence critical path.
    gx = jnp.dot(x_ref[...], wih_ref[...],
                 preferred_element_type=jnp.float32) + b_ref[...]      # (seq*batch, 8H) f32

    whh_f = whh_f_ref[...]
    whh_b = whh_b_ref[...]

    def step(g, c):
        i = _sigmoid(g[:, 0:H])
        f = _sigmoid(g[:, H:2 * H])
        gg = jnp.tanh(g[:, 2 * H:3 * H])
        o = _sigmoid(g[:, 3 * H:4 * H])
        c = f * c + i * gg
        h = o * jnp.tanh(c)
        return h, c

    # TODO(synk): static Python loops are fine at this toy seq (=2); switch to
    # lax.fori_loop carrying (h, c) with pl.ds indexing if seq is scaled up.

    # forward direction
    h = jnp.zeros((batch, H), jnp.float32)
    c = jnp.zeros((batch, H), jnp.float32)
    fwd = []
    for s in range(seq):
        g = gx[s * batch:(s + 1) * batch, 0:4 * H] + jnp.dot(
            h.astype(jnp.bfloat16), whh_f, preferred_element_type=jnp.float32)
        h, c = step(g, c)
        fwd.append(h[batch - 1:batch, :])          # LSTM-batch element T-1 only

    # reverse direction
    h = jnp.zeros((batch, H), jnp.float32)
    c = jnp.zeros((batch, H), jnp.float32)
    bwd = [None] * seq
    for s in range(seq - 1, -1, -1):
        g = gx[s * batch:(s + 1) * batch, 4 * H:8 * H] + jnp.dot(
            h.astype(jnp.bfloat16), whh_b, preferred_element_type=jnp.float32)
        h, c = step(g, c)
        bwd[s] = h[batch - 1:batch, :]

    feat = jnp.concatenate([jnp.concatenate(fwd, axis=0),
                            jnp.concatenate(bwd, axis=0)], axis=1)     # (seq, 2H)
    feat_ref[...] = feat                                               # == r_out[:, -1, :]

    # TODO(synk): the reference module applies nn.Linear(64, 10) to the 128-dim
    # bidirectional LSTM output (a shape bug that errors in PyTorch); we keep the
    # declared (10, 64) weight and apply it to the forward-direction 64 features.
    logits = jnp.dot(feat[:, 0:H], wl_ref[...],
                     preferred_element_type=jnp.float32) + bl_ref[...]
    mx = jnp.max(logits, axis=1, keepdims=True)
    sh = logits - mx
    logp_ref[...] = sh - jnp.log(jnp.sum(jnp.exp(sh), axis=1, keepdims=True))


def lstm_head(x_flat, wih_cat, whh_f, whh_b, b_cat, wl, bl, *, seq, batch):
    n_cls = wl.shape[1]
    return pl.pallas_call(
        functools.partial(_lstm_head_kernel, seq=seq, batch=batch),
        out_shape=(jax.ShapeDtypeStruct((seq, n_cls), jnp.float32),
                   jax.ShapeDtypeStruct((seq, 2 * HIDDEN), jnp.float32)),
    )(x_flat, wih_cat, whh_f, whh_b, b_cat, wl, bl)


# ------------------------------- JAX glue -----------------------------------

def _im2col_pool_t(x_nchw, k=5):
    """Transposed im2col for a valid kxk conv, grouped by 2x2 max-pool quads.

    x: (N, Cin, H, W) -> (Cin*k*k, 4 * N*(Ho//2)*(Wo//2)).
    Row index = cin*k*k + kh*k + kw (PyTorch conv-weight flatten order);
    columns are quad-major (dh, dw), then (n, ph, pw)."""
    N, Cin, H, W = x_nchw.shape
    Ho, Wo = H - k + 1, W - k + 1
    Ph, Pw = Ho // 2, Wo // 2
    cols = [x_nchw[:, :, kh:kh + Ho, kw:kw + Wo]
            for kh in range(k) for kw in range(k)]
    p = jnp.stack(cols, axis=0)                    # (kk, N, Cin, Ho, Wo)
    p = p.reshape(k * k, N, Cin, Ph, 2, Pw, 2)     # (kk, N, Cin, ph, dh, pw, dw)
    p = p.transpose(2, 0, 4, 6, 1, 3, 5)           # (Cin, kk, dh, dw, N, ph, pw)
    return p.reshape(Cin * k * k, 4 * N * Ph * Pw)


def chanakya_crnn_forward(x, params):
    B, T, C, H, W = x.shape
    N = B * T
    c_in = x.reshape(N, C, H, W).astype(jnp.bfloat16)

    # conv1 -> maxpool(2) -> relu  (one fused MXU matmul over batch + pool quads)
    p1 = _im2col_pool_t(c_in, 5)                                 # (75, 4*N*144) bf16
    o1 = conv_pool_relu(p1, params["w1t"], params["b1"])         # (10, N*144) f32
    ph1, pw1 = (H - 4) // 2, (W - 4) // 2
    f1 = o1.reshape(10, N, ph1, pw1).transpose(1, 0, 2, 3)       # NCHW (N,10,12,12)

    # conv2 -> dropout2d -> maxpool(2) -> relu
    # TODO(synk): nn.Dropout2d train-mode channel masking not modeled (inference identity).
    p2 = _im2col_pool_t(f1.astype(jnp.bfloat16), 5)              # (250, 4*N*16) bf16
    o2 = conv_pool_relu(p2, params["w2t"], params["b2"])         # (20, N*16) f32
    ph2, pw2 = (ph1 - 4) // 2, (pw1 - 4) // 2

    # PyTorch x.view(-1, 320): channel-major flatten of (N, 20, 4, 4)
    c_out = o2.reshape(20, N, ph2, pw2).transpose(1, 0, 2, 3).reshape(N, 20 * ph2 * pw2)

    # nn.LSTM default batch_first=False: dim0 (=batch B) is the LSTM seq axis,
    # dim1 (=timesteps T) is the LSTM batch axis.  Rows of c_out are already
    # ordered (seq, lstm_batch) row-major, so pass the flat (B*T, 320) matrix.
    logp, _feat = lstm_head(c_out.astype(jnp.bfloat16),
                            params["wih_cat"], params["whh_f"], params["whh_b"],
                            params["b_cat"], params["wl"], params["bl"],
                            seq=B, batch=T)
    return logp                                                   # (B, 10) log-probs


def init_params(key):
    # CNN.fc1 / CNN.fc2 are declared in __init__ but never used in forward — omitted.
    ks = jax.random.split(key, 14)

    def u(k, shape, fan_in):
        bound = 1.0 / (fan_in ** 0.5)
        return jax.random.uniform(k, shape, jnp.float32, -bound, bound)

    H = HIDDEN
    w1 = u(ks[0], (10, 3, 5, 5), 75);    b1 = u(ks[1], (10,), 75)
    w2 = u(ks[2], (20, 10, 5, 5), 250);  b2 = u(ks[3], (20,), 250)
    wih_f = u(ks[4], (4 * H, 320), H);   whh_f = u(ks[5], (4 * H, H), H)
    bih_f = u(ks[6], (4 * H,), H);       bhh_f = u(ks[7], (4 * H,), H)
    wih_b = u(ks[8], (4 * H, 320), H);   whh_b = u(ks[9], (4 * H, H), H)
    bih_b = u(ks[10], (4 * H,), H);      bhh_b = u(ks[11], (4 * H,), H)
    wl = u(ks[12], (10, H), H);          bl = u(ks[13], (10,), H)

    bf = jnp.bfloat16
    return {
        # conv weights kept as (Cout, K) bf16 for the transposed, lane-dense-output matmul
        "w1t": w1.reshape(10, 75).astype(bf),   "b1": b1.reshape(10, 1),
        "w2t": w2.reshape(20, 250).astype(bf),  "b2": b2.reshape(20, 1),
        # both directions' input projections fused into one (320, 8H) bf16 weight
        "wih_cat": jnp.concatenate([wih_f.T, wih_b.T], axis=1).astype(bf),
        "whh_f": whh_f.T.astype(bf),
        "whh_b": whh_b.T.astype(bf),
        "b_cat": jnp.concatenate([bih_f + bhh_f, bih_b + bhh_b]).reshape(1, 8 * H),
        "wl": wl.T, "bl": bl.reshape(1, 10),
    }


if __name__ == "__main__":
    key = jax.random.PRNGKey(0)
    pkey, xkey = jax.random.split(key)
    params = init_params(pkey)
    # batch=2, timesteps=4; C=3, H=W=28 are forced by the module (20*4*4 == 320).
    x = jax.random.normal(xkey, (2, 4, 3, 28, 28), jnp.float32)
    out = jax.jit(chanakya_crnn_forward)(x, params)
    out = jax.block_until_ready(out)
    assert out.shape == (2, 10)
    print("KERNEL_OK")
</pallas_src>

<mosaic_0001>
module attributes {stable_mosaic.version = 11 : i64} {
  func.func @_conv_pool_relu_kernel(%arg0: memref<75x4608xbf16, #tpu.memory_space<vmem>>, %arg1: memref<10x75xbf16, #tpu.memory_space<vmem>>, %arg2: memref<10x1xf32, #tpu.memory_space<vmem>>, %arg3: memref<10x1152xf32, #tpu.memory_space<vmem>>) attributes {dimension_semantics = [], scalar_prefetch = 0 : i64, scratch_operands = 0 : i64, tpu.core_type = #tpu.core_type<tc>} {
    %c0 = arith.constant 0 : index
    %c0_0 = arith.constant 0 : index
    %0 = vector.load %arg1[%c0, %c0_0] : memref<10x75xbf16, #tpu.memory_space<vmem>>, vector<10x75xbf16>
    %c0_1 = arith.constant 0 : index
    %c0_2 = arith.constant 0 : index
    %1 = vector.load %arg0[%c0_1, %c0_2] : memref<75x4608xbf16, #tpu.memory_space<vmem>>, vector<75x4608xbf16>
    %cst = arith.constant dense<0.000000e+00> : vector<10x4608xf32>
    %2 = tpu.matmul %0, %1, %cst {dimension_numbers = #tpu.dot_dimension_numbers<[1], [0], [0], [1], [0, 0, 1, 1], [], []>} : vector<10x75xbf16>, vector<75x4608xbf16>, vector<10x4608xf32> -> vector<10x4608xf32>
    %3 = vector.extract_strided_slice %2 {offsets = [0, 0], sizes = [10, 1152], strides = [1, 1]} : vector<10x4608xf32> to vector<10x1152xf32>
    %4 = vector.extract_strided_slice %2 {offsets = [0, 1152], sizes = [10, 1152], strides = [1, 1]} : vector<10x4608xf32> to vector<10x1152xf32>
    %5 = arith.maximumf %3, %4 : vector<10x1152xf32>
    %6 = vector.extract_strided_slice %2 {offsets = [0, 2304], sizes = [10, 1152], strides = [1, 1]} : vector<10x4608xf32> to vector<10x1152xf32>
    %7 = vector.extract_strided_slice %2 {offsets = [0, 3456], sizes = [10, 1152], strides = [1, 1]} : vector<10x4608xf32> to vector<10x1152xf32>
    %8 = arith.maximumf %6, %7 : vector<10x1152xf32>
    %9 = arith.maximumf %5, %8 : vector<10x1152xf32>
    %c0_3 = arith.constant 0 : index
    %c0_4 = arith.constant 0 : index
    %10 = vector.load %arg2[%c0_3, %c0_4] : memref<10x1xf32, #tpu.memory_space<vmem>>, vector<10x1xf32>
    %11 = vector.broadcast %10 : vector<10x1xf32> to vector<10x1152xf32>
    %12 = arith.addf %9, %11 : vector<10x1152xf32>
    %cst_5 = arith.constant 0.000000e+00 : f32
    %13 = vector.broadcast %cst_5 : f32 to vector<10x1152xf32>
    %14 = arith.maximumf %12, %13 : vector<10x1152xf32>
    %c0_6 = arith.constant 0 : index
    %c0_7 = arith.constant 0 : index
    %15 = vector.load %arg3[%c0_6, %c0_7] : memref<10x1152xf32, #tpu.memory_space<vmem>>, vector<10x1152xf32>
    tpu.vector_store %arg3[%c0_6, %c0_7], %14 {strides = array<i32>} : memref<10x1152xf32, #tpu.memory_space<vmem>>, vector<10x1152xf32>,
    return
  }
}

module attributes {stable_mosaic.version = 11 : i64} {
  func.func @_conv_pool_relu_kernel(%arg0: memref<250x512xbf16, #tpu.memory_space<vmem>>, %arg1: memref<20x250xbf16, #tpu.memory_space<vmem>>, %arg2: memref<20x1xf32, #tpu.memory_space<vmem>>, %arg3: memref<20x128xf32, #tpu.memory_space<vmem>>) attributes {dimension_semantics = [], scalar_prefetch = 0 : i64, scratch_operands = 0 : i64, tpu.core_type = #tpu.core_type<tc>} {
    %c0 = arith.constant 0 : index
    %c0_0 = arith.constant 0 : index
    %0 = vector.load %arg1[%c0, %c0_0] : memref<20x250xbf16, #tpu.memory_space<vmem>>, vector<20x250xbf16>
    %c0_1 = arith.constant 0 : index
    %c0_2 = arith.constant 0 : index
    %1 = vector.load %arg0[%c0_1, %c0_2] : memref<250x512xbf16, #tpu.memory_space<vmem>>, vector<250x512xbf16>
    %cst = arith.constant dense<0.000000e+00> : vector<20x512xf32>
    %2 = tpu.matmul %0, %1, %cst {dimension_numbers = #tpu.dot_dimension_numbers<[1], [0], [0], [1], [0, 0, 1, 1], [], []>} : vector<20x250xbf16>, vector<250x512xbf16>, vector<20x512xf32> -> vector<20x512xf32>
    %3 = vector.extract_strided_slice %2 {offsets = [0, 0], sizes = [20, 128], strides = [1, 1]} : vector<20x512xf32> to vector<20x128xf32>
    %4 = vector.extract_strided_slice %2 {offsets = [0, 128], sizes = [20, 128], strides = [1, 1]} : vector<20x512xf32> to vector<20x128xf32>
    %5 = arith.maximumf %3, %4 : vector<20x128xf32>
    %6 = vector.extract_strided_slice %2 {offsets = [0, 256], sizes = [20, 128], strides = [1, 1]} : vector<20x512xf32> to vector<20x128xf32>
    %7 = vector.extract_strided_slice %2 {offsets = [0, 384], sizes = [20, 128], strides = [1, 1]} : vector<20x512xf32> to vector<20x128xf32>
    %8 = arith.maximumf %6, %7 : vector<20x128xf32>
    %9 = arith.maximumf %5, %8 : vector<20x128xf32>
    %c0_3 = arith.constant 0 : index
    %c0_4 = arith.constant 0 : index
    %10 = vector.load %arg2[%c0_3, %c0_4] : memref<20x1xf32, #tpu.memory_space<vmem>>, vector<20x1xf32>
    %11 = vector.broadcast %10 : vector<20x1xf32> to vector<20x128xf32>
    %12 = arith.addf %9, %11 : vector<20x128xf32>
    %cst_5 = arith.constant 0.000000e+00 : f32
    %13 = vector.broadcast %cst_5 : f32 to vector<20x128xf32>
    %14 = arith.maximumf %12, %13 : vector<20x128xf32>
    %c0_6 = arith.constant 0 : index
    %c0_7 = arith.constant 0 : index
    %15 = vector.load %arg3[%c0_6, %c0_7] : memref<20x128xf32, #tpu.memory_space<vmem>>, vector<20x128xf32>
    tpu.vector_store %arg3[%c0_6, %c0_7], %14 {strides = array<i32>} : memref<20x128xf32, #tpu.memory_space<vmem>>, vector<20x128xf32>,
    return
  }
}

module attributes {stable_mosaic.version = 11 : i64} {
  func.func @_lstm_head_kernel(%arg0: memref<8x320xbf16, #tpu.memory_space<vmem>>, %arg1: memref<320x512xbf16, #tpu.memory_space<vmem>>, %arg2: memref<64x256xbf16, #tpu.memory_space<vmem>>, %arg3: memref<64x256xbf16, #tpu.memory_space<vmem>>, %arg4: memref<1x512xf32, #tpu.memory_space<vmem>>, %arg5: memref<64x10xf32, #tpu.memory_space<vmem>>, %arg6: memref<1x10xf32, #tpu.memory_space<vmem>>, %arg7: memref<2x10xf32, #tpu.memory_space<vmem>>, %arg8: memref<2x128xf32, #tpu.memory_space<vmem>>) attributes {dimension_semantics = [], scalar_prefetch = 0 : i64, scratch_operands = 0 : i64, tpu.core_type = #tpu.core_type<tc>} {
    %c0 = arith.constant 0 : index
    %c0_0 = arith.constant 0 : index
    %0 = vector.load %arg0[%c0, %c0_0] : memref<8x320xbf16, #tpu.memory_space<vmem>>, vector<8x320xbf16>
    %c0_1 = arith.constant 0 : index
    %c0_2 = arith.constant 0 : index
    %1 = vector.load %arg1[%c0_1, %c0_2] : memref<320x512xbf16, #tpu.memory_space<vmem>>, vector<320x512xbf16>
    %cst = arith.constant dense<0.000000e+00> : vector<8x512xf32>
    %2 = tpu.matmul %0, %1, %cst {dimension_numbers = #tpu.dot_dimension_numbers<[1], [0], [0], [1], [0, 0, 1, 1], [], []>} : vector<8x320xbf16>, vector<320x512xbf16>, vector<8x512xf32> -> vector<8x512xf32>
    %c0_3 = arith.constant 0 : index
    %c0_4 = arith.constant 0 : index
    %3 = vector.load %arg4[%c0_3, %c0_4] : memref<1x512xf32, #tpu.memory_space<vmem>>, vector<1x512xf32>
    %4 = vector.broadcast %3 : vector<1x512xf32> to vector<8x512xf32>
    %5 = arith.addf %2, %4 : vector<8x512xf32>
    %c0_5 = arith.constant 0 : index
    %c0_6 = arith.constant 0 : index
    %6 = vector.load %arg2[%c0_5, %c0_6] : memref<64x256xbf16, #tpu.memory_space<vmem>>, vector<64x256xbf16>
    %c0_7 = arith.constant 0 : index
    %c0_8 = arith.constant 0 : index
    %7 = vector.load %arg3[%c0_7, %c0_8] : memref<64x256xbf16, #tpu.memory_space<vmem>>, vector<64x256xbf16>
    %cst_9 = arith.constant 0.000000e+00 : f32
    %8 = vector.broadcast %cst_9 : f32 to vector<4x64xf32>
    %cst_10 = arith.constant 0.000000e+00 : f32
    %9 = vector.broadcast %cst_10 : f32 to vector<4x64xf32>
    %10 = vector.extract_strided_slice %5 {offsets = [0, 0], sizes = [4, 256], strides = [1, 1]} : vector<8x512xf32> to vector<4x256xf32>
    %11 = arith.truncf %8 : vector<4x64xf32> to vector<4x64xbf16>
    %cst_11 = arith.constant dense<0.000000e+00> : vector<4x256xf32>
    %12 = tpu.matmul %11, %6, %cst_11 {dimension_numbers = #tpu.dot_dimension_numbers<[1], [0], [0], [1], [0, 0, 1, 1], [], []>} : vector<4x64xbf16>, vector<64x256xbf16>, vector<4x256xf32> -> vector<4x256xf32>
    %13 = arith.addf %10, %12 : vector<4x256xf32>
    %14 = vector.extract_strided_slice %13 {offsets = [0, 0], sizes = [4, 64], strides = [1, 1]} : vector<4x256xf32> to vector<4x64xf32>
    %cst_12 = arith.constant 0.000000e+00 : f32
    %15 = vector.broadcast %cst_12 : f32 to vector<4x64xf32>
    %16 = arith.subf %15, %14 : vector<4x64xf32>
    %17 = math.exp %16 : vector<4x64xf32>
    %cst_13 = arith.constant 1.000000e+00 : f32
    %18 = vector.broadcast %cst_13 : f32 to vector<4x64xf32>
    %19 = arith.addf %18, %17 : vector<4x64xf32>
    %cst_14 = arith.constant 1.000000e+00 : f32
    %20 = vector.broadcast %cst_14 : f32 to vector<4x64xf32>
    %21 = arith.divf %20, %19 : vector<4x64xf32>
    %22 = vector.extract_strided_slice %13 {offsets = [0, 64], sizes = [4, 64], strides = [1, 1]} : vector<4x256xf32> to vector<4x64xf32>
    %cst_15 = arith.constant 0.000000e+00 : f32
    %23 = vector.broadcast %cst_15 : f32 to vector<4x64xf32>
    %24 = arith.subf %23, %22 : vector<4x64xf32>
    %25 = math.exp %24 : vector<4x64xf32>
    %cst_16 = arith.constant 1.000000e+00 : f32
    %26 = vector.broadcast %cst_16 : f32 to vector<4x64xf32>
    %27 = arith.addf %26, %25 : vector<4x64xf32>
    %cst_17 = arith.constant 1.000000e+00 : f32
    %28 = vector.broadcast %cst_17 : f32 to vector<4x64xf32>
    %29 = arith.divf %28, %27 : vector<4x64xf32>
    %30 = vector.extract_strided_slice %13 {offsets = [0, 128], sizes = [4, 64], strides = [1, 1]} : vector<4x256xf32> to vector<4x64xf32>
    %31 = math.tanh %30 : vector<4x64xf32>
    %32 = vector.extract_strided_slice %13 {offsets = [0, 192], sizes = [4, 64], strides = [1, 1]} : vector<4x256xf32> to vector<4x64xf32>
    %cst_18 = arith.constant 0.000000e+00 : f32
    %33 = vector.broadcast %cst_18 : f32 to vector<4x64xf32>
    %34 = arith.subf %33, %32 : vector<4x64xf32>
    %35 = math.exp %34 : vector<4x64xf32>
    %cst_19 = arith.constant 1.000000e+00 : f32
    %36 = vector.broadcast %cst_19 : f32 to vector<4x64xf32>
    %37 = arith.addf %36, %35 : vector<4x64xf32>
    %cst_20 = arith.constant 1.000000e+00 : f32
    %38 = vector.broadcast %cst_20 : f32 to vector<4x64xf32>
    %39 = arith.divf %38, %37 : vector<4x64xf32>
    %40 = arith.mulf %29, %9 : vector<4x64xf32>
    %41 = arith.mulf %21, %31 : vector<4x64xf32>
    %42 = arith.addf %40, %41 : vector<4x64xf32>
    %43 = math.tanh %42 : vector<4x64xf32>
    %44 = arith.mulf %39, %43 : vector<4x64xf32>
    %45 = vector.extract_strided_slice %44 {offsets = [3, 0], sizes = [1, 64], strides = [1, 1]} : vector<4x64xf32> to vector<1x64xf32>
    %46 = vector.extract_strided_slice %5 {offsets = [4, 0], sizes = [4, 256], strides = [1, 1]} : vector<8x512xf32> to vector<4x256xf32>
    %47 = arith.truncf %44 : vector<4x64xf32> to vector<4x64xbf16>
    %cst_21 = arith.constant dense<0.000000e+00> : vector<4x256xf32>
    %48 = tpu.matmul %47, %6, %cst_21 {dimension_numbers = #tpu.dot_dimension_numbers<[1], [0], [0], [1], [0, 0, 1, 1], [], []>} : vector<4x64xbf16>, vector<64x256xbf16>, vector<4x256xf32> -> vector<4x256xf32>
    %49 = arith.addf %46, %48 : vector<4x256xf32>
    %50 = vector.extract_strided_slice %49 {offsets = [0, 0], sizes = [4, 64], strides = [1, 1]} : vector<4x256xf32> to vector<4x64xf32>
    %cst_22 = arith.constant 0.000000e+00 : f32
    %51 = vector.broadcast %cst_22 : f32 to vector<4x64xf32>
    %52 = arith.subf %51, %50 : vector<4x64xf32>
    %53 = math.exp %52 : vector<4x64xf32>
    %cst_23 = arith.constant 1.000000e+00 : f32
    %54 = vector.broadcast %cst_23 : f32 to vector<4x64xf32>
    %55 = arith.addf %54, %53 : vector<4x64xf32>
    %cst_24 = arith.constant 1.000000e+00 : f32
    %56 = vector.broadcast %cst_24 : f32 to vector<4x64xf32>
    %57 = arith.divf %56, %55 : vector<4x64xf32>
    %58 = vector.extract_strided_slice %49 {offsets = [0, 64], sizes = [4, 64], strides = [1, 1]} : vector<4x256xf32> to vector<4x64xf32>
    %cst_25 = arith.constant 0.000000e+00 : f32
    %59 = vector.broadcast %cst_25 : f32 to vector<4x64xf32>
    %60 = arith.subf %59, %58 : vector<4x64xf32>
    %61 = math.exp %60 : vector<4x64xf32>
    %cst_26 = arith.constant 1.000000e+00 : f32
    %62 = vector.broadcast %cst_26 : f32 to vector<4x64xf32>
    %63 = arith.addf %62, %61 : vector<4x64xf32>
    %cst_27 = arith.constant 1.000000e+00 : f32
    %64 = vector.broadcast %cst_27 : f32 to vector<4x64xf32>
    %65 = arith.divf %64, %63 : vector<4x64xf32>
    %66 = vector.extract_strided_slice %49 {offsets = [0, 128], sizes = [4, 64], strides = [1, 1]} : vector<4x256xf32> to vector<4x64xf32>
    %67 = math.tanh %66 : vector<4x64xf32>
    %68 = vector.extract_strided_slice %49 {offsets = [0, 192], sizes = [4, 64], strides = [1, 1]} : vector<4x256xf32> to vector<4x64xf32>
    %cst_28 = arith.constant 0.000000e+00 : f32
    %69 = vector.broadcast %cst_28 : f32 to vector<4x64xf32>
    %70 = arith.subf %69, %68 : vector<4x64xf32>
    %71 = math.exp %70 : vector<4x64xf32>
    %cst_29 = arith.constant 1.000000e+00 : f32
    %72 = vector.broadcast %cst_29 : f32 to vector<4x64xf32>
    %73 = arith.addf %72, %71 : vector<4x64xf32>
    %cst_30 = arith.constant 1.000000e+00 : f32
    %74 = vector.broadcast %cst_30 : f32 to vector<4x64xf32>
    %75 = arith.divf %74, %73 : vector<4x64xf32>
    %76 = arith.mulf %65, %42 : vector<4x64xf32>
    %77 = arith.mulf %57, %67 : vector<4x64xf32>
    %78 = arith.addf %76, %77 : vector<4x64xf32>
    %79 = math.tanh %78 : vector<4x64xf32>
    %80 = arith.mulf %75, %79 : vector<4x64xf32>
    %81 = vector.extract_strided_slice %80 {offsets = [3, 0], sizes = [1, 64], strides = [1, 1]} : vector<4x64xf32> to vector<1x64xf32>
    %cst_31 = arith.constant 0.000000e+00 : f32
    %82 = vector.broadcast %cst_31 : f32 to vector<4x64xf32>
    %cst_32 = arith.constant 0.000000e+00 : f32
    %83 = vector.broadcast %cst_32 : f32 to vector<4x64xf32>
    %84 = vector.extract_strided_slice %5 {offsets = [4, 256], sizes = [4, 256], strides = [1, 1]} : vector<8x512xf32> to vector<4x256xf32>
    %85 = arith.truncf %82 : vector<4x64xf32> to vector<4x64xbf16>
    %cst_33 = arith.constant dense<0.000000e+00> : vector<4x256xf32>
    %86 = tpu.matmul %85, %7, %cst_33 {dimension_numbers = #tpu.dot_dimension_numbers<[1], [0], [0], [1], [0, 0, 1, 1], [], []>} : vector<4x64xbf16>, vector<64x256xbf16>, vector<4x256xf32> -> vector<4x256xf32>
    %87 = arith.addf %84, %86 : vector<4x256xf32>
    %88 = vector.extract_strided_slice %87 {offsets = [0, 0], sizes = [4, 64], strides = [1, 1]} : vector<4x256xf32> to vector<4x64xf32>
    %cst_34 = arith.constant 0.000000e+00 : f32
    %89 = vector.broadcast %cst_34 : f32 to vector<4x64xf32>
    %90 = arith.subf %89, %88 : vector<4x64xf32>
    %91 = math.exp %90 : vector<4x64xf32>
    %cst_35 = arith.constant 1.000000e+00 : f32
    %92 = vector.broadcast %cst_35 : f32 to vector<4x64xf32>
    %93 = arith.addf %92, %91 : vector<4x64xf32>
    %cst_36 = arith.constant 1.000000e+00 : f32
    %94 = vector.broadcast %cst_36 : f32 to vector<4x64xf32>
    %95 = arith.divf %94, %93 : vector<4x64xf32>
    %96 = vector.extract_strided_slice %87 {offsets = [0, 64], sizes = [4, 64], strides = [1, 1]} : vector<4x256xf32> to vector<4x64xf32>
    %cst_37 = arith.constant 0.000000e+00 : f32
    %97 = vector.broadcast %cst_37 : f32 to vector<4x64xf32>
    %98 = arith.subf %97, %96 : vector<4x64xf32>
    %99 = math.exp %98 : vector<4x64xf32>
    %cst_38 = arith.constant 1.000000e+00 : f32
    %100 = vector.broadcast %cst_38 : f32 to vector<4x64xf32>
    %101 = arith.addf %100, %99 : vector<4x64xf32>
    %cst_39 = arith.constant 1.000000e+00 : f32
    %102 = vector.broadcast %cst_39 : f32 to vector<4x64xf32>
    %103 = arith.divf %102, %101 : vector<4x64xf32>
    %104 = vector.extract_strided_slice %87 {offsets = [0, 128], sizes = [4, 64], strides = [1, 1]} : vector<4x256xf32> to vector<4x64xf32>
    %105 = math.tanh %104 : vector<4x64xf32>
    %106 = vector.extract_strided_slice %87 {offsets = [0, 192], sizes = [4, 64], strides = [1, 1]} : vector<4x256xf32> to vector<4x64xf32>
    %cst_40 = arith.constant 0.000000e+00 : f32
    %107 = vector.broadcast %cst_40 : f32 to vector<4x64xf32>
    %108 = arith.subf %107, %106 : vector<4x64xf32>
    %109 = math.exp %108 : vector<4x64xf32>
    %cst_41 = arith.constant 1.000000e+00 : f32
    %110 = vector.broadcast %cst_41 : f32 to vector<4x64xf32>
    %111 = arith.addf %110, %109 : vector<4x64xf32>
    %cst_42 = arith.constant 1.000000e+00 : f32
    %112 = vector.broadcast %cst_42 : f32 to vector<4x64xf32>
    %113 = arith.divf %112, %111 : vector<4x64xf32>
    %114 = arith.mulf %103, %83 : vector<4x64xf32>
    %115 = arith.mulf %95, %105 : vector<4x64xf32>
    %116 = arith.addf %114, %115 : vector<4x64xf32>
    %117 = math.tanh %116 : vector<4x64xf32>
    %118 = arith.mulf %113, %117 : vector<4x64xf32>
    %119 = vector.extract_strided_slice %118 {offsets = [3, 0], sizes = [1, 64], strides = [1, 1]} : vector<4x64xf32> to vector<1x64xf32>
    %120 = vector.extract_strided_slice %5 {offsets = [0, 256], sizes = [4, 256], strides = [1, 1]} : vector<8x512xf32> to vector<4x256xf32>
    %121 = arith.truncf %118 : vector<4x64xf32> to vector<4x64xbf16>
    %cst_43 = arith.constant dense<0.000000e+00> : vector<4x256xf32>
    %122 = tpu.matmul %121, %7, %cst_43 {dimension_numbers = #tpu.dot_dimension_numbers<[1], [0], [0], [1], [0, 0, 1, 1], [], []>} : vector<4x64xbf16>, vector<64x256xbf16>, vector<4x256xf32> -> vector<4x256xf32>
    %123 = arith.addf %120, %122 : vector<4x256xf32>
    %124 = vector.extract_strided_slice %123 {offsets = [0, 0], sizes = [4, 64], strides = [1, 1]} : vector<4x256xf32> to vector<4x64xf32>
    %cst_44 = arith.constant 0.000000e+00 : f32
    %125 = vector.broadcast %cst_44 : f32 to vector<4x64xf32>
    %126 = arith.subf %125, %124 : vector<4x64xf32>
    %127 = math.exp %126 : vector<4x64xf32>
    %cst_45 = arith.constant 1.000000e+00 : f32
    %128 = vector.broadcast %cst_45 : f32 to vector<4x64xf32>
    %129 = arith.addf %128, %127 : vector<4x64xf32>
    %cst_46 = arith.constant 1.000000e+00 : f32
    %130 = vector.broadcast %cst_46 : f32 to vector<4x64xf32>
    %131 = arith.divf %130, %129 : vector<4x64xf32>
    %132 = vector.extract_strided_slice %123 {offsets = [0, 64], sizes = [4, 64], strides = [1, 1]} : vector<4x256xf32> to vector<4x64xf32>
    %cst_47 = arith.constant 0.000000e+00 : f32
    %133 = vector.broadcast %cst_47 : f32 to vector<4x64xf32>
    %134 = arith.subf %133, %132 : vector<4x64xf32>
    %135 = math.exp %134 : vector<4x64xf32>
    %cst_48 = arith.constant 1.000000e+00 : f32
    %136 = vector.broadcast %cst_48 : f32 to vector<4x64xf32>
    %137 = arith.addf %136, %135 : vector<4x64xf32>
    %cst_49 = arith.constant 1.000000e+00 : f32
    %138 = vector.broadcast %cst_49 : f32 to vector<4x64xf32>
    %139 = arith.divf %138, %137 : vector<4x64xf32>
    %140 = vector.extract_strided_slice %123 {offsets = [0, 128], sizes = [4, 64], strides = [1, 1]} : vector<4x256xf32> to vector<4x64xf32>
    %141 = math.tanh %140 : vector<4x64xf32>
    %142 = vector.extract_strided_slice %123 {offsets = [0, 192], sizes = [4, 64], strides = [1, 1]} : vector<4x256xf32> to vector<4x64xf32>
    %cst_50 = arith.constant 0.000000e+00 : f32
    %143 = vector.broadcast %cst_50 : f32 to vector<4x64xf32>
    %144 = arith.subf %143, %142 : vector<4x64xf32>
    %145 = math.exp %144 : vector<4x64xf32>
    %cst_51 = arith.constant 1.000000e+00 : f32
    %146 = vector.broadcast %cst_51 : f32 to vector<4x64xf32>
    %147 = arith.addf %146, %145 : vector<4x64xf32>
    %cst_52 = arith.constant 1.000000e+00 : f32
    %148 = vector.broadcast %cst_52 : f32 to vector<4x64xf32>
    %149 = arith.divf %148, %147 : vector<4x64xf32>
    %150 = arith.mulf %139, %116 : vector<4x64xf32>
    %151 = arith.mulf %131, %141 : vector<4x64xf32>
    %152 = arith.addf %150, %151 : vector<4x64xf32>
    %153 = math.tanh %152 : vector<4x64xf32>
    %154 = arith.mulf %149, %153 : vector<4x64xf32>
    %155 = vector.extract_strided_slice %154 {offsets = [3, 0], sizes = [1, 64], strides = [1, 1]} : vector<4x64xf32> to vector<1x64xf32>
    %156 = tpu.concatenate %45, %81 in 0 : vector<1x64xf32>, vector<1x64xf32> -> vector<2x64xf32>
    %157 = tpu.concatenate %155, %119 in 0 : vector<1x64xf32>, vector<1x64xf32> -> vector<2x64xf32>
    %158 = tpu.concatenate %156, %157 in 1 : vector<2x64xf32>, vector<2x64xf32> -> vector<2x128xf32>
    %c0_53 = arith.constant 0 : index
    %c0_54 = arith.constant 0 : index
    %159 = vector.load %arg8[%c0_53, %c0_54] : memref<2x128xf32, #tpu.memory_space<vmem>>, vector<2x128xf32>
    tpu.vector_store %arg8[%c0_53, %c0_54], %158 {strides = array<i32>} : memref<2x128xf32, #tpu.memory_space<vmem>>, vector<2x128xf32>,
    %160 = vector.extract_strided_slice %158 {offsets = [0, 0], sizes = [2, 64], strides = [1, 1]} : vector<2x128xf32> to vector<2x64xf32>
    %c0_55 = arith.constant 0 : index
    %c0_56 = arith.constant 0 : index
    %161 = vector.load %arg5[%c0_55, %c0_56] : memref<64x10xf32, #tpu.memory_space<vmem>>, vector<64x10xf32>
    %cst_57 = arith.constant dense<0.000000e+00> : vector<2x10xf32>
    %162 = tpu.matmul %160, %161, %cst_57 {dimension_numbers = #tpu.dot_dimension_numbers<[1], [0], [0], [1], [0, 0, 1, 1], [], []>} : vector<2x64xf32>, vector<64x10xf32>, vector<2x10xf32> -> vector<2x10xf32>
    %c0_58 = arith.constant 0 : index
    %c0_59 = arith.constant 0 : index
    %163 = vector.load %arg6[%c0_58, %c0_59] : memref<1x10xf32, #tpu.memory_space<vmem>>, vector<1x10xf32>
    %164 = vector.broadcast %163 : vector<1x10xf32> to vector<2x10xf32>
    %165 = arith.addf %162, %164 : vector<2x10xf32>
    %cst_60 = arith.constant dense<0xFF800000> : vector<2xf32>
    %166 = vector.multi_reduction <maximumf>, %165, %cst_60 [1] : vector<2x10xf32> to vector<2xf32>
    %167 = vector.shape_cast %166 : vector<2xf32> to vector<2x1xf32>
    %168 = vector.broadcast %167 : vector<2x1xf32> to vector<2x10xf32>
    %169 = arith.subf %165, %168 : vector<2x10xf32>
    %170 = math.exp %169 : vector<2x10xf32>
    %cst_61 = arith.constant dense<0.000000e+00> : vector<2xf32>
    %171 = vector.multi_reduction <add>, %170, %cst_61 [1] : vector<2x10xf32> to vector<2xf32>
    %172 = vector.shape_cast %171 : vector<2xf32> to vector<2x1xf32>
    %173 = math.log %172 : vector<2x1xf32>
    %174 = vector.broadcast %173 : vector<2x1xf32> to vector<2x10xf32>
    %175 = arith.subf %169, %174 : vector<2x10xf32>
    %c0_62 = arith.constant 0 : index
    %c0_63 = arith.constant 0 : index
    %176 = vector.load %arg7[%c0_62, %c0_63] : memref<2x10xf32, #tpu.memory_space<vmem>>, vector<2x10xf32>
    tpu.vector_store %arg7[%c0_62, %c0_63], %175 {strides = array<i32>} : memref<2x10xf32, #tpu.memory_space<vmem>>, vector<2x10xf32>,
    return
  }
}

</mosaic_0001>

<bundles_post_ra>
// kernel: chanakya_crnn_forward.3
= control target key start
LH: loop header
LB: loop body
LE: loop exit
PB: predicated region body
PF: predicated region fallthrough
CT: control target
= control target key end

     0   :  { %vm1070_vm0 = vcmask 1044480   ;;  %vm1071_vm1 = vcmask 1045504   ;;  %v2754_v2 = vmov 65535   ;;  %vm1066_vm2 = vcmask 613376   ;;  %s4236_s0 = inlined_call_operand.vmem [shape: bf16[75,4608], index: 0, kind: input, shape index: {}]   ;;  %s4237_s1 = inlined_call_operand.vmem [shape: bf16[10,75], index: 1, kind: input, shape index: {}]   ;;  %s4238_s2 = inlined_call_operand.vmem [shape: f32[10,1], index: 2, kind: input, shape index: {}]   ;;  %s4239_s3 = inlined_call_operand.vmem [shape: f32[10,1152], index: 3, kind: output, shape index: {}]  }
   0x1   :  { %v2392_v0 = vld [vmem:[%s4236_s0 + $0x480] sm:$0xf]  ;;  %v2733_v1 = vld [vmem:[%s4236_s0 + $0x50c] sm:$0x30]  ;;  %v1072_v3 = vsel %vm1070_vm0, 4294967295, %v2754_v2 }
   0x2   :  { %v2393_v4 = vor.u32 %v2733_v1, %v2392_v0  ;;  %v2782_v5 = vsel %vm1071_vm1, %v1072_v3, 0  ;;  %v2715_v6 = vld [vmem:[%s4236_s0 + $0x484] sm:$0xf]  ;;  %v2394_v7 = vld [vmem:[%s4236_s0 + $0x510] sm:$0x30] }
   0x3   :  { %v2397_v8 = vor.u32 %v2715_v6, %v2394_v7  ;;  %v2400_v9 = vld [vmem:[%s4236_s0 + $0x488] sm:$0xf]  ;;  %v2734_v10 = vld [vmem:[%s4236_s0 + $0x514] sm:$0x30]  ;;  %v2716_v11 = vld [vmem:[%s4236_s0 + $0x48c] sm:$0xf] }
   0x4   :  { %v1075_v12 = vand.u32 %v2393_v4, %v2782_v5  ;;  %v2401_v13 = vor.u32 %v2734_v10, %v2400_v9  ;;  %v2402_v14 = vld [vmem:[%s4236_s0 + $0x518] sm:$0x30]  ;;  %v2248_v15 = vld [vmem:[%s4236_s0 + $0x360] sm:$0xf]  ;;  %v2697_v16 = vld [vmem:[%s4236_s0 + $0x3ec] sm:$0xf0] }
   0x5   :  { %v1078_v17 = vand.u32 %v2397_v8, %v2782_v5  ;;  %v2405_v18 = vor.u32 %v2716_v11, %v2402_v14  ;;  %v2679_v19 = vld [vmem:[%s4236_s0 + $0x364] sm:$0xf]  ;;  %v2250_v20 = vld [vmem:[%s4236_s0 + $0x3f0] sm:$0xf0]  ;;  %v2256_v21 = vld [vmem:[%s4236_s0 + $0x368] sm:$0xf]  ;;  %v2249_v23 = vor.u32 %v2697_v16, %v2248_v15 }
   0x6   :  { %1185 = vmatpush.bf16.msra.mxu0 %v1075_v12  ;;  %v1081_v22 = vand.u32 %v2401_v13, %v2782_v5  ;;  %v2698_v24 = vld [vmem:[%s4236_s0 + $0x3f4] sm:$0xf0]  ;;  %v2680_v25 = vld [vmem:[%s4236_s0 + $0x36c] sm:$0xf]  ;;  %v2258_v26 = vld [vmem:[%s4236_s0 + $0x3f8] sm:$0xf0]  ;;  %v2253_v28 = vor.u32 %v2679_v19, %v2250_v20 }
   0x7   :  { %1199 = vmatpush.bf16.msra.mxu1 %v1078_v17  ;;  %v1084_v27 = vand.u32 %v2405_v18, %v2782_v5  ;;  %v2104_v29 = vld [vmem:[%s4236_s0 + $0x240] sm:$0xf]  ;;  %v2661_v30 = vld [vmem:[%s4236_s0 + $0x2cc] sm:$0xf0]  ;;  %v2257_v31 = vor.u32 %v2698_v24, %v2256_v21  ;;  %v2643_v32 = vld [vmem:[%s4236_s0 + $0x244] sm:$0xf]  ;;  %v2261_v34 = vor.u32 %v2680_v25, %v2258_v26 }
   0x8   :  { %1213 = vmatpush.bf16.msra.mxu2 %v1081_v22  ;;  %v2106_v33 = vld [vmem:[%s4236_s0 + $0x2d0] sm:$0xf0]  ;;  %v2112_v35 = vld [vmem:[%s4236_s0 + $0x248] sm:$0xf]  ;;  %v2662_v36 = vld [vmem:[%s4236_s0 + $0x2d4] sm:$0xf0]  ;;  %v2105_v37 = vor.u32 %v2661_v30, %v2104_v29 }
   0x9   :  { %1227 = vmatpush.bf16.msra.mxu3 %v1084_v27  ;;  %v2644_v38 = vld [vmem:[%s4236_s0 + $0x24c] sm:$0xf]  ;;  %v2114_v39 = vld [vmem:[%s4236_s0 + $0x2d8] sm:$0xf0]  ;;  %v2109_v40 = vor.u32 %v2643_v32, %v2106_v33  ;;  %v1960_v41 = vld [vmem:[%s4236_s0 + $0x120] sm:$0xf]  ;;  %v2113_v44 = vor.u32 %v2662_v36, %v2112_v35 }
   0xa   :  { %1186 = vmatpush.bf16.msra.mxu0 %v2249_v23  ;;  %v2625_v42 = vld [vmem:[%s4236_s0 + $0x1ac] sm:$0xf0]  ;;  %v2607_v43 = vld [vmem:[%s4236_s0 + $0x124] sm:$0xf]  ;;  %v1962_v45 = vld [vmem:[%s4236_s0 + $0x1b0] sm:$0xf0]  ;;  %v2117_v48 = vor.u32 %v2644_v38, %v2114_v39 }
   0xb   :  { %1200 = vmatpush.bf16.msra.mxu1 %v2253_v28  ;;  %v1968_v46 = vld [vmem:[%s4236_s0 + $0x128] sm:$0xf]  ;;  %v2626_v47 = vld [vmem:[%s4236_s0 + $0x1b4] sm:$0xf0]  ;;  %v2608_v49 = vld [vmem:[%s4236_s0 + $0x12c] sm:$0xf]  ;;  %v1961_v52 = vor.u32 %v2625_v42, %v1960_v41  ;;  %v1965_v56 = vor.u32 %v2607_v43, %v1962_v45 }
   0xc   :  { %1214 = vmatpush.bf16.msra.mxu2 %v2257_v31  ;;  %v1970_v50 = vld [vmem:[%s4236_s0 + $0x1b8] sm:$0xf0]  ;;  %v1816_v51 = vld [vmem:[%s4236_s0] sm:$0xf]  ;;  %v2589_v53 = vld [vmem:[%s4236_s0 + $0x8c] sm:$0xf0]  ;;  %v1969_v61 = vor.u32 %v2626_v47, %v1968_v46 }
   0xd   :  { %1228 = vmatpush.bf16.msra.mxu3 %v2261_v34  ;;  %v2571_v54 = vld [vmem:[%s4236_s0 + $0x4] sm:$0xf]  ;;  %v1818_v55 = vld [vmem:[%s4236_s0 + $0x90] sm:$0xf0]  ;;  %v1824_v57 = vld [vmem:[%s4236_s0 + $0x8] sm:$0xf]  ;;  %v1973_v2 = vor.u32 %v2608_v49, %v1970_v50  ;;  %v1817_v9 = vor.u32 %v2589_v53, %v1816_v51 }
   0xe   :  { %1187 = vmatpush.bf16.msra.mxu0 %v2105_v37  ;;  %v2408_v58 = vld [vmem:[%s4236_s0 + $0x490] sm:$0xf]  ;;  %v2735_v59 = vld [vmem:[%s4236_s0 + $0x51c] sm:$0x30]  ;;  %v2717_v60 = vld [vmem:[%s4236_s0 + $0x494] sm:$0xf]  ;;  %v1821_v13 = vor.u32 %v2571_v54, %v1818_v55 }
   0xf   :  { %1201 = vmatpush.bf16.msra.mxu1 %v2109_v40  ;;  %v2409_v62 = vor.u32 %v2735_v59, %v2408_v58  ;;  %v2410_v63 = vld [vmem:[%s4236_s0 + $0x520] sm:$0x30]  ;;  %v2416_v0 = vld [vmem:[%s4236_s0 + $0x498] sm:$0xf]  ;;  %v2736_v1 = vld [vmem:[%s4236_s0 + $0x524] sm:$0x30] }
  0x10   :  { %1215 = vmatpush.bf16.msra.mxu2 %v2113_v44  ;;  %v2590_v3 = vld [vmem:[%s4236_s0 + $0x94] sm:$0xf0]  ;;  %v2413_v4 = vor.u32 %v2717_v60, %v2410_v63  ;;  %v2417_v6 = vor.u32 %v2736_v1, %v2416_v0  ;;  %v2718_v7 = vld [vmem:[%s4236_s0 + $0x49c] sm:$0xf]  ;;  %v2418_v8 = vld [vmem:[%s4236_s0 + $0x528] sm:$0x30] }
  0x11   :  { %1229 = vmatpush.bf16.msra.mxu3 %v2117_v48  ;;  %v2572_v10 = vld [vmem:[%s4236_s0 + $0xc] sm:$0xf]  ;;  %v1826_v11 = vld [vmem:[%s4236_s0 + $0x98] sm:$0xf0]  ;;  %v2421_v12 = vor.u32 %v2718_v7, %v2418_v8  ;;  %v1087_v14 = vand.u32 %v2409_v62, %v2782_v5  ;;  %v1812_v15 = vld [vmem:[%s4237_s1] sm:$0xf]  ;;  %v1825_v16 = vor.u32 %v2590_v3, %v1824_v57 }
  0x12   :  { %1188 = vmatpush.bf16.msra.mxu0 %v1961_v52  ;;  %v1090_v17 = vand.u32 %v2413_v4, %v2782_v5  ;;  %v2570_v18 = vld [vmem:[%s4237_s1] sm:$0x10]  ;;  %v2264_v19 = vld [vmem:[%s4236_s0 + $0x370] sm:$0xf]  ;;  %v2699_v20 = vld [vmem:[%s4236_s0 + $0x3fc] sm:$0xf0]  ;;  %v1829_v21 = vor.u32 %v2572_v10, %v1826_v11  ;;  %v1093_v22 = vand.u32 %v2417_v6, %v2782_v5 }
  0x13   :  { %1202 = vmatpush.bf16.msra.mxu1 %v1965_v56  ;;  %v2681_v23 = vld [vmem:[%s4236_s0 + $0x374] sm:$0xf]  ;;  %v2266_v24 = vld [vmem:[%s4236_s0 + $0x400] sm:$0xf0]  ;;  %v1096_v25 = vand.u32 %v2421_v12, %v2782_v5  ;;  %v2272_v26 = vld [vmem:[%s4236_s0 + $0x378] sm:$0xf]  ;;  %v2954_v28 = vor.u32 %v2570_v18, %v1812_v15  ;;  %v2265_v29 = vor.u32 %v2699_v20, %v2264_v19 }
  0x14   :  { %1216 = vmatpush.bf16.msra.mxu2 %v1969_v61  ;;  %v2700_v27 = vld [vmem:[%s4236_s0 + $0x404] sm:$0xf0]  ;;  %v2682_v30 = vld [vmem:[%s4236_s0 + $0x37c] sm:$0xf]  ;;  %v2274_v31 = vld [vmem:[%s4236_s0 + $0x408] sm:$0xf0]  ;;  %v2269_v32 = vor.u32 %v2681_v23, %v2266_v24 }
  0x15   :  { %1230 = vmatpush.bf16.msra.mxu3 %v1973_v2  ;;  %v2120_v33 = vld [vmem:[%s4236_s0 + $0x250] sm:$0xf]  ;;  %v2663_v34 = vld [vmem:[%s4236_s0 + $0x2dc] sm:$0xf0]  ;;  %v2273_v35 = vor.u32 %v2700_v27, %v2272_v26  ;;  %v2645_v36 = vld [vmem:[%s4236_s0 + $0x254] sm:$0xf]  ;;  %v2277_v39 = vor.u32 %v2682_v30, %v2274_v31 }
  0x16   :  { %1189 = vmatpush.bf16.msra.mxu0 %v1817_v9  ;;  %v2122_v37 = vld [vmem:[%s4236_s0 + $0x2e0] sm:$0xf0]  ;;  %v2128_v38 = vld [vmem:[%s4236_s0 + $0x258] sm:$0xf]  ;;  %v2664_v40 = vld [vmem:[%s4236_s0 + $0x2e4] sm:$0xf0]  ;;  %v2121_v43 = vor.u32 %v2663_v34, %v2120_v33 }
  0x17   :  { %1203 = vmatpush.bf16.msra.mxu1 %v1821_v13  ;;  %v2646_v41 = vld [vmem:[%s4236_s0 + $0x25c] sm:$0xf]  ;;  %v2130_v42 = vld [vmem:[%s4236_s0 + $0x2e8] sm:$0xf0]  ;;  %v1976_v44 = vld [vmem:[%s4236_s0 + $0x130] sm:$0xf]  ;;  %v2125_v47 = vor.u32 %v2645_v36, %v2122_v37  ;;  %v2129_v51 = vor.u32 %v2664_v40, %v2128_v38 }
  0x18   :  { %1217 = vmatpush.bf16.msra.mxu2 %v1825_v16  ;;  %v2627_v45 = vld [vmem:[%s4236_s0 + $0x1bc] sm:$0xf0]  ;;  %v2609_v46 = vld [vmem:[%s4236_s0 + $0x134] sm:$0xf]  ;;  %v1978_v48 = vld [vmem:[%s4236_s0 + $0x1c0] sm:$0xf0]  ;;  %v2133_v55 = vor.u32 %v2646_v41, %v2130_v42 }
  0x19   :  { %1231 = vmatpush.bf16.msra.mxu3 %v1829_v21  ;;  %v1984_v49 = vld [vmem:[%s4236_s0 + $0x138] sm:$0xf]  ;;  %v2628_v50 = vld [vmem:[%s4236_s0 + $0x1c4] sm:$0xf0]  ;;  %2534 = vmatmul.msk.bf16.vlgmr.msra.gmra.mxu0 %vm1066_vm2, %v2954_v28  ;;  %v2610_v52 = vld [vmem:[%s4236_s0 + $0x13c] sm:$0xf]  ;;  %v1977_v59 = vor.u32 %v2627_v45, %v1976_v44  ;;  %v1981_v63 = vor.u32 %v2609_v46, %v1978_v48 }
  0x1a   :  { %1241 = vmatpush.bf16.msrb.mxu0 %v1087_v14  ;;  %2535 = vmatmul.msk.bf16.vlgmr.msra.gmra.mxu1 %vm1066_vm2, %v2954_v28  ;;  %v2424_v53 = vld [vmem:[%s4236_s0 + $0x4a0] sm:$0xf]  ;;  %v2737_v54 = vld [vmem:[%s4236_s0 + $0x52c] sm:$0x30]  ;;  %v1986_v56 = vld [vmem:[%s4236_s0 + $0x1c8] sm:$0xf0]  ;;  %v1985_v4 = vor.u32 %v2628_v50, %v1984_v49 }
  0x1b   :  { %1255 = vmatpush.bf16.msrb.mxu1 %v1090_v17  ;;  %2536 = vmatmul.msk.bf16.vlgmr.msra.gmra.mxu2 %vm1066_vm2, %v2954_v28  ;;  %v2719_v57 = vld [vmem:[%s4236_s0 + $0x4a4] sm:$0xf]  ;;  %v2426_v58 = vld [vmem:[%s4236_s0 + $0x530] sm:$0x30]  ;;  %v1832_v60 = vld [vmem:[%s4236_s0 + $0x10] sm:$0xf]  ;;  %v2425_v1 = vor.u32 %v2737_v54, %v2424_v53  ;;  %v1989_v9 = vor.u32 %v2610_v52, %v1986_v56 }
  0x1c   :  { %1269 = vmatpush.bf16.msrb.mxu2 %v1093_v22  ;;  %2537 = vmatmul.msk.bf16.vlgmr.msra.gmra.mxu3 %vm1066_vm2, %v2954_v28  ;;  %v2432_v61 = vld [vmem:[%s4236_s0 + $0x4a8] sm:$0xf]  ;;  %v2738_v62 = vld [vmem:[%s4236_s0 + $0x534] sm:$0x30]  ;;  %v2591_v0 = vld [vmem:[%s4236_s0 + $0x9c] sm:$0xf0]  ;;  %v2429_v8 = vor.u32 %v2719_v57, %v2426_v58 }
  0x1d   :  { %1283 = vmatpush.bf16.msrb.mxu3 %v1096_v25  ;;  %v2720_v2 = vld [vmem:[%s4236_s0 + $0x4ac] sm:$0xf]  ;;  %v2434_v3 = vld [vmem:[%s4236_s0 + $0x538] sm:$0x30]  ;;  %v2573_v6 = vld [vmem:[%s4236_s0 + $0x14] sm:$0xf]  ;;  %v2433_v12 = vor.u32 %v2738_v62, %v2432_v61  ;;  %v1833_v13 = vor.u32 %v2591_v0, %v1832_v60  ;;  %v1099_v18 = vand.u32 %v2425_v1, %v2782_v5 }
  0x1e   :  { %1242 = vmatpush.bf16.msrb.mxu0 %v2265_v29  ;;  %v1834_v7 = vld [vmem:[%s4236_s0 + $0xa0] sm:$0xf0]  ;;  %v1840_v10 = vld [vmem:[%s4236_s0 + $0x18] sm:$0xf]  ;;  %v2592_v11 = vld [vmem:[%s4236_s0 + $0xa4] sm:$0xf0]  ;;  %v2437_v16 = vor.u32 %v2720_v2, %v2434_v3  ;;  %v1102_v20 = vand.u32 %v2429_v8, %v2782_v5 }
  0x1f   :  { %1256 = vmatpush.bf16.msrb.mxu1 %v2269_v32  ;;  %v2574_v14 = vld [vmem:[%s4236_s0 + $0x1c] sm:$0xf]  ;;  %v1842_v15 = vld [vmem:[%s4236_s0 + $0xa8] sm:$0xf0]  ;;  %v1837_v17 = vor.u32 %v2573_v6, %v1834_v7  ;;  %v1841_v19 = vor.u32 %v2592_v11, %v1840_v10  ;;  %v2280_v21 = vld [vmem:[%s4236_s0 + $0x380] sm:$0xf]  ;;  %v1105_v24 = vand.u32 %v2433_v12, %v2782_v5 }
  0x20   :  { %1270 = vmatpush.bf16.msrb.mxu2 %v2273_v35  ;;  %v2701_v22 = vld [vmem:[%s4236_s0 + $0x40c] sm:$0xf0]  ;;  %v1845_v23 = vor.u32 %v2574_v14, %v1842_v15  ;;  %v2683_v25 = vld [vmem:[%s4236_s0 + $0x384] sm:$0xf]  ;;  %v1108_v26 = vand.u32 %v2437_v16, %v2782_v5  ;;  %v2282_v27 = vld [vmem:[%s4236_s0 + $0x410] sm:$0xf0] }
  0x21   :  { %1284 = vmatpush.bf16.msrb.mxu3 %v2277_v39  ;;  %v2288_v29 = vld [vmem:[%s4236_s0 + $0x388] sm:$0xf]  ;;  %v2702_v30 = vld [vmem:[%s4236_s0 + $0x414] sm:$0xf0]  ;;  %v2281_v31 = vor.u32 %v2701_v22, %v2280_v21  ;;  %v2684_v32 = vld [vmem:[%s4236_s0 + $0x38c] sm:$0xf]  ;;  %v2285_v36 = vor.u32 %v2683_v25, %v2282_v27 }
  0x22   :  { %1243 = vmatpush.bf16.msrb.mxu0 %v2121_v43  ;;  %v2290_v33 = vld [vmem:[%s4236_s0 + $0x418] sm:$0xf0]  ;;  %v2136_v34 = vld [vmem:[%s4236_s0 + $0x260] sm:$0xf]  ;;  %v2665_v35 = vld [vmem:[%s4236_s0 + $0x2ec] sm:$0xf0]  ;;  %v2289_v37 = vor.u32 %v2702_v30, %v2288_v29 }
  0x23   :  { %1257 = vmatpush.bf16.msrb.mxu1 %v2125_v47  ;;  %v2647_v38 = vld [vmem:[%s4236_s0 + $0x264] sm:$0xf]  ;;  %v2138_v39 = vld [vmem:[%s4236_s0 + $0x2f0] sm:$0xf0]  ;;  %v2293_v40 = vor.u32 %v2684_v32, %v2290_v33  ;;  %v2144_v41 = vld [vmem:[%s4236_s0 + $0x268] sm:$0xf]  ;;  %v2137_v44 = vor.u32 %v2665_v35, %v2136_v34 }
  0x24   :  { %1271 = vmatpush.bf16.msrb.mxu2 %v2129_v51  ;;  %v2666_v42 = vld [vmem:[%s4236_s0 + $0x2f4] sm:$0xf0]  ;;  %v2648_v43 = vld [vmem:[%s4236_s0 + $0x26c] sm:$0xf]  ;;  %v2146_v45 = vld [vmem:[%s4236_s0 + $0x2f8] sm:$0xf0]  ;;  %v2141_v52 = vor.u32 %v2647_v38, %v2138_v39 }
  0x25   :  { %1285 = vmatpush.bf16.msrb.mxu3 %v2133_v55  ;;  %v1992_v46 = vld [vmem:[%s4236_s0 + $0x140] sm:$0xf]  ;;  %v2629_v47 = vld [vmem:[%s4236_s0 + $0x1cc] sm:$0xf0]  ;;  %v2611_v48 = vld [vmem:[%s4236_s0 + $0x144] sm:$0xf]  ;;  %v2145_v53 = vor.u32 %v2666_v42, %v2144_v41  ;;  %v2149_v57 = vor.u32 %v2648_v43, %v2146_v45 }
  0x26   :  { %1244 = vmatpush.bf16.msrb.mxu0 %v1977_v59  ;;  %v1994_v49 = vld [vmem:[%s4236_s0 + $0x1d0] sm:$0xf0]  ;;  %v2000_v50 = vld [vmem:[%s4236_s0 + $0x148] sm:$0xf]  ;;  %v2630_v51 = vld [vmem:[%s4236_s0 + $0x1d4] sm:$0xf0]  ;;  %v1993_v61 = vor.u32 %v2629_v47, %v1992_v46 }
  0x27   :  { %1258 = vmatpush.bf16.msrb.mxu1 %v1981_v63  ;;  %v2612_v54 = vld [vmem:[%s4236_s0 + $0x14c] sm:$0xf]  ;;  %v2440_v55 = vld [vmem:[%s4236_s0 + $0x4b0] sm:$0xf]  ;;  %v2739_v56 = vld [vmem:[%s4236_s0 + $0x53c] sm:$0x30]  ;;  %v1997_v6 = vor.u32 %v2611_v48, %v1994_v49  ;;  %v2001_v7 = vor.u32 %v2630_v51, %v2000_v50 }
  0x28   :  { %1272 = vmatpush.bf16.msrb.mxu2 %v1985_v4  ;;  %v2002_v58 = vld [vmem:[%s4236_s0 + $0x1d8] sm:$0xf0]  ;;  %v1848_v59 = vld [vmem:[%s4236_s0 + $0x20] sm:$0xf]  ;;  %v2593_v60 = vld [vmem:[%s4236_s0 + $0xac] sm:$0xf0]  ;;  %v2441_v1 = vor.u32 %v2739_v56, %v2440_v55 }
  0x29   :  { %1286 = vmatpush.bf16.msrb.mxu3 %v1989_v9  ;;  %v2721_v62 = vld [vmem:[%s4236_s0 + $0x4b4] sm:$0xf]  ;;  %v2442_v63 = vld [vmem:[%s4236_s0 + $0x540] sm:$0x30]  ;;  %v2448_v0 = vld [vmem:[%s4236_s0 + $0x4b8] sm:$0xf]  ;;  %v2005_v9 = vor.u32 %v2612_v54, %v2002_v58  ;;  %v1849_v14 = vor.u32 %v2593_v60, %v1848_v59 }
  0x2a   :  { %1245 = vmatpush.bf16.msrb.mxu0 %v1833_v13  ;;  %v2740_v2 = vld [vmem:[%s4236_s0 + $0x544] sm:$0x30]  ;;  %v2722_v3 = vld [vmem:[%s4236_s0 + $0x4bc] sm:$0xf]  ;;  %v2450_v4 = vld [vmem:[%s4236_s0 + $0x548] sm:$0x30]  ;;  %v2445_v13 = vor.u32 %v2721_v62, %v2442_v63 }
  0x2b   :  { %1259 = vmatpush.bf16.msrb.mxu1 %v1837_v17  ;;  %v2575_v8 = vld [vmem:[%s4236_s0 + $0x24] sm:$0xf]  ;;  %v1850_v10 = vld [vmem:[%s4236_s0 + $0xb0] sm:$0xf0]  ;;  %v1856_v11 = vld [vmem:[%s4236_s0 + $0x28] sm:$0xf]  ;;  %v2449_v17 = vor.u32 %v2740_v2, %v2448_v0 }
  0x2c   :  { %1273 = vmatpush.bf16.msrb.mxu2 %v1841_v19  ;;  %v2594_v12 = vld [vmem:[%s4236_s0 + $0xb4] sm:$0xf0]  ;;  %v2576_v15 = vld [vmem:[%s4236_s0 + $0x2c] sm:$0xf]  ;;  %v1858_v16 = vld [vmem:[%s4236_s0 + $0xb8] sm:$0xf0]  ;;  %v1111_v19 = vand.u32 %v2441_v1, %v2782_v5 }
  0x2d   :  { %1287 = vmatpush.bf16.msrb.mxu3 %v1845_v23  ;;  %2538 = vmatmul.msk.bf16.vlgmr.msrb.gmra.mxu0 %vm1066_vm2, %v2954_v28  ;;  %v1857_v21 = vor.u32 %v2594_v12, %v1856_v11  ;;  %v1861_v22 = vor.u32 %v2576_v15, %v1858_v16  ;;  %v1114_v23 = vand.u32 %v2445_v13, %v2782_v5  ;;  %v2703_v25 = vld [vmem:[%s4236_s0 + $0x41c] sm:$0xf0]  ;;  %v2685_v29 = vld [vmem:[%s4236_s0 + $0x394] sm:$0xf]  ;;  %v2298_v30 = vld [vmem:[%s4236_s0 + $0x420] sm:$0xf0] }
  0x2e   :  { %1297 = vmatpush.bf16.msra.mxu0 %v1099_v18  ;;  %2539 = vmatmul.msk.bf16.vlgmr.msrb.gmra.mxu1 %vm1066_vm2, %v2954_v28  ;;  %v2453_v18 = vor.u32 %v2722_v3, %v2450_v4  ;;  %v2704_v32 = vld [vmem:[%s4236_s0 + $0x424] sm:$0xf0]  ;;  %v2686_v33 = vld [vmem:[%s4236_s0 + $0x39c] sm:$0xf]  ;;  %v2306_v34 = vld [vmem:[%s4236_s0 + $0x428] sm:$0xf0] }
  0x2f   :  { %1311 = vmatpush.bf16.msra.mxu1 %v1102_v20  ;;  %2540 = vmatmul.msk.bf16.vlgmr.msrb.gmra.mxu2 %vm1066_vm2, %v2954_v28  ;;  %v1853_v20 = vor.u32 %v2575_v8, %v1850_v10  ;;  %v2667_v38 = vld [vmem:[%s4236_s0 + $0x2fc] sm:$0xf0]  ;;  %v2649_v41 = vld [vmem:[%s4236_s0 + $0x274] sm:$0xf]  ;;  %v2154_v42 = vld [vmem:[%s4236_s0 + $0x300] sm:$0xf0] }
  0x30   :  { %1325 = vmatpush.bf16.msra.mxu2 %v1105_v24  ;;  %2541 = vmatmul.msk.bf16.vlgmr.msrb.gmra.mxu3 %vm1066_vm2, %v2954_v28  ;;  %v2296_v24 = vld [vmem:[%s4236_s0 + $0x390] sm:$0xf]  ;;  %v1120_v27 = vand.u32 %v2453_v18, %v2782_v5  ;;  %v2160_v43 = vld [vmem:[%s4236_s0 + $0x278] sm:$0xf]  ;;  %v2650_v45 = vld [vmem:[%s4236_s0 + $0x27c] sm:$0xf]  ;;  %v2157_v49 = vor.u32 %v2649_v41, %v2154_v42 }
  0x31   :  { %1339 = vmatpush.bf16.msra.mxu3 %v1108_v26  ;;  %v1117_v26 = vand.u32 %v2449_v17, %v2782_v5  ;;  %v2297_v35 = vor.u32 %v2703_v25, %v2296_v24  ;;  %v2162_v46 = vld [vmem:[%s4236_s0 + $0x308] sm:$0xf0]  ;;  %v2008_v47 = vld [vmem:[%s4236_s0 + $0x150] sm:$0xf]  ;;  %v2631_v50 = vld [vmem:[%s4236_s0 + $0x1dc] sm:$0xf0] }
  0x32   :  { %1298 = vmatpush.bf16.msra.mxu0 %v2281_v31  ;;  %v2304_v31 = vld [vmem:[%s4236_s0 + $0x398] sm:$0xf]  ;;  %v2613_v51 = vld [vmem:[%s4236_s0 + $0x154] sm:$0xf]  ;;  %v2165_v54 = vor.u32 %v2650_v45, %v2162_v46  ;;  %v2632_v56 = vld [vmem:[%s4236_s0 + $0x1e4] sm:$0xf0]  ;;  %v2009_v2 = vor.u32 %v2631_v50, %v2008_v47 }
  0x33   :  { %1312 = vmatpush.bf16.msra.mxu1 %v2285_v36  ;;  %v2301_v36 = vor.u32 %v2685_v29, %v2298_v30  ;;  %v2305_v39 = vor.u32 %v2704_v32, %v2304_v31  ;;  %v2016_v55 = vld [vmem:[%s4236_s0 + $0x158] sm:$0xf]  ;;  %v2018_v58 = vld [vmem:[%s4236_s0 + $0x1e8] sm:$0xf0]  ;;  %v2456_v59 = vld [vmem:[%s4236_s0 + $0x4c0] sm:$0xf] }
  0x34   :  { %1326 = vmatpush.bf16.msra.mxu2 %v2289_v37  ;;  %v2152_v37 = vld [vmem:[%s4236_s0 + $0x270] sm:$0xf]  ;;  %v2595_v62 = vld [vmem:[%s4236_s0 + $0xbc] sm:$0xf0]  ;;  %v2723_v63 = vld [vmem:[%s4236_s0 + $0x4c4] sm:$0xf]  ;;  %v2017_v8 = vor.u32 %v2632_v56, %v2016_v55 }
  0x35   :  { %1340 = vmatpush.bf16.msra.mxu3 %v2293_v40  ;;  %v2309_v40 = vor.u32 %v2686_v33, %v2306_v34  ;;  %v2153_v48 = vor.u32 %v2667_v38, %v2152_v37  ;;  %v2741_v60 = vld [vmem:[%s4236_s0 + $0x54c] sm:$0x30]  ;;  %v2458_v0 = vld [vmem:[%s4236_s0 + $0x550] sm:$0x30]  ;;  %v2464_v1 = vld [vmem:[%s4236_s0 + $0x4c8] sm:$0xf] }
  0x36   :  { %1299 = vmatpush.bf16.msra.mxu0 %v2137_v44  ;;  %v2668_v44 = vld [vmem:[%s4236_s0 + $0x304] sm:$0xf0]  ;;  %v2742_v4 = vld [vmem:[%s4236_s0 + $0x554] sm:$0x30]  ;;  %v2577_v10 = vld [vmem:[%s4236_s0 + $0x34] sm:$0xf]  ;;  %v2457_v16 = vor.u32 %v2741_v60, %v2456_v59  ;;  %v2461_v17 = vor.u32 %v2723_v63, %v2458_v0 }
  0x37   :  { %1313 = vmatpush.bf16.msra.mxu1 %v2141_v52  ;;  %v2010_v52 = vld [vmem:[%s4236_s0 + $0x1e0] sm:$0xf0]  ;;  %v1872_v12 = vld [vmem:[%s4236_s0 + $0x38] sm:$0xf]  ;;  %v2596_v13 = vld [vmem:[%s4236_s0 + $0xc4] sm:$0xf0]  ;;  %v2465_v18 = vor.u32 %v2742_v4, %v2464_v1 }
  0x38   :  { %1327 = vmatpush.bf16.msra.mxu2 %v2145_v53  ;;  %v2161_v53 = vor.u32 %v2668_v44, %v2160_v43  ;;  %v2013_v3 = vor.u32 %v2613_v51, %v2010_v52  ;;  %v1866_v11 = vld [vmem:[%s4236_s0 + $0xc0] sm:$0xf0]  ;;  %v1874_v15 = vld [vmem:[%s4236_s0 + $0xc8] sm:$0xf0]  ;;  %v1123_v24 = vand.u32 %v2457_v16, %v2782_v5  ;;  %v1126_v25 = vand.u32 %v2461_v17, %v2782_v5  ;;  %v2314_v32 = vld [vmem:[%s4236_s0 + $0x430] sm:$0xf0] }
  0x39   :  { %1341 = vmatpush.bf16.msra.mxu3 %v2149_v57  ;;  %v2614_v57 = vld [vmem:[%s4236_s0 + $0x15c] sm:$0xf]  ;;  %v1129_v29 = vand.u32 %v2465_v18, %v2782_v5  ;;  %v2687_v31 = vld [vmem:[%s4236_s0 + $0x3a4] sm:$0xf]  ;;  %v2320_v33 = vld [vmem:[%s4236_s0 + $0x3a8] sm:$0xf] }
  0x3a   :  { %1300 = vmatpush.bf16.msra.mxu0 %v1993_v61  ;;  %v1864_v61 = vld [vmem:[%s4236_s0 + $0x30] sm:$0xf]  ;;  %v2706_v34 = vld [vmem:[%s4236_s0 + $0x434] sm:$0xf0]  ;;  %v2317_v38 = vor.u32 %v2687_v31, %v2314_v32  ;;  %v2651_v43 = vld [vmem:[%s4236_s0 + $0x284] sm:$0xf] }
  0x3b   :  { %1314 = vmatpush.bf16.msra.mxu1 %v1997_v6  ;;  %v2724_v6 = vld [vmem:[%s4236_s0 + $0x4cc] sm:$0xf]  ;;  %v2321_v41 = vor.u32 %v2706_v34, %v2320_v33  ;;  %v2170_v44 = vld [vmem:[%s4236_s0 + $0x310] sm:$0xf0]  ;;  %v2176_v45 = vld [vmem:[%s4236_s0 + $0x288] sm:$0xf] }
  0x3c   :  { %1328 = vmatpush.bf16.msra.mxu2 %v2001_v7  ;;  %v2466_v7 = vld [vmem:[%s4236_s0 + $0x558] sm:$0x30]  ;;  %v2670_v46 = vld [vmem:[%s4236_s0 + $0x314] sm:$0xf0]  ;;  %v2652_v47 = vld [vmem:[%s4236_s0 + $0x28c] sm:$0xf]  ;;  %v2173_v51 = vor.u32 %v2651_v43, %v2170_v44 }
  0x3d   :  { %1342 = vmatpush.bf16.msra.mxu3 %v2005_v9  ;;  %v2021_v9 = vor.u32 %v2614_v57, %v2018_v58  ;;  %v2633_v52 = vld [vmem:[%s4236_s0 + $0x1ec] sm:$0xf0]  ;;  %v2177_v55 = vor.u32 %v2670_v46, %v2176_v45  ;;  %v2032_v57 = vld [vmem:[%s4236_s0 + $0x168] sm:$0xf]  ;;  %v2634_v58 = vld [vmem:[%s4236_s0 + $0x1f4] sm:$0xf0] }
  0x3e   :  { %1301 = vmatpush.bf16.msra.mxu0 %v1849_v14  ;;  %v2578_v14 = vld [vmem:[%s4236_s0 + $0x3c] sm:$0xf]  ;;  %v2616_v59 = vld [vmem:[%s4236_s0 + $0x16c] sm:$0xf]  ;;  %v1880_v63 = vld [vmem:[%s4236_s0 + $0x40] sm:$0xf] }
  0x3f   :  { %1315 = vmatpush.bf16.msra.mxu1 %v1853_v20  ;;  %v1865_v20 = vor.u32 %v2595_v62, %v1864_v61  ;;  %v2034_v60 = vld [vmem:[%s4236_s0 + $0x1f8] sm:$0xf0]  ;;  %v2472_v61 = vld [vmem:[%s4236_s0 + $0x4d0] sm:$0xf]  ;;  %v2743_v62 = vld [vmem:[%s4236_s0 + $0x55c] sm:$0x30] }
  0x40   :  { %1329 = vmatpush.bf16.msra.mxu2 %v1857_v21  ;;  %v1869_v21 = vor.u32 %v2577_v10, %v1866_v11  ;;  %v2597_v0 = vld [vmem:[%s4236_s0 + $0xcc] sm:$0xf0]  ;;  %v2725_v1 = vld [vmem:[%s4236_s0 + $0x4d4] sm:$0xf]  ;;  %v2033_v10 = vor.u32 %v2634_v58, %v2032_v57  ;;  %v2037_v11 = vor.u32 %v2616_v59, %v2034_v60  ;;  %v2580_v16 = vld [vmem:[%s4236_s0 + $0x4c] sm:$0xf]  ;;  %v2473_v18 = vor.u32 %v2743_v62, %v2472_v61 }
  0x41   :  { %1343 = vmatpush.bf16.msra.mxu3 %v1861_v22  ;;  %2542 = vmatmul.msk.bf16.vlgmr.msra.gmra.mxu0 %vm1066_vm2, %v2954_v28  ;;  %v1873_v22 = vor.u32 %v2596_v13, %v1872_v12  ;;  %v2579_v12 = vld [vmem:[%s4236_s0 + $0x44] sm:$0xf]  ;;  %v1882_v13 = vld [vmem:[%s4236_s0 + $0xd0] sm:$0xf0]  ;;  %v1890_v17 = vld [vmem:[%s4236_s0 + $0xd8] sm:$0xf0] }
  0x42   :  { %1353 = vmatpush.bf16.msrb.mxu0 %v1111_v19  ;;  %2543 = vmatmul.msk.bf16.vlgmr.msra.gmra.mxu1 %vm1066_vm2, %v2954_v28  ;;  %v2469_v19 = vor.u32 %v2724_v6, %v2466_v7  ;;  %v2744_v7 = vld [vmem:[%s4236_s0 + $0x564] sm:$0x30]  ;;  %v2689_v33 = vld [vmem:[%s4236_s0 + $0x3b4] sm:$0xf]  ;;  %v2330_v34 = vld [vmem:[%s4236_s0 + $0x440] sm:$0xf0] }
  0x43   :  { %1367 = vmatpush.bf16.msrb.mxu1 %v1114_v23  ;;  %2544 = vmatmul.msk.bf16.vlgmr.msra.gmra.mxu2 %vm1066_vm2, %v2954_v28  ;;  %v1877_v23 = vor.u32 %v2578_v14, %v1874_v15  ;;  %v1888_v14 = vld [vmem:[%s4236_s0 + $0x48] sm:$0xf]  ;;  %v2598_v15 = vld [vmem:[%s4236_s0 + $0xd4] sm:$0xf0]  ;;  %v2653_v45 = vld [vmem:[%s4236_s0 + $0x294] sm:$0xf] }
  0x44   :  { %1381 = vmatpush.bf16.msrb.mxu2 %v1117_v26  ;;  %2545 = vmatmul.msk.bf16.vlgmr.msra.gmra.mxu3 %vm1066_vm2, %v2954_v28  ;;  %v2312_v26 = vld [vmem:[%s4236_s0 + $0x3a0] sm:$0xf]  ;;  %v1132_v30 = vand.u32 %v2469_v19, %v2782_v5  ;;  %v2186_v46 = vld [vmem:[%s4236_s0 + $0x320] sm:$0xf0]  ;;  %v2048_v59 = vld [vmem:[%s4236_s0 + $0x178] sm:$0xf] }
  0x45   :  { %1395 = vmatpush.bf16.msrb.mxu3 %v1120_v27  ;;  %v2705_v27 = vld [vmem:[%s4236_s0 + $0x42c] sm:$0xf0]  ;;  %v2636_v60 = vld [vmem:[%s4236_s0 + $0x204] sm:$0xf0]  ;;  %v2618_v61 = vld [vmem:[%s4236_s0 + $0x17c] sm:$0xf] }
  0x46   :  { %1354 = vmatpush.bf16.msrb.mxu0 %v2297_v35  ;;  %v2688_v35 = vld [vmem:[%s4236_s0 + $0x3ac] sm:$0xf]  ;;  %v2313_v37 = vor.u32 %v2705_v27, %v2312_v26  ;;  %v1135_v26 = vand.u32 %v2473_v18, %v2782_v5  ;;  %v2582_v18 = vld [vmem:[%s4236_s0 + $0x5c] sm:$0xf] }
  0x47   :  { %1368 = vmatpush.bf16.msrb.mxu1 %v2301_v36  ;;  %v2322_v36 = vld [vmem:[%s4236_s0 + $0x438] sm:$0xf0]  ;;  %v2050_v62 = vld [vmem:[%s4236_s0 + $0x208] sm:$0xf0] }
  0x48   :  { %1382 = vmatpush.bf16.msrb.mxu2 %v2305_v39  ;;  %v2168_v39 = vld [vmem:[%s4236_s0 + $0x280] sm:$0xf]  ;;  %v2325_v42 = vor.u32 %v2688_v35, %v2322_v36  ;;  %v2336_v35 = vld [vmem:[%s4236_s0 + $0x3b8] sm:$0xf]  ;;  %v2708_v36 = vld [vmem:[%s4236_s0 + $0x444] sm:$0xf0] }
  0x49   :  { %1396 = vmatpush.bf16.msrb.mxu3 %v2309_v40  ;;  %v2669_v40 = vld [vmem:[%s4236_s0 + $0x30c] sm:$0xf0]  ;;  %v2337_v43 = vor.u32 %v2708_v36, %v2336_v35  ;;  %v2691_v35 = vld [vmem:[%s4236_s0 + $0x3c4] sm:$0xf]  ;;  %v2346_v36 = vld [vmem:[%s4236_s0 + $0x450] sm:$0xf0] }
  0x4a   :  { %1355 = vmatpush.bf16.msrb.mxu0 %v2153_v48  ;;  %v2178_v48 = vld [vmem:[%s4236_s0 + $0x318] sm:$0xf0]  ;;  %v2169_v50 = vor.u32 %v2669_v40, %v2168_v39  ;;  %v2333_v40 = vor.u32 %v2689_v33, %v2330_v34 }
  0x4b   :  { %1369 = vmatpush.bf16.msrb.mxu1 %v2157_v49  ;;  %v2024_v49 = vld [vmem:[%s4236_s0 + $0x160] sm:$0xf]  ;;  %v2181_v56 = vor.u32 %v2652_v47, %v2178_v48  ;;  %v2192_v47 = vld [vmem:[%s4236_s0 + $0x298] sm:$0xf]  ;;  %v2672_v48 = vld [vmem:[%s4236_s0 + $0x324] sm:$0xf0] }
  0x4c   :  { %1383 = vmatpush.bf16.msrb.mxu2 %v2161_v53  ;;  %v2615_v53 = vld [vmem:[%s4236_s0 + $0x164] sm:$0xf]  ;;  %v2025_v4 = vor.u32 %v2633_v52, %v2024_v49  ;;  %v2654_v49 = vld [vmem:[%s4236_s0 + $0x29c] sm:$0xf]  ;;  %v2193_v57 = vor.u32 %v2672_v48, %v2192_v47  ;;  %v2202_v48 = vld [vmem:[%s4236_s0 + $0x330] sm:$0xf0] }
  0x4d   :  { %1397 = vmatpush.bf16.msrb.mxu3 %v2165_v54  ;;  %v2026_v54 = vld [vmem:[%s4236_s0 + $0x1f0] sm:$0xf0]  ;;  %v2655_v47 = vld [vmem:[%s4236_s0 + $0x2a4] sm:$0xf] }
  0x4e   :  { %1356 = vmatpush.bf16.msrb.mxu0 %v2009_v2  ;;  %v2474_v2 = vld [vmem:[%s4236_s0 + $0x560] sm:$0x30]  ;;  %v2029_v6 = vor.u32 %v2615_v53, %v2026_v54  ;;  %v2189_v53 = vor.u32 %v2653_v45, %v2186_v46  ;;  %v2635_v54 = vld [vmem:[%s4236_s0 + $0x1fc] sm:$0xf0] }
  0x4f   :  { %1370 = vmatpush.bf16.msrb.mxu1 %v2013_v3  ;;  %v2480_v3 = vld [vmem:[%s4236_s0 + $0x4d8] sm:$0xf]  ;;  %v2477_v19 = vor.u32 %v2725_v1, %v2474_v2  ;;  %v1896_v1 = vld [vmem:[%s4236_s0 + $0x50] sm:$0xf]  ;;  %v2599_v2 = vld [vmem:[%s4236_s0 + $0xdc] sm:$0xf0] }
  0x50   :  { %1384 = vmatpush.bf16.msrb.mxu2 %v2017_v8  ;;  %v2726_v8 = vld [vmem:[%s4236_s0 + $0x4dc] sm:$0xf] }
  0x51   :  { %1398 = vmatpush.bf16.msrb.mxu3 %v2021_v9  ;;  %v2482_v9 = vld [vmem:[%s4236_s0 + $0x568] sm:$0x30]  ;;  %v1138_v27 = vand.u32 %v2477_v19, %v2782_v5 }
  0x52   :  { %1357 = vmatpush.bf16.msrb.mxu0 %v1865_v20  ;;  %v2481_v20 = vor.u32 %v2744_v7, %v2480_v3  ;;  %v2727_v3 = vld [vmem:[%s4236_s0 + $0x4e4] sm:$0xf]  ;;  %v1906_v19 = vld [vmem:[%s4236_s0 + $0xe8] sm:$0xf0] }
  0x53   :  { %1371 = vmatpush.bf16.msrb.mxu1 %v1869_v21  ;;  %v2485_v21 = vor.u32 %v2726_v8, %v2482_v9  ;;  %v2746_v9 = vld [vmem:[%s4236_s0 + $0x574] sm:$0x30] }
  0x54   :  { %1385 = vmatpush.bf16.msrb.mxu2 %v1873_v22  ;;  %v1881_v22 = vor.u32 %v2597_v0, %v1880_v63  ;;  %v1141_v31 = vand.u32 %v2481_v20, %v2782_v5  ;;  %v2488_v63 = vld [vmem:[%s4236_s0 + $0x4e0] sm:$0xf]  ;;  %v2745_v0 = vld [vmem:[%s4236_s0 + $0x56c] sm:$0x30] }
  0x55   :  { %1399 = vmatpush.bf16.msrb.mxu3 %v1877_v23  ;;  %2546 = vmatmul.msk.bf16.vlgmr.msrb.gmra.mxu0 %vm1066_vm2, %v2954_v28  ;;  %v1885_v23 = vor.u32 %v2579_v12, %v1882_v13  ;;  %v1144_v32 = vand.u32 %v2485_v21, %v2782_v5  ;;  %v2049_v12 = vor.u32 %v2636_v60, %v2048_v59 }
  0x56   :  { %1409 = vmatpush.bf16.msra.mxu0 %v1123_v24  ;;  %2547 = vmatmul.msk.bf16.vlgmr.msrb.gmra.mxu1 %vm1066_vm2, %v2954_v28  ;;  %v1889_v24 = vor.u32 %v2598_v15, %v1888_v14  ;;  %v2053_v13 = vor.u32 %v2618_v61, %v2050_v62  ;;  %v2581_v14 = vld [vmem:[%s4236_s0 + $0x54] sm:$0xf]  ;;  %v1898_v15 = vld [vmem:[%s4236_s0 + $0xe0] sm:$0xf0]  ;;  %v2489_v20 = vor.u32 %v2745_v0, %v2488_v63  ;;  %v2064_v61 = vld [vmem:[%s4236_s0 + $0x188] sm:$0xf] }
  0x57   :  { %1423 = vmatpush.bf16.msra.mxu1 %v1126_v25  ;;  %2548 = vmatmul.msk.bf16.vlgmr.msrb.gmra.mxu2 %vm1066_vm2, %v2954_v28  ;;  %v1893_v25 = vor.u32 %v2580_v16, %v1890_v17  ;;  %v1904_v16 = vld [vmem:[%s4236_s0 + $0x58] sm:$0xf]  ;;  %v2600_v17 = vld [vmem:[%s4236_s0 + $0xe4] sm:$0xf0]  ;;  %v2620_v63 = vld [vmem:[%s4236_s0 + $0x18c] sm:$0xf] }
  0x58   :  { %1437 = vmatpush.bf16.msra.mxu2 %v1129_v29  ;;  %2549 = vmatmul.msk.bf16.vlgmr.msrb.gmra.mxu3 %vm1066_vm2, %v2954_v28  ;;  %v2328_v29 = vld [vmem:[%s4236_s0 + $0x3b0] sm:$0xf]  ;;  %v2638_v62 = vld [vmem:[%s4236_s0 + $0x214] sm:$0xf0]  ;;  %v2066_v0 = vld [vmem:[%s4236_s0 + $0x218] sm:$0xf0] }
  0x59   :  { %1451 = vmatpush.bf16.msra.mxu3 %v1132_v30  ;;  %v2707_v30 = vld [vmem:[%s4236_s0 + $0x43c] sm:$0xf0] }
  0x5a   :  { %1410 = vmatpush.bf16.msra.mxu0 %v2313_v37  ;;  %v2690_v37 = vld [vmem:[%s4236_s0 + $0x3bc] sm:$0xf]  ;;  %v2329_v39 = vor.u32 %v2707_v30, %v2328_v29  ;;  %v1147_v29 = vand.u32 %v2489_v20, %v2782_v5  ;;  %v2602_v20 = vld [vmem:[%s4236_s0 + $0xf4] sm:$0xf0] }
  0x5b   :  { %1424 = vmatpush.bf16.msra.mxu1 %v2317_v38  ;;  %v2338_v38 = vld [vmem:[%s4236_s0 + $0x448] sm:$0xf0] }
  0x5c   :  { %1438 = vmatpush.bf16.msra.mxu2 %v2321_v41  ;;  %v2184_v41 = vld [vmem:[%s4236_s0 + $0x290] sm:$0xf]  ;;  %v2341_v44 = vor.u32 %v2690_v37, %v2338_v38  ;;  %v2352_v37 = vld [vmem:[%s4236_s0 + $0x3c8] sm:$0xf]  ;;  %v2710_v38 = vld [vmem:[%s4236_s0 + $0x454] sm:$0xf0] }
  0x5d   :  { %1452 = vmatpush.bf16.msra.mxu3 %v2325_v42  ;;  %v2671_v42 = vld [vmem:[%s4236_s0 + $0x31c] sm:$0xf0]  ;;  %v2353_v45 = vor.u32 %v2710_v38, %v2352_v37 }
  0x5e   :  { %1411 = vmatpush.bf16.msra.mxu0 %v2169_v50  ;;  %v2194_v50 = vld [vmem:[%s4236_s0 + $0x328] sm:$0xf0]  ;;  %v2185_v52 = vor.u32 %v2671_v42, %v2184_v41  ;;  %v2349_v42 = vor.u32 %v2691_v35, %v2346_v36  ;;  %v2360_v35 = vld [vmem:[%s4236_s0 + $0x3d0] sm:$0xf]  ;;  %v2711_v36 = vld [vmem:[%s4236_s0 + $0x45c] sm:$0xf0] }
  0x5f   :  { %1425 = vmatpush.bf16.msra.mxu1 %v2173_v51  ;;  %v2040_v51 = vld [vmem:[%s4236_s0 + $0x170] sm:$0xf]  ;;  %v2197_v58 = vor.u32 %v2654_v49, %v2194_v50  ;;  %v2208_v49 = vld [vmem:[%s4236_s0 + $0x2a8] sm:$0xf]  ;;  %v2674_v50 = vld [vmem:[%s4236_s0 + $0x334] sm:$0xf0] }
  0x60   :  { %1439 = vmatpush.bf16.msra.mxu2 %v2177_v55  ;;  %v2617_v55 = vld [vmem:[%s4236_s0 + $0x174] sm:$0xf]  ;;  %v2041_v7 = vor.u32 %v2635_v54, %v2040_v51  ;;  %v2656_v51 = vld [vmem:[%s4236_s0 + $0x2ac] sm:$0xf]  ;;  %v2209_v59 = vor.u32 %v2674_v50, %v2208_v49 }
  0x61   :  { %1453 = vmatpush.bf16.msra.mxu3 %v2181_v56  ;;  %v2042_v56 = vld [vmem:[%s4236_s0 + $0x200] sm:$0xf0] }
  0x62   :  { %1412 = vmatpush.bf16.msra.mxu0 %v2025_v4  ;;  %v2490_v4 = vld [vmem:[%s4236_s0 + $0x570] sm:$0x30]  ;;  %v2045_v8 = vor.u32 %v2617_v55, %v2042_v56  ;;  %v2205_v55 = vor.u32 %v2655_v47, %v2202_v48  ;;  %v2637_v56 = vld [vmem:[%s4236_s0 + $0x20c] sm:$0xf0]  ;;  %v2675_v48 = vld [vmem:[%s4236_s0 + $0x33c] sm:$0xf0] }
  0x63   :  { %1426 = vmatpush.bf16.msra.mxu1 %v2029_v6  ;;  %v2496_v6 = vld [vmem:[%s4236_s0 + $0x4e8] sm:$0xf]  ;;  %v2493_v21 = vor.u32 %v2727_v3, %v2490_v4  ;;  %v1912_v3 = vld [vmem:[%s4236_s0 + $0x60] sm:$0xf]  ;;  %v2601_v4 = vld [vmem:[%s4236_s0 + $0xec] sm:$0xf0] }
  0x64   :  { %1440 = vmatpush.bf16.msra.mxu2 %v2033_v10  ;;  %v2728_v10 = vld [vmem:[%s4236_s0 + $0x4ec] sm:$0xf]  ;;  %v2216_v47 = vld [vmem:[%s4236_s0 + $0x2b0] sm:$0xf] }
  0x65   :  { %1454 = vmatpush.bf16.msra.mxu3 %v2037_v11  ;;  %v2498_v11 = vld [vmem:[%s4236_s0 + $0x578] sm:$0x30]  ;;  %v1150_v30 = vand.u32 %v2493_v21, %v2782_v5  ;;  %v2584_v21 = vld [vmem:[%s4236_s0 + $0x6c] sm:$0xf] }
  0x66   :  { %1413 = vmatpush.bf16.msra.mxu0 %v1881_v22  ;;  %v2497_v22 = vor.u32 %v2746_v9, %v2496_v6  ;;  %v2583_v6 = vld [vmem:[%s4236_s0 + $0x64] sm:$0xf]  ;;  %v2512_v9 = vld [vmem:[%s4236_s0 + $0x4f8] sm:$0xf] }
  0x67   :  { %1427 = vmatpush.bf16.msra.mxu1 %v1885_v23  ;;  %v2501_v23 = vor.u32 %v2728_v10, %v2498_v11 }
  0x68   :  { %1441 = vmatpush.bf16.msra.mxu2 %v1889_v24  ;;  %v1897_v24 = vor.u32 %v2599_v2, %v1896_v1  ;;  %v1153_v33 = vand.u32 %v2497_v22, %v2782_v5  ;;  %v2504_v1 = vld [vmem:[%s4236_s0 + $0x4f0] sm:$0xf]  ;;  %v2747_v2 = vld [vmem:[%s4236_s0 + $0x57c] sm:$0x30]  ;;  %v1922_v22 = vld [vmem:[%s4236_s0 + $0xf8] sm:$0xf0] }
  0x69   :  { %1455 = vmatpush.bf16.msra.mxu3 %v1893_v25  ;;  %2550 = vmatmul.msk.bf16.vlgmr.msra.gmra.mxu0 %vm1066_vm2, %v2954_v28  ;;  %v1901_v25 = vor.u32 %v2581_v14, %v1898_v15  ;;  %v1156_v34 = vand.u32 %v2501_v23, %v2782_v5  ;;  %v2514_v14 = vld [vmem:[%s4236_s0 + $0x588] sm:$0x30]  ;;  %v2065_v15 = vor.u32 %v2638_v62, %v2064_v61  ;;  %v2639_v61 = vld [vmem:[%s4236_s0 + $0x21c] sm:$0xf0]  ;;  %v2621_v62 = vld [vmem:[%s4236_s0 + $0x194] sm:$0xf] }
  0x6a   :  { %1465 = vmatpush.bf16.msrb.mxu0 %v1135_v26  ;;  %2551 = vmatmul.msk.bf16.vlgmr.msra.gmra.mxu1 %vm1066_vm2, %v2954_v28  ;;  %v1905_v26 = vor.u32 %v2600_v17, %v1904_v16  ;;  %v2069_v16 = vor.u32 %v2620_v63, %v2066_v0  ;;  %v1914_v17 = vld [vmem:[%s4236_s0 + $0xf0] sm:$0xf0]  ;;  %v2505_v23 = vor.u32 %v2747_v2, %v2504_v1  ;;  %v2074_v63 = vld [vmem:[%s4236_s0 + $0x220] sm:$0xf0]  ;;  %v2080_v2 = vld [vmem:[%s4236_s0 + $0x198] sm:$0xf] }
  0x6b   :  { %1479 = vmatpush.bf16.msrb.mxu1 %v1138_v27  ;;  %2552 = vmatmul.msk.bf16.vlgmr.msra.gmra.mxu2 %vm1066_vm2, %v2954_v28  ;;  %v1909_v27 = vor.u32 %v2582_v18, %v1906_v19  ;;  %v1920_v18 = vld [vmem:[%s4236_s0 + $0x68] sm:$0xf]  ;;  %v1740_v19 = vld [vmem:[%s4238_s2] sm:$0xff] }
  0x6c   :  { %1493 = vmatpush.bf16.msrb.mxu2 %v1141_v31  ;;  %2553 = vmatmul.msk.bf16.vlgmr.msra.gmra.mxu3 %vm1066_vm2, %v2954_v28  ;;  %v2344_v31 = vld [vmem:[%s4236_s0 + $0x3c0] sm:$0xf] }
  0x6d   :  { %1507 = vmatpush.bf16.msrb.mxu3 %v1144_v32  ;;  %v2709_v32 = vld [vmem:[%s4236_s0 + $0x44c] sm:$0xf0] }
  0x6e   :  { %1466 = vmatpush.bf16.msrb.mxu0 %v2329_v39  ;;  %v2692_v39 = vld [vmem:[%s4236_s0 + $0x3cc] sm:$0xf]  ;;  %v2345_v41 = vor.u32 %v2709_v32, %v2344_v31  ;;  %v1921_v31 = vor.u32 %v2602_v20, %v1920_v18  ;;  %v1925_v32 = vor.u32 %v2584_v21, %v1922_v22  ;;  %v2530_v18 = vld [vmem:[%s4236_s0 + $0x598] sm:$0x30]  ;;  %v2585_v21 = vld [vmem:[%s4236_s0 + $0x74] sm:$0xf] }
  0x6f   :  { %1480 = vmatpush.bf16.msrb.mxu1 %v2333_v40  ;;  %v2354_v40 = vld [vmem:[%s4236_s0 + $0x458] sm:$0xf0]  ;;  %v1930_v22 = vld [vmem:[%s4236_s0 + $0x100] sm:$0xf0] }
  0x70   :  { %1494 = vmatpush.bf16.msrb.mxu2 %v2337_v43  ;;  %v2200_v43 = vld [vmem:[%s4236_s0 + $0x2a0] sm:$0xf]  ;;  %v2357_v46 = vor.u32 %v2692_v39, %v2354_v40  ;;  %v2693_v39 = vld [vmem:[%s4236_s0 + $0x3d4] sm:$0xf]  ;;  %v2362_v40 = vld [vmem:[%s4236_s0 + $0x460] sm:$0xf0] }
  0x71   :  { %1508 = vmatpush.bf16.msrb.mxu3 %v2341_v44  ;;  %v2673_v44 = vld [vmem:[%s4236_s0 + $0x32c] sm:$0xf0] }
  0x72   :  { %1467 = vmatpush.bf16.msrb.mxu0 %v2185_v52  ;;  %v2210_v52 = vld [vmem:[%s4236_s0 + $0x338] sm:$0xf0]  ;;  %v2201_v54 = vor.u32 %v2673_v44, %v2200_v43  ;;  %v2370_v44 = vld [vmem:[%s4236_s0 + $0x468] sm:$0xf0] }
  0x73   :  { %1481 = vmatpush.bf16.msrb.mxu1 %v2189_v53  ;;  %v2056_v53 = vld [vmem:[%s4236_s0 + $0x180] sm:$0xf]  ;;  %v2213_v60 = vor.u32 %v2656_v51, %v2210_v52  ;;  %v2694_v43 = vld [vmem:[%s4236_s0 + $0x3dc] sm:$0xf]  ;;  %v2657_v51 = vld [vmem:[%s4236_s0 + $0x2b4] sm:$0xf] }
  0x74   :  { %1495 = vmatpush.bf16.msrb.mxu2 %v2193_v57  ;;  %v2619_v57 = vld [vmem:[%s4236_s0 + $0x184] sm:$0xf]  ;;  %v2057_v10 = vor.u32 %v2637_v56, %v2056_v53  ;;  %v2373_v50 = vor.u32 %v2694_v43, %v2370_v44  ;;  %v2224_v53 = vld [vmem:[%s4236_s0 + $0x2b8] sm:$0xf]  ;;  %v2226_v56 = vld [vmem:[%s4236_s0 + $0x348] sm:$0xf0] }
  0x75   :  { %1509 = vmatpush.bf16.msrb.mxu3 %v2197_v58  ;;  %v2058_v58 = vld [vmem:[%s4236_s0 + $0x210] sm:$0xf0]  ;;  %v2218_v52 = vld [vmem:[%s4236_s0 + $0x340] sm:$0xf0]  ;;  %v2384_v44 = vld [vmem:[%s4236_s0 + $0x3e8] sm:$0xf] }
  0x76   :  { %1468 = vmatpush.bf16.msrb.mxu0 %v2041_v7  ;;  %v2729_v7 = vld [vmem:[%s4236_s0 + $0x4f4] sm:$0xf]  ;;  %v2061_v11 = vor.u32 %v2619_v57, %v2058_v58  ;;  %v2072_v57 = vld [vmem:[%s4236_s0 + $0x190] sm:$0xf]  ;;  %v1741_v58 = vld [vmem:[%s4238_s2 + $0x8] sm:$0x3] }
  0x77   :  { %1482 = vmatpush.bf16.msrb.mxu1 %v2045_v8  ;;  %v2506_v8 = vld [vmem:[%s4236_s0 + $0x580] sm:$0x30]  ;;  %v2378_v43 = vld [vmem:[%s4236_s0 + $0x470] sm:$0xf0] }
  0x78   :  { %1496 = vmatpush.bf16.msrb.mxu2 %v2049_v12  ;;  %v2748_v12 = vld [vmem:[%s4236_s0 + $0x584] sm:$0x30] }
  0x79   :  { %1510 = vmatpush.bf16.msrb.mxu3 %v2053_v13  ;;  %v2730_v13 = vld [vmem:[%s4236_s0 + $0x4fc] sm:$0xf] }
  0x7a   :  { %1469 = vmatpush.bf16.msrb.mxu0 %v1897_v24  ;;  %v2509_v24 = vor.u32 %v2729_v7, %v2506_v8  ;;  %v2520_v7 = vld [vmem:[%s4236_s0 + $0x500] sm:$0xf]  ;;  %v2749_v8 = vld [vmem:[%s4236_s0 + $0x58c] sm:$0x30] }
  0x7b   :  { %1483 = vmatpush.bf16.msrb.mxu1 %v1901_v25  ;;  %v2755_v25 = vmov 0  }
  0x7c   :  { %1497 = vmatpush.bf16.msrb.mxu2 %v1905_v26  ;;  %2753 = vset.pattern.permute.xlu0 %v2755_v25  ;;  %v2513_v26 = vor.u32 %v2748_v12, %v2512_v9  ;;  %v1928_v9 = vld [vmem:[%s4236_s0 + $0x70] sm:$0xf]  ;;  %v2522_v12 = vld [vmem:[%s4236_s0 + $0x590] sm:$0x30]  ;;  %v2586_v25 = vld [vmem:[%s4236_s0 + $0x7c] sm:$0xf] }
  0x7d   :  { %1511 = vmatpush.bf16.msrb.mxu3 %v1909_v27  ;;  %2554 = vmatmul.msk.bf16.vlgmr.msrb.gmra.mxu0 %vm1066_vm2, %v2954_v28  ;;  %v2517_v27 = vor.u32 %v2730_v13, %v2514_v14  ;;  %v2528_v13 = vld [vmem:[%s4236_s0 + $0x508] sm:$0xf]  ;;  %v2073_v14 = vor.u32 %v2639_v61, %v2072_v57  ;;  %v2660_v57 = vld [vmem:[%s4236_s0 + $0x2cc] sm:$0xf] }
  0x7e   :  { %1521 = vmatpush.bf16.msra.mxu0 %v1147_v29  ;;  %2555 = vmatmul.msk.bf16.vlgmr.msrb.gmra.mxu1 %vm1066_vm2, %v2954_v28  ;;  %v1913_v29 = vor.u32 %v2601_v4, %v1912_v3  ;;  %v1165_v37 = vand.u32 %v2513_v26, %v2782_v5  ;;  %v2640_v3 = vld [vmem:[%s4236_s0 + $0x224] sm:$0xf0]  ;;  %v2622_v4 = vld [vmem:[%s4236_s0 + $0x19c] sm:$0xf]  ;;  %v1938_v26 = vld [vmem:[%s4236_s0 + $0x108] sm:$0xf0] }
  0x7f   :  { %1535 = vmatpush.bf16.msra.mxu1 %v1150_v30  ;;  %2556 = vmatmul.msk.bf16.vlgmr.msrb.gmra.mxu2 %vm1066_vm2, %v2954_v28  ;;  %v1917_v30 = vor.u32 %v2583_v6, %v1914_v17  ;;  %v1168_v38 = vand.u32 %v2517_v27, %v2782_v5  ;;  %v2082_v6 = vld [vmem:[%s4236_s0 + $0x228] sm:$0xf0]  ;;  %v2521_v27 = vor.u32 %v2749_v8, %v2520_v7  ;;  %v2642_v7 = vld [vmem:[%s4236_s0 + $0x234] sm:$0xf0] }
  0x80   :  { %1549 = vmatpush.bf16.msra.mxu2 %v1153_v33  ;;  %2557 = vmatmul.msk.bf16.vlgmr.msrb.gmra.mxu3 %vm1066_vm2, %v2954_v28  ;;  %v1159_v33 = vand.u32 %v2505_v23, %v2782_v5  ;;  %v2732_v17 = vld [vmem:[%s4236_s0 + $0x50c] sm:$0xf]  ;;  %v2085_v20 = vor.u32 %v2622_v4, %v2082_v6  ;;  %v1936_v23 = vld [vmem:[%s4236_s0 + $0x78] sm:$0xf]  ;;  %v2090_v4 = vld [vmem:[%s4236_s0 + $0x230] sm:$0xf0] }
  0x81   :  { %1563 = vmatpush.bf16.msra.mxu3 %v1156_v34  ;;  %1744 = vperm.xlu0 %2753, %v1740_v19   ;;  %v1162_v34 = vand.u32 %v2509_v24, %v2782_v5  ;;  %v2081_v19 = vor.u32 %v2640_v3, %v2080_v2  ;;  %v2604_v24 = vld [vmem:[%s4236_s0 + $0x104] sm:$0xf0]  ;;  %v2623_v3 = vld [vmem:[%s4236_s0 + $0x1a4] sm:$0xf]  ;;  %v2624_v8 = vld [vmem:[%s4236_s0 + $0x1ac] sm:$0xf] }
  0x82   :  { %1522 = vmatpush.bf16.msra.mxu0 %v2345_v41  ;;  %v2368_v41 = vld [vmem:[%s4236_s0 + $0x3d8] sm:$0xf]  ;;  %v2096_v6 = vld [vmem:[%s4236_s0 + $0x1a8] sm:$0xf] }
  0x83   :  { %1536 = vmatpush.bf16.msra.mxu1 %v2349_v42  ;;  %v2712_v42 = vld [vmem:[%s4236_s0 + $0x464] sm:$0xf0] }
  0x84   :  { %1550 = vmatpush.bf16.msra.mxu2 %v2353_v45  ;;  %v2361_v45 = vor.u32 %v2711_v36, %v2360_v35  ;;  %v2369_v49 = vor.u32 %v2712_v42, %v2368_v41  ;;  %v1941_v35 = vor.u32 %v2586_v25, %v1938_v26  ;;  %v1171_v36 = vand.u32 %v2521_v27, %v2782_v5  ;;  %v2695_v42 = vld [vmem:[%s4236_s0 + $0x3e4] sm:$0xf] }
  0x85   :  { %1564 = vmatpush.bf16.msra.mxu3 %v2357_v46  ;;  %v2365_v46 = vor.u32 %v2693_v39, %v2362_v40  ;;  %v2713_v39 = vld [vmem:[%s4236_s0 + $0x46c] sm:$0xf0] }
  0x86   :  { %1523 = vmatpush.bf16.msra.mxu0 %v2201_v54  ;;  %v2676_v54 = vld [vmem:[%s4236_s0 + $0x344] sm:$0xf0] }
  0x87   :  { %1537 = vmatpush.bf16.msra.mxu1 %v2205_v55  ;;  %v2658_v55 = vld [vmem:[%s4236_s0 + $0x2bc] sm:$0xf]  ;;  %v2225_v0 = vor.u32 %v2676_v54, %v2224_v53  ;;  %v2659_v53 = vld [vmem:[%s4236_s0 + $0x2c4] sm:$0xf]  ;;  %v2234_v54 = vld [vmem:[%s4236_s0 + $0x350] sm:$0xf0] }
  0x88   :  { %1551 = vmatpush.bf16.msra.mxu2 %v2209_v59  ;;  %v2217_v59 = vor.u32 %v2675_v48, %v2216_v47  ;;  %v2229_v1 = vor.u32 %v2658_v55, %v2226_v56  ;;  %v2381_v48 = vor.u32 %v2695_v42, %v2378_v43  ;;  %v2240_v55 = vld [vmem:[%s4236_s0 + $0x2c8] sm:$0xf]  ;;  %v2678_v56 = vld [vmem:[%s4236_s0 + $0x354] sm:$0xf0]  ;;  %v2237_v61 = vor.u32 %v2659_v53, %v2234_v54 }
  0x89   :  { %1565 = vmatpush.bf16.msra.mxu3 %v2213_v60  ;;  %v2221_v60 = vor.u32 %v2657_v51, %v2218_v52  ;;  %1749 = vperm.xlu0 %2753, %v1741_v58   ;;  %v2242_v58 = vld [vmem:[%s4236_s0 + $0x358] sm:$0xf0] }
  0x8a   :  { %1524 = vmatpush.bf16.msra.mxu0 %v2057_v10  ;;  %v2603_v10 = vld [vmem:[%s4236_s0 + $0xfc] sm:$0xf0] }
  0x8b   :  { %1538 = vmatpush.bf16.msra.mxu1 %v2061_v11  ;;  %v2731_v11 = vld [vmem:[%s4236_s0 + $0x504] sm:$0xf] }
  0x8c   :  { %1552 = vmatpush.bf16.msra.mxu2 %v2065_v15  ;;  %v2077_v15 = vor.u32 %v2621_v62, %v2074_v63  ;;  %v2088_v62 = vld [vmem:[%s4236_s0 + $0x1a0] sm:$0xf]  ;;  %v2641_v63 = vld [vmem:[%s4236_s0 + $0x22c] sm:$0xf0] }
  0x8d   :  { %1566 = vmatpush.bf16.msra.mxu3 %v2069_v16  ;;  %v2750_v16 = vld [vmem:[%s4236_s0 + $0x594] sm:$0x30] }
  0x8e   :  { %1525 = vmatpush.bf16.msra.mxu0 %v1913_v29  ;;  %v2525_v29 = vor.u32 %v2731_v11, %v2522_v12  ;;  %v2093_v11 = vor.u32 %v2623_v3, %v2090_v4  ;;  %v1944_v12 = vld [vmem:[%s4236_s0 + $0x80] sm:$0xf] }
  0x8f   :  { %1539 = vmatpush.bf16.msra.mxu1 %v1917_v30  ;;  %v2529_v30 = vor.u32 %v2750_v16, %v2528_v13  ;;  %v2605_v13 = vld [vmem:[%s4236_s0 + $0x10c] sm:$0xf0] }
  0x90   :  { %1553 = vmatpush.bf16.msra.mxu2 %v1921_v31  ;;  %v2533_v31 = vor.u32 %v2732_v17, %v2530_v18  ;;  %v2587_v17 = vld [vmem:[%s4236_s0 + $0x84] sm:$0xf]  ;;  %v1946_v18 = vld [vmem:[%s4236_s0 + $0x110] sm:$0xf0]  ;;  %v1945_v25 = vor.u32 %v2605_v13, %v1944_v12 }
  0x91   :  { %1567 = vmatpush.bf16.msra.mxu3 %v1925_v32  ;;  %2558 = vmatmul.msk.bf16.vlgmr.msra.gmra.mxu0 %vm1066_vm2, %v2954_v28  ;;  %v1929_v32 = vor.u32 %v2603_v10, %v1928_v9  ;;  %v1177_v40 = vand.u32 %v2529_v30, %v2782_v5  ;;  %v2098_v9 = vld [vmem:[%s4236_s0 + $0x238] sm:$0xf0]  ;;  %v2089_v10 = vor.u32 %v2641_v63, %v2088_v62 }
  0x92   :  { %1577 = vmatpush.bf16.msrb.mxu0 %v1159_v33  ;;  %2559 = vmatmul.msk.bf16.vlgmr.msra.gmra.mxu1 %vm1066_vm2, %v2954_v28  ;;  %v1933_v33 = vor.u32 %v2585_v21, %v1930_v22  ;;  %v1180_v41 = vand.u32 %v2533_v31, %v2782_v5  ;;  %v2606_v21 = vld [vmem:[%s4236_s0 + $0x114] sm:$0xf0]  ;;  %v2588_v22 = vld [vmem:[%s4236_s0 + $0x8c] sm:$0xf]  ;;  %v1949_v26 = vor.u32 %v2587_v17, %v1946_v18 }
  0x93   :  { %1591 = vmatpush.bf16.msrb.mxu1 %v1162_v34  ;;  %2560 = vmatmul.msk.bf16.vlgmr.msra.gmra.mxu2 %vm1066_vm2, %v2954_v28  ;;  %v1937_v34 = vor.u32 %v2604_v24, %v1936_v23  ;;  %v1954_v23 = vld [vmem:[%s4236_s0 + $0x118] sm:$0xf0] }
  0x94   :  { %1605 = vmatpush.bf16.msrb.mxu2 %v1165_v37  ;;  %2561 = vmatmul.msk.bf16.vlgmr.msra.gmra.mxu3 %vm1066_vm2, %v2954_v28  ;;  %v1174_v37 = vand.u32 %v2525_v29, %v2782_v5  ;;  %v2696_v5 = vld [vmem:[%s4236_s0 + $0x3ec] sm:$0xf]  ;;  %v1957_v29 = vor.u32 %v2588_v22, %v1954_v23 }
  0x95   :  { %1619 = vmatpush.bf16.msrb.mxu3 %v1168_v38  ;;  %v2376_v38 = vld [vmem:[%s4236_s0 + $0x3e0] sm:$0xf] }
  0x96   :  { %1578 = vmatpush.bf16.msrb.mxu0 %v2361_v45  ;;  %v2714_v45 = vld [vmem:[%s4236_s0 + $0x474] sm:$0xf0]  ;;  %v2377_v47 = vor.u32 %v2713_v39, %v2376_v38  ;;  %v3932_v2 = vpop.f32.mrf.mxu0 }
  0x97   :  { %1592 = vmatpush.bf16.msrb.mxu1 %v2365_v46  ;;  %v2386_v46 = vld [vmem:[%s4236_s0 + $0x478] sm:$0xf0]  ;;  %v2385_v51 = vor.u32 %v2714_v45, %v2384_v44 }
  0x98   :  { %1606 = vmatpush.bf16.msrb.mxu2 %v2369_v49  ;;  %v2232_v49 = vld [vmem:[%s4236_s0 + $0x2c0] sm:$0xf]  ;;  %v2389_v52 = vor.u32 %v2696_v5, %v2386_v46 }
  0x99   :  { %1620 = vmatpush.bf16.msrb.mxu3 %v2373_v50  ;;  %v2677_v50 = vld [vmem:[%s4236_s0 + $0x34c] sm:$0xf0] }
  0x9a   :  { %1579 = vmatpush.bf16.msrb.mxu0 %v2217_v59  ;;  %v3920_v59 = vpop.f32.mrf.mxu1 }
  0x9b   :  { %1593 = vmatpush.bf16.msrb.mxu1 %v2221_v60  ;;  %v2233_v60 = vor.u32 %v2677_v50, %v2232_v49 }
  0x9c   :  { %1607 = vmatpush.bf16.msrb.mxu2 %v2225_v0  ;;  %v2241_v0 = vor.u32 %v2678_v56, %v2240_v55 }
  0x9d   :  { %1621 = vmatpush.bf16.msrb.mxu3 %v2229_v1  ;;  %v2245_v1 = vor.u32 %v2660_v57, %v2242_v58 }
  0x9e   :  { %1580 = vmatpush.bf16.msrb.mxu0 %v2073_v14  ;;  %v2097_v14 = vor.u32 %v2642_v7, %v2096_v6  ;;  %v3958_v16 = vpop.f32.mrf.mxu2  ;;  %v3982_v30 = vpop.f32.mrf.mxu0 }
  0x9f   :  { %1594 = vmatpush.bf16.msrb.mxu1 %v2077_v15  ;;  %v2101_v15 = vor.u32 %v2624_v8, %v2098_v9 }
  0xa0   :  { %1608 = vmatpush.bf16.msrb.mxu2 %v2081_v19  ;;  %v1952_v19 = vld [vmem:[%s4236_s0 + $0x88] sm:$0xf] }
  0xa1   :  { %1622 = vmatpush.bf16.msrb.mxu3 %v2085_v20  ;;  %v3969_v20 = vpop.f32.mrf.mxu3  ;;  %v1953_v27 = vor.u32 %v2606_v21, %v1952_v19 }
  0xa2   :  { %1581 = vmatpush.bf16.msrb.mxu0 %v1929_v32  ;;  %v3980_v24 = vpop.f32.mrf.mxu1 }
  0xa3   :  { %1595 = vmatpush.bf16.msrb.mxu1 %v1933_v33 }
  0xa4   :  { %1609 = vmatpush.bf16.msrb.mxu2 %v1937_v34 }
  0xa5   :  { %1623 = vmatpush.bf16.msrb.mxu3 %v1941_v35  ;;  %2562 = vmatmul.msk.bf16.vlgmr.msrb.gmra.mxu0 %vm1066_vm2, %v2954_v28 }
  0xa6   :  { %1633 = vmatpush.bf16.msra.mxu0 %v1171_v36  ;;  %2563 = vmatmul.msk.bf16.vlgmr.msrb.gmra.mxu1 %vm1066_vm2, %v2954_v28  ;;  %v3984_v31 = vpop.f32.mrf.mxu2 }
  0xa7   :  { %1647 = vmatpush.bf16.msra.mxu1 %v1174_v37  ;;  %2564 = vmatmul.msk.bf16.vlgmr.msrb.gmra.mxu2 %vm1066_vm2, %v2954_v28 }
  0xa8   :  { %1661 = vmatpush.bf16.msra.mxu2 %v1177_v40  ;;  %2565 = vmatmul.msk.bf16.vlgmr.msrb.gmra.mxu3 %vm1066_vm2, %v2954_v28 }
  0xa9   :  { %1675 = vmatpush.bf16.msra.mxu3 %v1180_v41  ;;  %v3986_v32 = vpop.f32.mrf.mxu3 }
  0xaa   :  { %1634 = vmatpush.bf16.msra.mxu0 %v2377_v47  ;;  %v3998_v34 = vpop.f32.mrf.mxu0 }
  0xab   :  { %1648 = vmatpush.bf16.msra.mxu1 %v2381_v48  ;;  %v3992_v33 = vpop.f32.mrf.mxu1 }
  0xac   :  { %1662 = vmatpush.bf16.msra.mxu2 %v2385_v51 }
  0xad   :  { %1676 = vmatpush.bf16.msra.mxu3 %v2389_v52 }
  0xae   :  { %1635 = vmatpush.bf16.msra.mxu0 %v2233_v60 }
  0xaf   :  { %1649 = vmatpush.bf16.msra.mxu1 %v2237_v61 }
  0xb0   :  { %1663 = vmatpush.bf16.msra.mxu2 %v2241_v0 }
  0xb1   :  { %1677 = vmatpush.bf16.msra.mxu3 %v2245_v1 }
  0xb2   :  { %1636 = vmatpush.bf16.msra.mxu0 %v2089_v10  ;;  %v4000_v35 = vpop.f32.mrf.mxu2  ;;  %v4006_v38 = vpop.f32.mrf.mxu0 }
  0xb3   :  { %1650 = vmatpush.bf16.msra.mxu1 %v2093_v11  ;;  %v4002_v36 = vpop.f32.mrf.mxu3  ;;  %v4004_v37 = vpop.f32.mrf.mxu1 }
  0xb4   :  { %1664 = vmatpush.bf16.msra.mxu2 %v2097_v14 }
  0xb5   :  { %1678 = vmatpush.bf16.msra.mxu3 %v2101_v15 }
  0xb6   :  { %1637 = vmatpush.bf16.msra.mxu0 %v1945_v25 }
  0xb7   :  { %1651 = vmatpush.bf16.msra.mxu1 %v1949_v26 }
  0xb8   :  { %1665 = vmatpush.bf16.msra.mxu2 %v1953_v27 }
  0xb9   :  { %1679 = vmatpush.bf16.msra.mxu3 %v1957_v29  ;;  %2566 = vmatmul.msk.bf16.vlgmr.msra.gmra.mxu0 %vm1066_vm2, %v2954_v28 }
  0xba   :  { %2567 = vmatmul.msk.bf16.vlgmr.msra.gmra.mxu1 %vm1066_vm2, %v2954_v28  ;;  %v4008_v39 = vpop.f32.mrf.mxu2 }
  0xbb   :  { %2568 = vmatmul.msk.bf16.vlgmr.msra.gmra.mxu2 %vm1066_vm2, %v2954_v28  ;;  %v4010_v40 = vpop.f32.mrf.mxu3 }
  0xbc   :  { %2569 = vmatmul.msk.bf16.vlgmr.msra.gmra.mxu3 %vm1066_vm2, %v2954_v28 }
  0xbe   :  { %v4013_v43 = vpop.f32.mrf.mxu0 }
  0xbf   :  { %v1317_v41 = vpop.f32.mrf.mxu1 }
  0xc0   :  { %v1686_v42 = vmax.f32 %v3932_v2, %v1317_v41 }
  0xc6   :  { %v4015_v28 = vpop.f32.mrf.mxu2  ;;  %v4024_v48 = vpop.f32.mrf.mxu0 }
  0xc7   :  { %v4019_v45 = vpop.f32.mrf.mxu3  ;;  %v1319_v46 = vpop.f32.mrf.mxu1  ;;  %4242 = vst [vmem:[#allocation2_spill] sm:$0xff] %v4024_v48 }
  0xc8   :  { %v1695_v47 = vmax.f32 %v3982_v30, %v1319_v46 }
  0xce   :  { %v4026_v49 = vpop.f32.mrf.mxu2 }
  0xcf   :  { %v4030_v51 = vpop.f32.mrf.mxu3 }
  0xd2   :  { %v4034_v53 = vpop.f32.mrf.mxu0 }
  0xd3   :  { %v4036_v54 = vpop.f32.mrf.mxu1 }
  0xda   :  { %v4042_v57 = vpop.f32.mrf.mxu2  ;;  %v4050_v62 = vpop.f32.mrf.mxu0 }
  0xdb   :  { %v4044_v58 = vpop.f32.mrf.mxu3  ;;  %v4052_v63 = vpop.f32.mrf.mxu1 }
  0xe2   :  { %v4058_v2 = vpop.f32.mrf.mxu2 }
  0xe3   :  { %v4060_v3 = vpop.f32.mrf.mxu3 }
  0xe6   :  { %v4066_v7 = vpop.f32.mrf.mxu0 }
  0xe7   :  { %v4068_v8 = vpop.f32.mrf.mxu1 }
  0xee   :  { %v1443_v11 = vpop.f32.mrf.mxu2  ;;  %v4074_v13 = vpop.f32.mrf.mxu0 }
  0xef   :  { %v1457_v12 = vpop.f32.mrf.mxu3  ;;  %v4076_v14 = vpop.f32.mrf.mxu1 }
  0xf0   :  { %4243 = vst [vmem:[#allocation3_spill] sm:$0xff] %v4076_v14 }
  0xf3   :  { %v4094_v15 = vpop.permute.xlu0 %1744 }
  0xf6   :  { %v1445_v18 = vpop.f32.mrf.mxu2 }
  0xf7   :  { %v1459_v19 = vpop.f32.mrf.mxu3 }
  0xfa   :  { %v1471_v21 = vpop.f32.mrf.mxu0 }
  0xfb   :  { %v1485_v22 = vpop.f32.mrf.mxu1  ;;  %v4108_v56 = vpop.permute.xlu0 %1749 }
 0x102   :  { %v1499_v23 = vpop.f32.mrf.mxu2  ;;  %v1473_v26 = vpop.f32.mrf.mxu0 }
 0x103   :  { %v4082_v25 = vpop.f32.mrf.mxu3  ;;  %v4084_v27 = vpop.f32.mrf.mxu1 }
 0x10a   :  { %v4086_v29 = vpop.f32.mrf.mxu2 }
 0x10b   :  { %v4088_v30 = vpop.f32.mrf.mxu3 }
 0x10e   :  { %v4090_v41 = vpop.f32.mrf.mxu0 }
 0x10f   :  { %v4092_v46 = vpop.f32.mrf.mxu1 }
 0x116   :  { %v4096_v17 = vpop.f32.mrf.mxu2  ;;  %v4098_v10 = vpop.f32.mrf.mxu0 }
 0x117   :  { %v1569_v6 = vpop.f32.mrf.mxu3  ;;  %v4100_v9 = vpop.f32.mrf.mxu1 }
 0x118   :  { %v1704_v4 = vmax.f32 %v1443_v11, %v1569_v6 }
 0x11a   :  { %v1722_v61 = vmax.f32 %v1686_v42, %v1704_v4  ;;  %v4245_v4 = vmax.f32 %v3958_v16, %v4019_v45  ;;  %v4246_v45 = vmax.f32 %v3969_v20, %v4034_v53 }
 0x11c   :  { %v1752_v60 = vadd.f32 %v4094_v15, %v1722_v61 }
 0x11e   :  { %v1770_v1 = vmax.f32 %v1752_v60, 0.0  ;;  %v4103_v0 = vpop.f32.mrf.mxu2  ;;  %v4244_v60 = vmax.f32 %v3920_v59, %v4015_v28 }
 0x11f   :  { %v1571_v52 = vpop.f32.mrf.mxu3 }
 0x120   :  { %1788 = vst [vmem:[%s4239_s3] sm:$0xff] %v1770_v1  ;;  %v1713_v50 = vmax.f32 %v1445_v18, %v1571_v52 }
 0x122   :  { %v1731_v55 = vmax.f32 %v1695_v47, %v1713_v50  ;;  %v1583_v6 = vpop.f32.mrf.mxu0 }
 0x123   :  { %v1597_v11 = vpop.f32.mrf.mxu1  ;;  %v1705_v5 = vmax.f32 %v1457_v12, %v1583_v6 }
 0x124   :  { %v1706_v44 = vmax.f32 %v1471_v21, %v1597_v11  ;;  %v1761_v42 = vadd.f32 %v4108_v56, %v1731_v55 }
 0x125   :  { %v1723_v61 = vmax.f32 %v4244_v60, %v1705_v5 }
 0x126   :  { %v1724_v14 = vmax.f32 %v4245_v4, %v1706_v44  ;;  %v1779_v48 = vmax.f32 %v1761_v42, 0.0 }
 0x127   :  { %v1753_v52 = vadd.f32 %v4094_v15, %v1723_v61 }
 0x128   :  { %v1754_v1 = vadd.f32 %v4094_v15, %v1724_v14  ;;  %1797 = vst [vmem:[%s4239_s3 + $0x48] sm:$0x3] %v1779_v48  ;;  %v4247_v14 = vmax.f32 %v3998_v34, %v4036_v54 }
 0x129   :  { %v1771_v47 = vmax.f32 %v1753_v52, 0.0  ;;  %v4250_v52 = vmax.f32 %v3986_v32, %v4050_v62  ;;  %v4252_v32 = vmax.f32 %v3992_v33, %v4042_v57 }
 0x12a   :  { %v1772_v50 = vmax.f32 %v1754_v1, 0.0  ;;  %v1611_v55 = vpop.f32.mrf.mxu2  ;;  %v1585_v28 = vpop.f32.mrf.mxu0 }
 0x12b   :  { %v1625_v12 = vpop.f32.mrf.mxu3  ;;  %v1707_v18 = vmax.f32 %v1485_v22, %v1611_v55  ;;  %v1599_v5 = vpop.f32.mrf.mxu1  ;;  %1789 = vst [vmem:[%s4239_s3 + $0x8] sm:$0xff] %v1771_v47  ;;  %v1714_v16 = vmax.f32 %v1459_v19, %v1585_v28  ;;  %v4248_v22 = vmax.f32 %v3980_v24, %v4026_v49  ;;  %v4249_v19 = vmax.f32 %v3984_v31, %v4030_v51 }
 0x12c   :  { %v1708_v59 = vmax.f32 %v1499_v23, %v1625_v12  ;;  %v1715_v44 = vmax.f32 %v1473_v26, %v1599_v5  ;;  %1790 = vst [vmem:[%s4239_s3 + $0x10] sm:$0xff] %v1772_v50  ;;  %v4251_v47 = vmax.f32 %v4006_v38, %v4052_v63  ;;  %v4253_v38 = vmax.f32 %v4000_v35, %v4044_v58 }
 0x12d   :  { %v1725_v48 = vmax.f32 %v4246_v45, %v1707_v18  ;;  %v1732_v23 = vmax.f32 %v4248_v22, %v1714_v16  ;;  %v4256_v22 = vmax.f32 %v4004_v37, %v4058_v2  ;;  %v4258_v2 = vmax.f32 %v4010_v40, %v4074_v13 }
 0x12e   :  { %v1726_v21 = vmax.f32 %v4247_v14, %v1708_v59  ;;  %v1733_v26 = vmax.f32 %v4249_v19, %v1715_v44  ;;  %v4254_v14 = vmax.f32 %v4002_v36, %v4066_v7 }
 0x12f   :  { %v1755_v6 = vadd.f32 %v4094_v15, %v1725_v48  ;;  %v1762_v42 = vadd.f32 %v4108_v56, %v1732_v23 }
 0x130   :  { %v1756_v11 = vadd.f32 %v4094_v15, %v1726_v21  ;;  %v1763_v20 = vadd.f32 %v4108_v56, %v1733_v26 }
 0x131   :  { %v1773_v53 = vmax.f32 %v1755_v6, 0.0  ;;  %v1780_v34 = vmax.f32 %v1762_v42, 0.0 }
 0x132   :  { %v1774_v60 = vmax.f32 %v1756_v11, 0.0  ;;  %v1781_v54 = vmax.f32 %v1763_v20, 0.0  ;;  %v1613_v61 = vpop.f32.mrf.mxu2 }
 0x133   :  { %v1627_v4 = vpop.f32.mrf.mxu3  ;;  %1791 = vst [vmem:[%s4239_s3 + $0x18] sm:$0xff] %v1773_v53  ;;  %v1716_v24 = vmax.f32 %v4084_v27, %v1613_v61  ;;  %v4260_v53 = vld [vmem:[#allocation3_spill] sm:$0xff] }
 0x134   :  { %v1717_v31 = vmax.f32 %v4086_v29, %v1627_v4  ;;  %1792 = vst [vmem:[%s4239_s3 + $0x20] sm:$0xff] %v1774_v60 }
 0x135   :  { %1798 = vst [vmem:[%s4239_s3 + $0x50] sm:$0x3] %v1780_v34  ;;  %v1734_v1 = vmax.f32 %v4250_v52, %v1716_v24 }
 0x136   :  { %v1639_v49 = vpop.f32.mrf.mxu0  ;;  %v1735_v27 = vmax.f32 %v4251_v47, %v1717_v31  ;;  %1799 = vst [vmem:[%s4239_s3 + $0x58] sm:$0x3] %v1781_v54 }
 0x137   :  { %v1653_v51 = vpop.f32.mrf.mxu1  ;;  %v1709_v29 = vmax.f32 %v4082_v25, %v1639_v49  ;;  %v1764_v55 = vadd.f32 %v4108_v56, %v1734_v1 }
 0x138   :  { %v1710_v50 = vmax.f32 %v4090_v41, %v1653_v51  ;;  %v1765_v12 = vadd.f32 %v4108_v56, %v1735_v27 }
 0x139   :  { %v1727_v62 = vmax.f32 %v4252_v32, %v1709_v29  ;;  %v1782_v18 = vmax.f32 %v1764_v55, 0.0 }
 0x13a   :  { %v1728_v63 = vmax.f32 %v4253_v38, %v1710_v50  ;;  %v1783_v25 = vmax.f32 %v1765_v12, 0.0 }
 0x13b   :  { %v1757_v41 = vadd.f32 %v4094_v15, %v1727_v62  ;;  %1800 = vst [vmem:[%s4239_s3 + $0x60] sm:$0x3] %v1782_v18 }
 0x13c   :  { %v1758_v59 = vadd.f32 %v4094_v15, %v1728_v63  ;;  %1801 = vst [vmem:[%s4239_s3 + $0x68] sm:$0x3] %v1783_v25 }
 0x13d   :  { %v1775_v28 = vmax.f32 %v1757_v41, 0.0 }
 0x13e   :  { %v1776_v5 = vmax.f32 %v1758_v59, 0.0  ;;  %v1667_v16 = vpop.f32.mrf.mxu2  ;;  %v1641_v57 = vpop.f32.mrf.mxu0 }
 0x13f   :  { %v1681_v44 = vpop.f32.mrf.mxu3  ;;  %v1711_v33 = vmax.f32 %v4092_v46, %v1667_v16  ;;  %v1655_v58 = vpop.f32.mrf.mxu1  ;;  %1793 = vst [vmem:[%s4239_s3 + $0x28] sm:$0xff] %v1775_v28  ;;  %v1718_v45 = vmax.f32 %v4088_v30, %v1641_v57  ;;  %v4257_v30 = vmax.f32 %v4008_v39, %v4060_v3 }
 0x140   :  { %v1712_v35 = vmax.f32 %v4096_v17, %v1681_v44  ;;  %v1719_v48 = vmax.f32 %v4098_v10, %v1655_v58  ;;  %1794 = vst [vmem:[%s4239_s3 + $0x30] sm:$0xff] %v1776_v5  ;;  %v4255_v17 = vmax.f32 %v4013_v43, %v4068_v8 }
 0x141   :  { %v1729_v46 = vmax.f32 %v4254_v14, %v1711_v33  ;;  %v1736_v23 = vmax.f32 %v4256_v22, %v1718_v45 }
 0x142   :  { %v1730_v21 = vmax.f32 %v4255_v17, %v1712_v35  ;;  %v1737_v10 = vmax.f32 %v4257_v30, %v1719_v48 }
 0x143   :  { %v1759_v19 = vadd.f32 %v4094_v15, %v1729_v46  ;;  %v1766_v6 = vadd.f32 %v4108_v56, %v1736_v23 }
 0x144   :  { %v1760_v26 = vadd.f32 %v4094_v15, %v1730_v21  ;;  %v1767_v36 = vadd.f32 %v4108_v56, %v1737_v10  ;;  %v4259_v15 = vld [vmem:[#allocation2_spill] sm:$0xff] }
 0x145   :  { %v1777_v7 = vmax.f32 %v1759_v19, 0.0  ;;  %v1784_v43 = vmax.f32 %v1766_v6, 0.0  ;;  %v4261_v60 = vmax.f32 %v4259_v15, %v4260_v53 }
 0x146   :  { %v1778_v11 = vmax.f32 %v1760_v26, 0.0  ;;  %v1785_v8 = vmax.f32 %v1767_v36, 0.0  ;;  %v1669_v42 = vpop.f32.mrf.mxu2 }
 0x147   :  { %v1683_v20 = vpop.f32.mrf.mxu3  ;;  %1795 = vst [vmem:[%s4239_s3 + $0x38] sm:$0xff] %v1777_v7  ;;  %v1720_v37 = vmax.f32 %v4100_v9, %v1669_v42 }
 0x148   :  { %v1721_v39 = vmax.f32 %v4103_v0, %v1683_v20  ;;  %1796 = vst [vmem:[%s4239_s3 + $0x40] sm:$0xff] %v1778_v11 }
 0x149   :  { %1802 = vst [vmem:[%s4239_s3 + $0x70] sm:$0x3] %v1784_v43  ;;  %v1738_v3 = vmax.f32 %v4258_v2, %v1720_v37 }
 0x14a   :  { %v1739_v34 = vmax.f32 %v4261_v60, %v1721_v39  ;;  %1803 = vst [vmem:[%s4239_s3 + $0x78] sm:$0x3] %v1785_v8 }
 0x14b   :  { %v1768_v0 = vadd.f32 %v4108_v56, %v1738_v3 }
 0x14c   :  { %v1769_v9 = vadd.f32 %v4108_v56, %v1739_v34 }
 0x14d   :  { %v1786_v54 = vmax.f32 %v1768_v0, 0.0 }
 0x14e   :  { %v1787_v61 = vmax.f32 %v1769_v9, 0.0 }
 0x14f   :  { %1804 = vst [vmem:[%s4239_s3 + $0x80] sm:$0x3] %v1786_v54 }
 0x150   :  { %1805 = vst [vmem:[%s4239_s3 + $0x88] sm:$0x3] %v1787_v61 }

// kernel: chanakya_crnn_forward.4
= control target key start
LH: loop header
LB: loop body
LE: loop exit
PB: predicated region body
PF: predicated region fallthrough
CT: control target
= control target key end

     0   :  { %vm419_vm0 = vcmask 1044480   ;;  %vm412_vm1 = vcmask 998400   ;;  %s1431_s0 = inlined_call_operand.vmem [shape: bf16[250,512], index: 0, kind: input, shape index: {}]   ;;  %s1432_s1 = inlined_call_operand.vmem [shape: bf16[20,250], index: 1, kind: input, shape index: {}]   ;;  %s1433_s2 = inlined_call_operand.vmem [shape: f32[20,1], index: 2, kind: input, shape index: {}]   ;;  %s1434_s3 = inlined_call_operand.vmem [shape: f32[20,128], index: 3, kind: output, shape index: {}]  }
   0x1   :  { %v738_v0 = vld [vmem:[%s1431_s0 + $0xe0] sm:$0xf]  ;;  %v920_v1 = vld [vmem:[%s1431_s0 + $0xec] sm:$0xf0]  ;;  %v918_v2 = vld [vmem:[%s1431_s0 + $0xe4] sm:$0xf] }
   0x2   :  { %v739_v3 = vor.u32 %v920_v1, %v738_v0  ;;  %v740_v4 = vld [vmem:[%s1431_s0 + $0xf0] sm:$0xf0]  ;;  %v866_v5 = vld [vmem:[%s1431_s0 + $0x1e0] sm:$0xf]  ;;  %v952_v6 = vld [vmem:[%s1431_s0 + $0x1ec] sm:$0x10] }
   0x3   :  { %v743_v7 = vor.u32 %v918_v2, %v740_v4  ;;  %v867_v8 = vor.u32 %v952_v6, %v866_v5  ;;  %v950_v9 = vld [vmem:[%s1431_s0 + $0x1e4] sm:$0xf]  ;;  %v868_v10 = vld [vmem:[%s1431_s0 + $0x1f0] sm:$0x10]  ;;  %v722_v11 = vld [vmem:[%s1431_s0 + $0xc0] sm:$0xf] }
   0x4   :  { %432 = vmatpush.bf16.msra.mxu0 %v739_v3  ;;  %v871_v12 = vor.u32 %v950_v9, %v868_v10  ;;  %v916_v13 = vld [vmem:[%s1431_s0 + $0xcc] sm:$0xf0]  ;;  %v914_v14 = vld [vmem:[%s1431_s0 + $0xc4] sm:$0xf]  ;;  %v724_v15 = vld [vmem:[%s1431_s0 + $0xd0] sm:$0xf0] }
   0x5   :  { %468 = vmatpush.bf16.msra.mxu2 %v743_v7  ;;  %v421_v16 = vsel %vm419_vm0, %v867_v8, 0  ;;  %v723_v17 = vor.u32 %v916_v13, %v722_v11  ;;  %v727_v18 = vor.u32 %v914_v14, %v724_v15  ;;  %v850_v19 = vld [vmem:[%s1431_s0 + $0x1c0] sm:$0xf]  ;;  %v948_v20 = vld [vmem:[%s1431_s0 + $0x1cc] sm:$0xf0] }
   0x6   :  { %450 = vmatpush.bf16.msra.mxu1 %v421_v16  ;;  %v424_v21 = vsel %vm419_vm0, %v871_v12, 0  ;;  %v851_v22 = vor.u32 %v948_v20, %v850_v19  ;;  %v946_v23 = vld [vmem:[%s1431_s0 + $0x1c4] sm:$0xf]  ;;  %v852_v24 = vld [vmem:[%s1431_s0 + $0x1d0] sm:$0xf0] }
   0x7   :  { %486 = vmatpush.bf16.msra.mxu3 %v424_v21  ;;  %v855_v25 = vor.u32 %v946_v23, %v852_v24  ;;  %v706_v26 = vld [vmem:[%s1431_s0 + $0xa0] sm:$0xf]  ;;  %v912_v27 = vld [vmem:[%s1431_s0 + $0xac] sm:$0xf0]  ;;  %v910_v28 = vld [vmem:[%s1431_s0 + $0xa4] sm:$0xf] }
   0x8   :  { %433 = vmatpush.bf16.msra.mxu0 %v723_v17  ;;  %v707_v29 = vor.u32 %v912_v27, %v706_v26  ;;  %v708_v30 = vld [vmem:[%s1431_s0 + $0xb0] sm:$0xf0]  ;;  %v834_v31 = vld [vmem:[%s1431_s0 + $0x1a0] sm:$0xf]  ;;  %v944_v32 = vld [vmem:[%s1431_s0 + $0x1ac] sm:$0xf0] }
   0x9   :  { %469 = vmatpush.bf16.msra.mxu2 %v727_v18  ;;  %v711_v33 = vor.u32 %v910_v28, %v708_v30  ;;  %v942_v34 = vld [vmem:[%s1431_s0 + $0x1a4] sm:$0xf]  ;;  %v836_v35 = vld [vmem:[%s1431_s0 + $0x1b0] sm:$0xf0]  ;;  %v690_v36 = vld [vmem:[%s1431_s0 + $0x80] sm:$0xf]  ;;  %v835_v37 = vor.u32 %v944_v32, %v834_v31 }
   0xa   :  { %451 = vmatpush.bf16.msra.mxu1 %v851_v22  ;;  %v908_v38 = vld [vmem:[%s1431_s0 + $0x8c] sm:$0xf0]  ;;  %v906_v39 = vld [vmem:[%s1431_s0 + $0x84] sm:$0xf]  ;;  %v692_v40 = vld [vmem:[%s1431_s0 + $0x90] sm:$0xf0]  ;;  %v839_v41 = vor.u32 %v942_v34, %v836_v35 }
   0xb   :  { %487 = vmatpush.bf16.msra.mxu3 %v855_v25  ;;  %v818_v42 = vld [vmem:[%s1431_s0 + $0x180] sm:$0xf]  ;;  %v940_v43 = vld [vmem:[%s1431_s0 + $0x18c] sm:$0xf0]  ;;  %v691_v44 = vor.u32 %v908_v38, %v690_v36  ;;  %v938_v45 = vld [vmem:[%s1431_s0 + $0x184] sm:$0xf]  ;;  %v695_v47 = vor.u32 %v906_v39, %v692_v40 }
   0xc   :  { %434 = vmatpush.bf16.msra.mxu0 %v707_v29  ;;  %v820_v46 = vld [vmem:[%s1431_s0 + $0x190] sm:$0xf0]  ;;  %v674_v48 = vld [vmem:[%s1431_s0 + $0x60] sm:$0xf]  ;;  %v904_v49 = vld [vmem:[%s1431_s0 + $0x6c] sm:$0xf0]  ;;  %v819_v50 = vor.u32 %v940_v43, %v818_v42 }
   0xd   :  { %470 = vmatpush.bf16.msra.mxu2 %v711_v33  ;;  %v902_v51 = vld [vmem:[%s1431_s0 + $0x64] sm:$0xf]  ;;  %v676_v52 = vld [vmem:[%s1431_s0 + $0x70] sm:$0xf0]  ;;  %v823_v53 = vor.u32 %v938_v45, %v820_v46  ;;  %v802_v54 = vld [vmem:[%s1431_s0 + $0x160] sm:$0xf]  ;;  %v675_v56 = vor.u32 %v904_v49, %v674_v48 }
   0xe   :  { %452 = vmatpush.bf16.msra.mxu1 %v835_v37  ;;  %v936_v55 = vld [vmem:[%s1431_s0 + $0x16c] sm:$0xf0]  ;;  %v934_v57 = vld [vmem:[%s1431_s0 + $0x164] sm:$0xf]  ;;  %v804_v58 = vld [vmem:[%s1431_s0 + $0x170] sm:$0xf0]  ;;  %v679_v59 = vor.u32 %v902_v51, %v676_v52 }
   0xf   :  { %488 = vmatpush.bf16.msra.mxu3 %v839_v41  ;;  %v658_v60 = vld [vmem:[%s1431_s0 + $0x40] sm:$0xf]  ;;  %v900_v61 = vld [vmem:[%s1431_s0 + $0x4c] sm:$0xf0]  ;;  %v803_v62 = vor.u32 %v936_v55, %v802_v54  ;;  %v898_v63 = vld [vmem:[%s1431_s0 + $0x44] sm:$0xf]  ;;  %v807_v1 = vor.u32 %v934_v57, %v804_v58 }
  0x10   :  { %435 = vmatpush.bf16.msra.mxu0 %v691_v44  ;;  %v660_v0 = vld [vmem:[%s1431_s0 + $0x50] sm:$0xf0]  ;;  %v786_v2 = vld [vmem:[%s1431_s0 + $0x140] sm:$0xf]  ;;  %v932_v3 = vld [vmem:[%s1431_s0 + $0x14c] sm:$0xf0]  ;;  %v659_v4 = vor.u32 %v900_v61, %v658_v60 }
  0x11   :  { %471 = vmatpush.bf16.msra.mxu2 %v695_v47  ;;  %v930_v5 = vld [vmem:[%s1431_s0 + $0x144] sm:$0xf]  ;;  %v788_v6 = vld [vmem:[%s1431_s0 + $0x150] sm:$0xf0]  ;;  %v663_v7 = vor.u32 %v898_v63, %v660_v0  ;;  %v642_v8 = vld [vmem:[%s1431_s0 + $0x20] sm:$0xf]  ;;  %v787_v11 = vor.u32 %v932_v3, %v786_v2 }
  0x12   :  { %453 = vmatpush.bf16.msra.mxu1 %v819_v50  ;;  %v896_v9 = vld [vmem:[%s1431_s0 + $0x2c] sm:$0xf0]  ;;  %v894_v10 = vld [vmem:[%s1431_s0 + $0x24] sm:$0xf]  ;;  %v644_v12 = vld [vmem:[%s1431_s0 + $0x30] sm:$0xf0]  ;;  %v791_v15 = vor.u32 %v930_v5, %v788_v6 }
  0x13   :  { %489 = vmatpush.bf16.msra.mxu3 %v823_v53  ;;  %v770_v13 = vld [vmem:[%s1431_s0 + $0x120] sm:$0xf]  ;;  %v928_v14 = vld [vmem:[%s1431_s0 + $0x12c] sm:$0xf0]  ;;  %v926_v16 = vld [vmem:[%s1431_s0 + $0x124] sm:$0xf]  ;;  %v643_v19 = vor.u32 %v896_v9, %v642_v8  ;;  %v647_v23 = vor.u32 %v894_v10, %v644_v12 }
  0x14   :  { %436 = vmatpush.bf16.msra.mxu0 %v675_v56  ;;  %v772_v17 = vld [vmem:[%s1431_s0 + $0x130] sm:$0xf0]  ;;  %v626_v18 = vld [vmem:[%s1431_s0] sm:$0xf]  ;;  %v892_v20 = vld [vmem:[%s1431_s0 + $0xc] sm:$0xf0]  ;;  %v771_v27 = vor.u32 %v928_v14, %v770_v13 }
  0x15   :  { %472 = vmatpush.bf16.msra.mxu2 %v679_v59  ;;  %v890_v21 = vld [vmem:[%s1431_s0 + $0x4] sm:$0xf]  ;;  %v628_v22 = vld [vmem:[%s1431_s0 + $0x10] sm:$0xf0]  ;;  %v754_v24 = vld [vmem:[%s1431_s0 + $0x100] sm:$0xf]  ;;  %v775_v33 = vor.u32 %v926_v16, %v772_v17  ;;  %v627_v37 = vor.u32 %v892_v20, %v626_v18 }
  0x16   :  { %454 = vmatpush.bf16.msra.mxu1 %v803_v62  ;;  %v924_v25 = vld [vmem:[%s1431_s0 + $0x10c] sm:$0xf0]  ;;  %v746_v26 = vld [vmem:[%s1431_s0 + $0xe8] sm:$0xf]  ;;  %v922_v28 = vld [vmem:[%s1431_s0 + $0x104] sm:$0xf]  ;;  %v631_v41 = vor.u32 %v890_v21, %v628_v22 }
  0x17   :  { %490 = vmatpush.bf16.msra.mxu3 %v807_v1  ;;  %v756_v29 = vld [vmem:[%s1431_s0 + $0x110] sm:$0xf0]  ;;  %v921_v30 = vld [vmem:[%s1431_s0 + $0xf4] sm:$0xf0]  ;;  %v951_v31 = vld [vmem:[%s1431_s0 + $0x1ec] sm:$0xf]  ;;  %v755_v45 = vor.u32 %v924_v25, %v754_v24 }
  0x18   :  { %437 = vmatpush.bf16.msra.mxu0 %v659_v4  ;;  %v876_v32 = vld [vmem:[%s1431_s0 + $0x1f8] sm:$0x10]  ;;  %v618_v34 = vld [vmem:[%s1432_s1] sm:$0xf]  ;;  %v919_v35 = vld [vmem:[%s1431_s0 + $0xec] sm:$0xf]  ;;  %v747_v43 = vor.u32 %v921_v30, %v746_v26  ;;  %v759_v50 = vor.u32 %v922_v28, %v756_v29 }
  0x19   :  { %473 = vmatpush.bf16.msra.mxu2 %v663_v7  ;;  %v748_v36 = vld [vmem:[%s1431_s0 + $0xf8] sm:$0xf0]  ;;  %v889_v38 = vld [vmem:[%s1432_s1 + $0x4] sm:$0xf0]  ;;  %v953_v40 = vld [vmem:[%s1431_s0 + $0x1f4] sm:$0x10]  ;;  %v879_v44 = vor.u32 %v951_v31, %v876_v32 }
  0x1a   :  { %455 = vmatpush.bf16.msra.mxu1 %v787_v11  ;;  %v874_v39 = vld [vmem:[%s1431_s0 + $0x1e8] sm:$0xf]  ;;  %v888_v42 = vld [vmem:[%s1432_s1 + $0x4] sm:$0xf]  ;;  %v620_v46 = vld [vmem:[%s1432_s1 + $0x8] sm:$0xf0]  ;;  %v751_v47 = vor.u32 %v919_v35, %v748_v36  ;;  %v1214_v51 = vor.u32 %v889_v38, %v618_v34 }
  0x1b   :  { %491 = vmatpush.bf16.msra.mxu3 %v791_v15  ;;  %v730_v48 = vld [vmem:[%s1431_s0 + $0xc8] sm:$0xf]  ;;  %v917_v49 = vld [vmem:[%s1431_s0 + $0xd4] sm:$0xf0]  ;;  %v875_v52 = vor.u32 %v953_v40, %v874_v39  ;;  %v915_v53 = vld [vmem:[%s1431_s0 + $0xcc] sm:$0xf]  ;;  %v1222_v55 = vor.u32 %v888_v42, %v620_v46 }
  0x1c   :  { %438 = vmatpush.bf16.msra.mxu0 %v643_v19  ;;  %v732_v54 = vld [vmem:[%s1431_s0 + $0xd8] sm:$0xf0]  ;;  %v430_v56 = vsel %vm419_vm0, %v879_v44, 0  ;;  %v731_v57 = vor.u32 %v917_v49, %v730_v48  ;;  %v947_v58 = vld [vmem:[%s1431_s0 + $0x1cc] sm:$0xf] }
  0x1d   :  { %474 = vmatpush.bf16.msra.mxu2 %v647_v23  ;;  %v860_v59 = vld [vmem:[%s1431_s0 + $0x1d8] sm:$0xf0]  ;;  %v714_v60 = vld [vmem:[%s1431_s0 + $0xa8] sm:$0xf]  ;;  %v913_v61 = vld [vmem:[%s1431_s0 + $0xb4] sm:$0xf0]  ;;  %v735_v63 = vor.u32 %v915_v53, %v732_v54 }
  0x1e   :  { %456 = vmatpush.bf16.msra.mxu1 %v771_v27  ;;  %v427_v62 = vsel %vm419_vm0, %v875_v52, 0  ;;  %v858_v0 = vld [vmem:[%s1431_s0 + $0x1c8] sm:$0xf]  ;;  %v949_v1 = vld [vmem:[%s1431_s0 + $0x1d4] sm:$0xf0]  ;;  %v863_v2 = vor.u32 %v947_v58, %v860_v59  ;;  %v715_v5 = vor.u32 %v913_v61, %v714_v60 }
  0x1f   :  { %492 = vmatpush.bf16.msra.mxu3 %v775_v33  ;;  %v911_v3 = vld [vmem:[%s1431_s0 + $0xac] sm:$0xf]  ;;  %v716_v4 = vld [vmem:[%s1431_s0 + $0xb8] sm:$0xf0]  ;;  %v859_v8 = vor.u32 %v949_v1, %v858_v0  ;;  %v698_v9 = vld [vmem:[%s1431_s0 + $0x88] sm:$0xf] }
  0x20   :  { %439 = vmatpush.bf16.msra.mxu0 %v627_v37  ;;  %v943_v6 = vld [vmem:[%s1431_s0 + $0x1ac] sm:$0xf]  ;;  %v844_v7 = vld [vmem:[%s1431_s0 + $0x1b8] sm:$0xf0]  ;;  %v909_v10 = vld [vmem:[%s1431_s0 + $0x94] sm:$0xf0]  ;;  %v719_v11 = vor.u32 %v911_v3, %v716_v4 }
  0x21   :  { %475 = vmatpush.bf16.msra.mxu2 %v631_v41  ;;  %v842_v12 = vld [vmem:[%s1431_s0 + $0x1a8] sm:$0xf]  ;;  %v945_v13 = vld [vmem:[%s1431_s0 + $0x1b4] sm:$0xf0]  ;;  %v847_v14 = vor.u32 %v943_v6, %v844_v7  ;;  %v907_v15 = vld [vmem:[%s1431_s0 + $0x8c] sm:$0xf]  ;;  %v699_v18 = vor.u32 %v909_v10, %v698_v9 }
  0x22   :  { %457 = vmatpush.bf16.msra.mxu1 %v755_v45  ;;  %v700_v16 = vld [vmem:[%s1431_s0 + $0x98] sm:$0xf0]  ;;  %v16_v17 = vld [vmem:[%s1432_s1 + $0x10] sm:$0x33]  ;;  %v939_v19 = vld [vmem:[%s1431_s0 + $0x18c] sm:$0xf]  ;;  %v843_v21 = vor.u32 %v945_v13, %v842_v12 }
  0x23   :  { %493 = vmatpush.bf16.msra.mxu3 %v759_v50  ;;  %440 = vmatmul.bf16.vlgmr.msra.gmra.mxu0 %v1214_v51  ;;  %v828_v20 = vld [vmem:[%s1431_s0 + $0x198] sm:$0xf0]  ;;  %v682_v22 = vld [vmem:[%s1431_s0 + $0x68] sm:$0xf]  ;;  %v905_v23 = vld [vmem:[%s1431_s0 + $0x74] sm:$0xf0]  ;;  %v703_v24 = vor.u32 %v907_v15, %v700_v16  ;;  %v88_v27 = vunpack.c.l.b16 %v16_v17  ;;  %v89_v31 = vunpack.c.h.b16 %v16_v17 }
  0x24   :  { %504 = vmatpush.bf16.msrb.mxu0 %v747_v43  ;;  %476 = vmatmul.bf16.vlgmr.msra.gmra.mxu2 %v1214_v51  ;;  %v826_v25 = vld [vmem:[%s1431_s0 + $0x188] sm:$0xf]  ;;  %v941_v26 = vld [vmem:[%s1431_s0 + $0x194] sm:$0xf0]  ;;  %v831_v28 = vor.u32 %v939_v19, %v828_v20  ;;  %v903_v29 = vld [vmem:[%s1431_s0 + $0x6c] sm:$0xf]  ;;  %v683_v32 = vor.u32 %v905_v23, %v682_v22 }
  0x25   :  { %540 = vmatpush.bf16.msrb.mxu2 %v751_v47  ;;  %880 = vmatmul.msk.bf16.vlgmr.msra.gmra.mxu1 %vm412_vm1, %v1222_v55  ;;  %v684_v30 = vld [vmem:[%s1431_s0 + $0x78] sm:$0xf0]  ;;  %v935_v33 = vld [vmem:[%s1431_s0 + $0x16c] sm:$0xf]  ;;  %v827_v35 = vor.u32 %v941_v26, %v826_v25  ;;  %v666_v36 = vld [vmem:[%s1431_s0 + $0x48] sm:$0xf]  ;;  %v1319_v38 = vpack.c.b16 %v88_v27, %v88_v27  ;;  %v1333_v45 = vpack.c.b16 %v89_v31, %v89_v31 }
  0x26   :  { %882 = vmatmul.msk.bf16.vlgmr.msra.gmra.mxu3 %vm412_vm1, %v1222_v55  ;;  %522 = vmatpush.bf16.msrb.mxu1 %v427_v62  ;;  %v812_v34 = vld [vmem:[%s1431_s0 + $0x178] sm:$0xf0]  ;;  %v901_v37 = vld [vmem:[%s1431_s0 + $0x54] sm:$0xf0]  ;;  %v687_v39 = vor.u32 %v903_v29, %v684_v30  ;;  %v810_v40 = vld [vmem:[%s1431_s0 + $0x168] sm:$0xf] }
  0x27   :  { %558 = vmatpush.bf16.msrb.mxu3 %v430_v56  ;;  %v937_v41 = vld [vmem:[%s1431_s0 + $0x174] sm:$0xf0]  ;;  %v815_v42 = vor.u32 %v935_v33, %v812_v34  ;;  %v899_v43 = vld [vmem:[%s1431_s0 + $0x4c] sm:$0xf]  ;;  %v668_v44 = vld [vmem:[%s1431_s0 + $0x58] sm:$0xf0]  ;;  %v667_v46 = vor.u32 %v901_v37, %v666_v36 }
  0x28   :  { %505 = vmatpush.bf16.msrb.mxu0 %v731_v57  ;;  %v931_v47 = vld [vmem:[%s1431_s0 + $0x14c] sm:$0xf]  ;;  %v796_v48 = vld [vmem:[%s1431_s0 + $0x158] sm:$0xf0]  ;;  %v811_v49 = vor.u32 %v937_v41, %v810_v40  ;;  %v650_v50 = vld [vmem:[%s1431_s0 + $0x28] sm:$0xf]  ;;  %v671_v53 = vor.u32 %v899_v43, %v668_v44 }
  0x29   :  { %541 = vmatpush.bf16.msrb.mxu2 %v735_v63  ;;  %v897_v52 = vld [vmem:[%s1431_s0 + $0x34] sm:$0xf0]  ;;  %v794_v54 = vld [vmem:[%s1431_s0 + $0x148] sm:$0xf]  ;;  %v799_v57 = vor.u32 %v931_v47, %v796_v48  ;;  %v895_v58 = vld [vmem:[%s1431_s0 + $0x2c] sm:$0xf] }
  0x2a   :  { %523 = vmatpush.bf16.msrb.mxu1 %v859_v8  ;;  %v933_v56 = vld [vmem:[%s1431_s0 + $0x154] sm:$0xf0]  ;;  %v652_v59 = vld [vmem:[%s1431_s0 + $0x38] sm:$0xf0]  ;;  %v651_v60 = vor.u32 %v897_v52, %v650_v50  ;;  %v927_v61 = vld [vmem:[%s1431_s0 + $0x12c] sm:$0xf] }
  0x2b   :  { %559 = vmatpush.bf16.msrb.mxu3 %v863_v2  ;;  %v780_v62 = vld [vmem:[%s1431_s0 + $0x138] sm:$0xf0]  ;;  %v795_v63 = vor.u32 %v933_v56, %v794_v54  ;;  %v634_v0 = vld [vmem:[%s1431_s0 + $0x8] sm:$0xf]  ;;  %v893_v1 = vld [vmem:[%s1431_s0 + $0x14] sm:$0xf0]  ;;  %v655_v3 = vor.u32 %v895_v58, %v652_v59 }
  0x2c   :  { %506 = vmatpush.bf16.msrb.mxu0 %v715_v5  ;;  %v585_v2 = vld [vmem:[%s1433_s2] sm:$0xff]  ;;  %v778_v4 = vld [vmem:[%s1431_s0 + $0x128] sm:$0xf]  ;;  %v929_v5 = vld [vmem:[%s1431_s0 + $0x134] sm:$0xf0]  ;;  %v957_v6 = vmov 0   ;;  %v783_v8 = vor.u32 %v927_v61, %v780_v62 }
  0x2d   :  { %542 = vmatpush.bf16.msrb.mxu2 %v719_v11  ;;  %955 = vset.pattern.permute.xlu0 %v957_v6  ;;  %v587_v7 = vld [vmem:[%s1433_s2 + $0x10] sm:$0xf]  ;;  %v891_v9 = vld [vmem:[%s1431_s0 + $0xc] sm:$0xf]  ;;  %v636_v10 = vld [vmem:[%s1431_s0 + $0x18] sm:$0xf0]  ;;  %v635_v11 = vor.u32 %v893_v1, %v634_v0 }
  0x2e   :  { %524 = vmatpush.bf16.msrb.mxu1 %v843_v21  ;;  %590 = vperm.xlu0 %955, %v585_v2   ;;  %v923_v12 = vld [vmem:[%s1431_s0 + $0x10c] sm:$0xf]  ;;  %v764_v13 = vld [vmem:[%s1431_s0 + $0x118] sm:$0xf0]  ;;  %v639_v15 = vor.u32 %v891_v9, %v636_v10  ;;  %v762_v16 = vld [vmem:[%s1431_s0 + $0x108] sm:$0xf] }
  0x2f   :  { %560 = vmatpush.bf16.msrb.mxu3 %v847_v14  ;;  %956 = vset.pattern.permute.xlu1 %v957_v6  ;;  %v779_v14 = vor.u32 %v929_v5, %v778_v4  ;;  %v925_v17 = vld [vmem:[%s1431_s0 + $0x114] sm:$0xf0]  ;;  %v586_v19 = vld [vmem:[%s1433_s2 + $0x8] sm:$0xff] }
  0x30   :  { %507 = vmatpush.bf16.msrb.mxu0 %v699_v18  ;;  %600 = vperm.xlu1 %956, %v587_v7   ;;  %v767_v18 = vor.u32 %v923_v12, %v764_v13  ;;  %v763_v20 = vor.u32 %v925_v17, %v762_v16 }
  0x31   :  { %543 = vmatpush.bf16.msrb.mxu2 %v703_v24 }
  0x32   :  { %525 = vmatpush.bf16.msrb.mxu1 %v827_v35 }
  0x33   :  { %561 = vmatpush.bf16.msrb.mxu3 %v831_v28  ;;  %445 = vmatmul.bf16.gmra.mxu0 %v1319_v38 }
  0x34   :  { %508 = vmatpush.bf16.msrb.mxu0 %v683_v32  ;;  %481 = vmatmul.bf16.gmra.mxu2 %v1319_v38 }
  0x35   :  { %544 = vmatpush.bf16.msrb.mxu2 %v687_v39  ;;  %881 = vmatmul.msk.bf16.gmra.mxu1 %vm412_vm1, %v1333_v45 }
  0x36   :  { %883 = vmatmul.msk.bf16.gmra.mxu3 %vm412_vm1, %v1333_v45  ;;  %526 = vmatpush.bf16.msrb.mxu1 %v811_v49 }
  0x37   :  { %562 = vmatpush.bf16.msrb.mxu3 %v815_v42  ;;  %595 = vperm.xlu0 %955, %v586_v19  }
  0x38   :  { %509 = vmatpush.bf16.msrb.mxu0 %v667_v46 }
  0x39   :  { %545 = vmatpush.bf16.msrb.mxu2 %v671_v53 }
  0x3a   :  { %527 = vmatpush.bf16.msrb.mxu1 %v795_v63 }
  0x3b   :  { %563 = vmatpush.bf16.msrb.mxu3 %v799_v57 }
  0x3c   :  { %510 = vmatpush.bf16.msrb.mxu0 %v651_v60 }
  0x3d   :  { %546 = vmatpush.bf16.msrb.mxu2 %v655_v3 }
  0x3e   :  { %528 = vmatpush.bf16.msrb.mxu1 %v779_v14 }
  0x3f   :  { %564 = vmatpush.bf16.msrb.mxu3 %v783_v8 }
  0x40   :  { %511 = vmatpush.bf16.msrb.mxu0 %v635_v11 }
  0x41   :  { %547 = vmatpush.bf16.msrb.mxu2 %v639_v15 }
  0x42   :  { %529 = vmatpush.bf16.msrb.mxu1 %v763_v20 }
  0x43   :  { %565 = vmatpush.bf16.msrb.mxu3 %v767_v18  ;;  %512 = vmatmul.bf16.vlgmr.msrb.gmra.mxu0 %v1214_v51 }
  0x44   :  { %548 = vmatmul.bf16.vlgmr.msrb.gmra.mxu2 %v1214_v51 }
  0x45   :  { %884 = vmatmul.msk.bf16.vlgmr.msrb.gmra.mxu1 %vm412_vm1, %v1222_v55 }
  0x46   :  { %886 = vmatmul.msk.bf16.vlgmr.msrb.gmra.mxu3 %vm412_vm1, %v1222_v55 }
  0x53   :  { %517 = vmatmul.bf16.gmra.mxu0 %v1319_v38 }
  0x54   :  { %553 = vmatmul.bf16.gmra.mxu2 %v1319_v38 }
  0x55   :  { %885 = vmatmul.msk.bf16.gmra.mxu1 %vm412_vm1, %v1333_v45 }
  0x56   :  { %887 = vmatmul.msk.bf16.gmra.mxu3 %vm412_vm1, %v1333_v45 }
  0xa0   :  { %v441_v21 = vpop.f32.mrf.mxu0  ;;  %v591_v45 = vpop.permute.xlu0 %590 }
  0xa2   :  { %v459_v22 = vpop.f32.mrf.mxu1  ;;  %v601_v13 = vpop.permute.xlu1 %600 }
  0xa3   :  { %v460_v38 = vadd.f32 %v459_v22, %v441_v21 }
  0xa7   :  { %v477_v23 = vpop.f32.mrf.mxu2 }
  0xa8   :  { %v443_v51 = vpop.f32.mrf.mxu0 }
  0xa9   :  { %v495_v24 = vpop.f32.mrf.mxu3  ;;  %v596_v63 = vpop.permute.xlu0 %595 }
  0xaa   :  { %v461_v25 = vpop.f32.mrf.mxu1  ;;  %v496_v39 = vadd.f32 %v495_v24, %v477_v23 }
  0xab   :  { %v462_v56 = vadd.f32 %v461_v25, %v443_v51 }
  0xac   :  { %v576_v46 = vmax.f32 %v460_v38, %v496_v39 }
  0xaf   :  { %v479_v26 = vpop.f32.mrf.mxu2 }
  0xb0   :  { %v446_v27 = vpop.f32.mrf.mxu0 }
  0xb1   :  { %v497_v28 = vpop.f32.mrf.mxu3 }
  0xb2   :  { %v464_v55 = vpop.f32.mrf.mxu1  ;;  %v498_v50 = vadd.f32 %v497_v28, %v479_v26 }
  0xb3   :  { %v465_v2 = vadd.f32 %v464_v55, %v446_v27 }
  0xb4   :  { %v577_v61 = vmax.f32 %v462_v56, %v498_v50 }
  0xb7   :  { %v482_v29 = vpop.f32.mrf.mxu2 }
  0xb8   :  { %v448_v30 = vpop.f32.mrf.mxu0 }
  0xb9   :  { %v500_v31 = vpop.f32.mrf.mxu3 }
  0xba   :  { %v466_v32 = vpop.f32.mrf.mxu1  ;;  %v501_v3 = vadd.f32 %v500_v31, %v482_v29 }
  0xbc   :  { %v578_v11 = vmax.f32 %v465_v2, %v501_v3 }
  0xbf   :  { %v484_v33 = vpop.f32.mrf.mxu2 }
  0xc0   :  { %v513_v34 = vpop.f32.mrf.mxu0 }
  0xc1   :  { %v502_v35 = vpop.f32.mrf.mxu3 }
  0xc2   :  { %v531_v36 = vpop.f32.mrf.mxu1 }
  0xc3   :  { %v532_v40 = vadd.f32 %v531_v36, %v513_v34 }
  0xc7   :  { %v549_v37 = vpop.f32.mrf.mxu2 }
  0xc8   :  { %v515_v41 = vpop.f32.mrf.mxu0 }
  0xc9   :  { %v567_v42 = vpop.f32.mrf.mxu3 }
  0xca   :  { %v568_v43 = vadd.f32 %v567_v42, %v549_v37  ;;  %v533_v44 = vpop.f32.mrf.mxu1 }
  0xcb   :  { %v534_v57 = vadd.f32 %v533_v44, %v515_v41 }
  0xcc   :  { %v579_v47 = vmax.f32 %v532_v40, %v568_v43 }
  0xce   :  { %v582_v48 = vmax.f32 %v576_v46, %v579_v47 }
  0xcf   :  { %v551_v49 = vpop.f32.mrf.mxu2 }
  0xd0   :  { %v603_v52 = vadd.f32 %v591_v45, %v582_v48  ;;  %v518_v53 = vpop.f32.mrf.mxu0 }
  0xd1   :  { %v569_v54 = vpop.f32.mrf.mxu3 }
  0xd2   :  { %v606_v58 = vmax.f32 %v603_v52, 0.0  ;;  %v570_v59 = vadd.f32 %v569_v54, %v551_v49  ;;  %v536_v60 = vpop.f32.mrf.mxu1 }
  0xd3   :  { %v537_v4 = vadd.f32 %v536_v60, %v518_v53 }
  0xd4   :  { %609 = vst [vmem:[%s1434_s3] sm:$0xff] %v606_v58  ;;  %v580_v62 = vmax.f32 %v534_v57, %v570_v59 }
  0xd6   :  { %v583_v0 = vmax.f32 %v577_v61, %v580_v62 }
  0xd7   :  { %v554_v1 = vpop.f32.mrf.mxu2 }
  0xd8   :  { %v604_v5 = vadd.f32 %v596_v63, %v583_v0  ;;  %v520_v6 = vpop.f32.mrf.mxu0 }
  0xd9   :  { %v572_v7 = vpop.f32.mrf.mxu3 }
  0xda   :  { %v607_v8 = vmax.f32 %v604_v5, 0.0  ;;  %v573_v9 = vadd.f32 %v572_v7, %v554_v1  ;;  %v538_v10 = vpop.f32.mrf.mxu1 }
  0xdc   :  { %610 = vst [vmem:[%s1434_s3 + $0x8] sm:$0xff] %v607_v8  ;;  %v581_v12 = vmax.f32 %v537_v4, %v573_v9 }
  0xde   :  { %v584_v14 = vmax.f32 %v578_v11, %v581_v12 }
  0xdf   :  { %v556_v15 = vpop.f32.mrf.mxu2 }
  0xe0   :  { %v605_v16 = vadd.f32 %v601_v13, %v584_v14 }
  0xe1   :  { %v574_v17 = vpop.f32.mrf.mxu3 }
  0xe2   :  { %v608_v18 = vmax.f32 %v605_v16, 0.0 }
  0xe4   :  { %611 = vst [vmem:[%s1434_s3 + $0x10] sm:$0xf] %v608_v18 }

// kernel: chanakya_crnn_forward.5
= control target key start
LH: loop header
LB: loop body
LE: loop exit
PB: predicated region body
PF: predicated region fallthrough
CT: control target
= control target key end

     0   :  { %14 = vsyncpa [#allocation3], 0  ;;  %vm533_vm0 = vcmask 523264   ;;  %s2585_s0 = inlined_call_operand.vmem [shape: bf16[8,320], index: 0, kind: input, shape index: {}]   ;;  %s2586_s1 = inlined_call_operand.vmem [shape: bf16[320,512], index: 1, kind: input, shape index: {}]   ;;  %s2587_s2 = inlined_call_operand.vmem [shape: bf16[64,256], index: 2, kind: input, shape index: {}]   ;;  %s2588_s3 = inlined_call_operand.vmem [shape: bf16[64,256], index: 3, kind: input, shape index: {}]   ;;  %s2589_s4 = inlined_call_operand.vmem [shape: f32[1,512], index: 4, kind: input, shape index: {}]   ;;  %s2590_s5 = inlined_call_operand.vmem [shape: f32[64,10], index: 5, kind: input, shape index: {}]   ;;  %s2591_s6 = inlined_call_operand.vmem [shape: f32[1,10], index: 6, kind: input, shape index: {}]   ;;  %s2592_s7 = inlined_call_operand.hbm [shape: f32[2,10], index: 7, kind: output, shape index: {0}]   ;;  %s2593_s8 = inlined_call_operand.hbm [shape: f32[2,128], index: 8, kind: output, shape index: {1}]  }
   0x1   :  { %v1345_v0 = vld [vmem:[%s2586_s1 + $0xe0] sm:$0xf]  ;;  %v1654_v1 = vld [vmem:[%s2586_s1 + $0xec] sm:$0xf0]  ;;  %v1652_v5 = vld [vmem:[%s2586_s1 + $0xe4] sm:$0xf] }
   0x2   :  { %v1473_v2 = vld [vmem:[%s2586_s1 + $0x1e0] sm:$0xf]  ;;  %v1346_v3 = vor.u32 %v1654_v1, %v1345_v0  ;;  %v1686_v4 = vld [vmem:[%s2586_s1 + $0x1ec] sm:$0xf0]  ;;  %v1347_v6 = vld [vmem:[%s2586_s1 + $0xf0] sm:$0xf0] }
   0x3   :  { %v1474_v7 = vor.u32 %v1686_v4, %v1473_v2  ;;  %v1350_v8 = vor.u32 %v1652_v5, %v1347_v6  ;;  %v1537_v9 = vld [vmem:[%s2586_s1 + $0x260] sm:$0xf]  ;;  %v1702_v10 = vld [vmem:[%s2586_s1 + $0x26c] sm:$0xf0]  ;;  %v1648_v18 = vld [vmem:[%s2586_s1 + $0xc4] sm:$0xf] }
   0x4   :  { %v1329_v11 = vld [vmem:[%s2586_s1 + $0xc0] sm:$0xf]  ;;  %537 = vmatpush.bf16.msra.mxu0 %v1346_v3  ;;  %v1538_v12 = vor.u32 %v1702_v10, %v1537_v9  ;;  %v1650_v13 = vld [vmem:[%s2586_s1 + $0xcc] sm:$0xf0]  ;;  %v1331_v19 = vld [vmem:[%s2586_s1 + $0xd0] sm:$0xf0] }
   0x5   :  { %v1457_v14 = vld [vmem:[%s2586_s1 + $0x1c0] sm:$0xf]  ;;  %v1682_v15 = vld [vmem:[%s2586_s1 + $0x1cc] sm:$0xf0]  ;;  %550 = vmatpush.bf16.msra.mxu1 %v1474_v7  ;;  %576 = vmatpush.bf16.msra.mxu3 %v1350_v8  ;;  %v1330_v16 = vor.u32 %v1650_v13, %v1329_v11  ;;  %v1334_v21 = vor.u32 %v1648_v18, %v1331_v19  ;;  %v1644_v28 = vld [vmem:[%s2586_s1 + $0xa4] sm:$0xf] }
   0x6   :  { %v1458_v17 = vor.u32 %v1682_v15, %v1457_v14  ;;  %v1521_v20 = vld [vmem:[%s2586_s1 + $0x240] sm:$0xf]  ;;  %567 = vmatpush.bf16.msra.mxu2 %v1538_v12  ;;  %v1698_v22 = vld [vmem:[%s2586_s1 + $0x24c] sm:$0xf0]  ;;  %v1315_v30 = vld [vmem:[%s2586_s1 + $0xb0] sm:$0xf0] }
   0x7   :  { %v1313_v23 = vld [vmem:[%s2586_s1 + $0xa0] sm:$0xf]  ;;  %v1646_v24 = vld [vmem:[%s2586_s1 + $0xac] sm:$0xf0]  ;;  %v1522_v25 = vor.u32 %v1698_v22, %v1521_v20  ;;  %v1318_v34 = vor.u32 %v1644_v28, %v1315_v30  ;;  %v1640_v40 = vld [vmem:[%s2586_s1 + $0x84] sm:$0xf] }
   0x8   :  { %v1441_v26 = vld [vmem:[%s2586_s1 + $0x1a0] sm:$0xf]  ;;  %v1678_v27 = vld [vmem:[%s2586_s1 + $0x1ac] sm:$0xf0]  ;;  %538 = vmatpush.bf16.msra.mxu0 %v1330_v16  ;;  %v1314_v29 = vor.u32 %v1646_v24, %v1313_v23  ;;  %v1299_v41 = vld [vmem:[%s2586_s1 + $0x90] sm:$0xf0] }
   0x9   :  { %v1505_v31 = vld [vmem:[%s2586_s1 + $0x220] sm:$0xf]  ;;  %v1694_v32 = vld [vmem:[%s2586_s1 + $0x22c] sm:$0xf0]  ;;  %551 = vmatpush.bf16.msra.mxu1 %v1458_v17  ;;  %577 = vmatpush.bf16.msra.mxu3 %v1334_v21  ;;  %v1442_v33 = vor.u32 %v1678_v27, %v1441_v26  ;;  %v1684_v45 = vld [vmem:[%s2586_s1 + $0x1e4] sm:$0xf]  ;;  %v1302_v48 = vor.u32 %v1640_v40, %v1299_v41 }
   0xa   :  { %v1297_v35 = vld [vmem:[%s2586_s1 + $0x80] sm:$0xf]  ;;  %v1642_v36 = vld [vmem:[%s2586_s1 + $0x8c] sm:$0xf0]  ;;  %568 = vmatpush.bf16.msra.mxu2 %v1522_v25  ;;  %v1506_v38 = vor.u32 %v1694_v32, %v1505_v31  ;;  %v1475_v46 = vld [vmem:[%s2586_s1 + $0x1f0] sm:$0xf0] }
   0xb   :  { %v1425_v37 = vld [vmem:[%s2586_s1 + $0x180] sm:$0xf]  ;;  %v1674_v39 = vld [vmem:[%s2586_s1 + $0x18c] sm:$0xf0]  ;;  %v1298_v44 = vor.u32 %v1642_v36, %v1297_v35  ;;  %v1636_v54 = vld [vmem:[%s2586_s1 + $0x64] sm:$0xf]  ;;  %v1478_v56 = vor.u32 %v1684_v45, %v1475_v46 }
   0xc   :  { %v1489_v42 = vld [vmem:[%s2586_s1 + $0x200] sm:$0xf]  ;;  %v1690_v43 = vld [vmem:[%s2586_s1 + $0x20c] sm:$0xf0]  ;;  %539 = vmatpush.bf16.msra.mxu0 %v1314_v29  ;;  %v1426_v47 = vor.u32 %v1674_v39, %v1425_v37  ;;  %v1283_v55 = vld [vmem:[%s2586_s1 + $0x70] sm:$0xf0] }
   0xd   :  { %552 = vmatpush.bf16.msra.mxu1 %v1442_v33  ;;  %578 = vmatpush.bf16.msra.mxu3 %v1318_v34  ;;  %v1281_v49 = vld [vmem:[%s2586_s1 + $0x60] sm:$0xf]  ;;  %v1638_v50 = vld [vmem:[%s2586_s1 + $0x6c] sm:$0xf0]  ;;  %v1490_v52 = vor.u32 %v1690_v43, %v1489_v42  ;;  %v1680_v58 = vld [vmem:[%s2586_s1 + $0x1c4] sm:$0xf]  ;;  %v1286_v61 = vor.u32 %v1636_v54, %v1283_v55 }
   0xe   :  { %v1409_v51 = vld [vmem:[%s2586_s1 + $0x160] sm:$0xf]  ;;  %569 = vmatpush.bf16.msra.mxu2 %v1506_v38  ;;  %v1670_v53 = vld [vmem:[%s2586_s1 + $0x16c] sm:$0xf0]  ;;  %v1282_v57 = vor.u32 %v1638_v50, %v1281_v49  ;;  %v1459_v59 = vld [vmem:[%s2586_s1 + $0x1d0] sm:$0xf0] }
   0xf   :  { %v1410_v60 = vor.u32 %v1670_v53, %v1409_v51  ;;  %v1265_v62 = vld [vmem:[%s2586_s1 + $0x40] sm:$0xf]  ;;  %v1634_v63 = vld [vmem:[%s2586_s1 + $0x4c] sm:$0xf0]  ;;  %v1632_v2 = vld [vmem:[%s2586_s1 + $0x44] sm:$0xf]  ;;  %v1462_v4 = vor.u32 %v1680_v58, %v1459_v59 }
  0x10   :  { %540 = vmatpush.bf16.msra.mxu0 %v1298_v44  ;;  %v1393_v0 = vld [vmem:[%s2586_s1 + $0x140] sm:$0xf]  ;;  %v1666_v1 = vld [vmem:[%s2586_s1 + $0x14c] sm:$0xf0]  ;;  %v1267_v3 = vld [vmem:[%s2586_s1 + $0x50] sm:$0xf0]  ;;  %v1266_v5 = vor.u32 %v1634_v63, %v1265_v62 }
  0x11   :  { %553 = vmatpush.bf16.msra.mxu1 %v1426_v47  ;;  %579 = vmatpush.bf16.msra.mxu3 %v1302_v48  ;;  %v1676_v6 = vld [vmem:[%s2586_s1 + $0x1a4] sm:$0xf]  ;;  %v1443_v7 = vld [vmem:[%s2586_s1 + $0x1b0] sm:$0xf0]  ;;  %v1249_v8 = vld [vmem:[%s2586_s1 + $0x20] sm:$0xf]  ;;  %v1394_v9 = vor.u32 %v1666_v1, %v1393_v0  ;;  %v1270_v10 = vor.u32 %v1632_v2, %v1267_v3 }
  0x12   :  { %570 = vmatpush.bf16.msra.mxu2 %v1490_v52  ;;  %v1630_v11 = vld [vmem:[%s2586_s1 + $0x2c] sm:$0xf0]  ;;  %v1377_v12 = vld [vmem:[%s2586_s1 + $0x120] sm:$0xf]  ;;  %v1628_v14 = vld [vmem:[%s2586_s1 + $0x24] sm:$0xf]  ;;  %v1446_v17 = vor.u32 %v1676_v6, %v1443_v7 }
  0x13   :  { %v1662_v13 = vld [vmem:[%s2586_s1 + $0x12c] sm:$0xf0]  ;;  %v1251_v15 = vld [vmem:[%s2586_s1 + $0x30] sm:$0xf0]  ;;  %v1672_v16 = vld [vmem:[%s2586_s1 + $0x184] sm:$0xf]  ;;  %v1250_v21 = vor.u32 %v1630_v11, %v1249_v8 }
  0x14   :  { %541 = vmatpush.bf16.msra.mxu0 %v1282_v57  ;;  %v1427_v18 = vld [vmem:[%s2586_s1 + $0x190] sm:$0xf0]  ;;  %v1233_v19 = vld [vmem:[%s2586_s1] sm:$0xf]  ;;  %v1626_v20 = vld [vmem:[%s2586_s1 + $0xc] sm:$0xf0]  ;;  %v1378_v25 = vor.u32 %v1662_v13, %v1377_v12  ;;  %v1254_v26 = vor.u32 %v1628_v14, %v1251_v15 }
  0x15   :  { %554 = vmatpush.bf16.msra.mxu1 %v1410_v60  ;;  %580 = vmatpush.bf16.msra.mxu3 %v1286_v61  ;;  %v1361_v22 = vld [vmem:[%s2586_s1 + $0x100] sm:$0xf]  ;;  %v1658_v23 = vld [vmem:[%s2586_s1 + $0x10c] sm:$0xf0]  ;;  %v32_v24 = vld [vmem:[%s2585_s0 + $0x8] sm:$0xf]  ;;  %v1430_v34 = vor.u32 %v1672_v16, %v1427_v18  ;;  %v1234_v38 = vor.u32 %v1626_v20, %v1233_v19 }
  0x16   :  { %589 = vmatpush.bf16.msrb.mxu2 %v1478_v56  ;;  %v1624_v27 = vld [vmem:[%s2586_s1 + $0x4] sm:$0xf]  ;;  %v1235_v28 = vld [vmem:[%s2586_s1 + $0x10] sm:$0xf0]  ;;  %v127_v29 = vunpack.c.l.b16 %v32_v24  ;;  %v1353_v33 = vld [vmem:[%s2586_s1 + $0xe8] sm:$0xf]  ;;  %v1362_v43 = vor.u32 %v1658_v23, %v1361_v22 }
  0x17   :  { %v31_v30 = vld [vmem:[%s2585_s0] sm:$0xff]  ;;  %v1539_v32 = vld [vmem:[%s2586_s1 + $0x270] sm:$0xf0]  ;;  %v1655_v35 = vld [vmem:[%s2586_s1 + $0xf4] sm:$0xf0]  ;;  %v1238_v44 = vor.u32 %v1624_v27, %v1235_v28 }
  0x18   :  { %542 = vmatpush.bf16.msra.mxu0 %v1266_v5  ;;  %v1700_v31 = vld [vmem:[%s2586_s1 + $0x264] sm:$0xf]  ;;  %v1481_v36 = vld [vmem:[%s2586_s1 + $0x1e8] sm:$0xf]  ;;  %v2091_v37 = vpack.c.b16 %v127_v29, %v127_v29  ;;  %v1687_v39 = vld [vmem:[%s2586_s1 + $0x1f4] sm:$0xf0]  ;;  %v125_v42 = vunpack.c.l.b16 %v31_v30  ;;  %v126_v45 = vunpack.c.h.b16 %v31_v30  ;;  %v1354_v47 = vor.u32 %v1655_v35, %v1353_v33 }
  0x19   :  { %555 = vmatpush.bf16.msra.mxu1 %v1394_v9  ;;  %581 = vmatpush.bf16.msra.mxu3 %v1270_v10  ;;  %v1668_v40 = vld [vmem:[%s2586_s1 + $0x164] sm:$0xf]  ;;  %v1411_v41 = vld [vmem:[%s2586_s1 + $0x170] sm:$0xf0]  ;;  %v1542_v46 = vor.u32 %v1700_v31, %v1539_v32  ;;  %v1482_v50 = vor.u32 %v1687_v39, %v1481_v36  ;;  %v1337_v52 = vld [vmem:[%s2586_s1 + $0xc8] sm:$0xf] }
  0x1a   :  { %590 = vmatpush.bf16.msrb.mxu2 %v1462_v4  ;;  %v1696_v48 = vld [vmem:[%s2586_s1 + $0x244] sm:$0xf]  ;;  %v1523_v49 = vld [vmem:[%s2586_s1 + $0x250] sm:$0xf0]  ;;  %v1414_v51 = vor.u32 %v1668_v40, %v1411_v41  ;;  %v1651_v53 = vld [vmem:[%s2586_s1 + $0xd4] sm:$0xf0]  ;;  %v2128_v58 = vpack.c.b16 %v125_v42, %v125_v42  ;;  %v2130_v59 = vpack.c.b16 %v126_v45, %v126_v45 }
  0x1b   :  { %1551 = vmatmul.msk.bf16.vlgmr.msra.gmra.mxu2 %vm533_vm0, %v2091_v37  ;;  %v1465_v54 = vld [vmem:[%s2586_s1 + $0x1c8] sm:$0xf]  ;;  %v1683_v55 = vld [vmem:[%s2586_s1 + $0x1d4] sm:$0xf0]  ;;  %v1664_v56 = vld [vmem:[%s2586_s1 + $0x144] sm:$0xf]  ;;  %v1526_v60 = vor.u32 %v1696_v48, %v1523_v49  ;;  %v1338_v61 = vor.u32 %v1651_v53, %v1337_v52 }
  0x1c   :  { %543 = vmatpush.bf16.msra.mxu0 %v1250_v21  ;;  %v1395_v57 = vld [vmem:[%s2586_s1 + $0x150] sm:$0xf0]  ;;  %v1692_v62 = vld [vmem:[%s2586_s1 + $0x224] sm:$0xf]  ;;  %v1466_v0 = vor.u32 %v1683_v55, %v1465_v54  ;;  %v1321_v2 = vld [vmem:[%s2586_s1 + $0xa8] sm:$0xf] }
  0x1d   :  { %556 = vmatpush.bf16.msra.mxu1 %v1378_v25  ;;  %582 = vmatpush.bf16.msra.mxu3 %v1254_v26  ;;  %v1507_v63 = vld [vmem:[%s2586_s1 + $0x230] sm:$0xf0]  ;;  %v1398_v1 = vor.u32 %v1664_v56, %v1395_v57  ;;  %v1647_v3 = vld [vmem:[%s2586_s1 + $0xb4] sm:$0xf0]  ;;  %v1449_v4 = vld [vmem:[%s2586_s1 + $0x1a8] sm:$0xf] }
  0x1e   :  { %591 = vmatpush.bf16.msrb.mxu2 %v1446_v17  ;;  %v1679_v5 = vld [vmem:[%s2586_s1 + $0x1b4] sm:$0xf0]  ;;  %v1660_v6 = vld [vmem:[%s2586_s1 + $0x124] sm:$0xf]  ;;  %v1379_v7 = vld [vmem:[%s2586_s1 + $0x130] sm:$0xf0]  ;;  %v1510_v8 = vor.u32 %v1692_v62, %v1507_v63  ;;  %v1322_v9 = vor.u32 %v1647_v3, %v1321_v2 }
  0x1f   :  { %v1688_v10 = vld [vmem:[%s2586_s1 + $0x204] sm:$0xf]  ;;  %v1491_v11 = vld [vmem:[%s2586_s1 + $0x210] sm:$0xf0]  ;;  %v1450_v12 = vor.u32 %v1679_v5, %v1449_v4  ;;  %v1382_v13 = vor.u32 %v1660_v6, %v1379_v7  ;;  %v1305_v14 = vld [vmem:[%s2586_s1 + $0x88] sm:$0xf] }
  0x20   :  { %544 = vmatpush.bf16.msra.mxu0 %v1234_v38  ;;  %v1643_v15 = vld [vmem:[%s2586_s1 + $0x94] sm:$0xf0]  ;;  %v1433_v16 = vld [vmem:[%s2586_s1 + $0x188] sm:$0xf]  ;;  %v1656_v20 = vld [vmem:[%s2586_s1 + $0x104] sm:$0xf]  ;;  %v1494_v22 = vor.u32 %v1688_v10, %v1491_v11 }
  0x21   :  { %557 = vmatpush.bf16.msra.mxu1 %v1362_v43  ;;  %583 = vmatpush.bf16.msra.mxu3 %v1238_v44  ;;  %v1675_v17 = vld [vmem:[%s2586_s1 + $0x194] sm:$0xf0]  ;;  %v1545_v18 = vld [vmem:[%s2586_s1 + $0x268] sm:$0xf]  ;;  %v1363_v21 = vld [vmem:[%s2586_s1 + $0x110] sm:$0xf0]  ;;  %v1306_v23 = vor.u32 %v1643_v15, %v1305_v14 }
  0x22   :  { %592 = vmatpush.bf16.msrb.mxu2 %v1430_v34  ;;  %v1703_v19 = vld [vmem:[%s2586_s1 + $0x274] sm:$0xf0]  ;;  %v1653_v24 = vld [vmem:[%s2586_s1 + $0xec] sm:$0xf]  ;;  %v1355_v25 = vld [vmem:[%s2586_s1 + $0xf8] sm:$0xf0]  ;;  %v1434_v26 = vor.u32 %v1675_v17, %v1433_v16  ;;  %v1366_v30 = vor.u32 %v1656_v20, %v1363_v21 }
  0x23   :  { %545 = vmatmul.bf16.vlgmr.msra.gmra.mxu0 %v2128_v58  ;;  %v1546_v27 = vor.u32 %v1703_v19, %v1545_v18  ;;  %v1289_v28 = vld [vmem:[%s2586_s1 + $0x68] sm:$0xf]  ;;  %v1639_v29 = vld [vmem:[%s2586_s1 + $0x74] sm:$0xf0]  ;;  %v1358_v35 = vor.u32 %v1653_v24, %v1355_v25  ;;  %v1649_v38 = vld [vmem:[%s2586_s1 + $0xcc] sm:$0xf] }
  0x24   :  { %606 = vmatpush.bf16.msrb.mxu0 %v1542_v46  ;;  %584 = vmatmul.bf16.vlgmr.msra.gmra.mxu3 %v2128_v58  ;;  %v1417_v31 = vld [vmem:[%s2586_s1 + $0x168] sm:$0xf]  ;;  %v1671_v32 = vld [vmem:[%s2586_s1 + $0x174] sm:$0xf0]  ;;  %v1290_v36 = vor.u32 %v1639_v29, %v1289_v28  ;;  %v1339_v39 = vld [vmem:[%s2586_s1 + $0xd8] sm:$0xf0] }
  0x25   :  { %615 = vmatpush.bf16.msrb.mxu1 %v1354_v47  ;;  %628 = vmatpush.bf16.msrb.mxu3 %v1482_v50  ;;  %v1529_v33 = vld [vmem:[%s2586_s1 + $0x248] sm:$0xf]  ;;  %v1699_v34 = vld [vmem:[%s2586_s1 + $0x254] sm:$0xf0]  ;;  %v1418_v40 = vor.u32 %v1671_v32, %v1417_v31  ;;  %v1342_v48 = vor.u32 %v1649_v38, %v1339_v39  ;;  %v1645_v50 = vld [vmem:[%s2586_s1 + $0xac] sm:$0xf] }
  0x26   :  { %593 = vmatpush.bf16.msrb.mxu2 %v1414_v51  ;;  %558 = vmatmul.bf16.vlgmr.msra.gmra.mxu1 %v2130_v59  ;;  %v1273_v41 = vld [vmem:[%s2586_s1 + $0x48] sm:$0xf]  ;;  %v1635_v42 = vld [vmem:[%s2586_s1 + $0x54] sm:$0xf0]  ;;  %v1530_v43 = vor.u32 %v1699_v34, %v1529_v33  ;;  %v1323_v51 = vld [vmem:[%s2586_s1 + $0xb8] sm:$0xf0] }
  0x27   :  { %v1401_v44 = vld [vmem:[%s2586_s1 + $0x148] sm:$0xf]  ;;  %v1667_v45 = vld [vmem:[%s2586_s1 + $0x154] sm:$0xf0]  ;;  %v1274_v49 = vor.u32 %v1635_v42, %v1273_v41  ;;  %v1685_v62 = vld [vmem:[%s2586_s1 + $0x1ec] sm:$0xf]  ;;  %v1326_v63 = vor.u32 %v1645_v50, %v1323_v51 }
  0x28   :  { %607 = vmatpush.bf16.msrb.mxu0 %v1526_v60  ;;  %v1513_v46 = vld [vmem:[%s2586_s1 + $0x228] sm:$0xf]  ;;  %v1695_v47 = vld [vmem:[%s2586_s1 + $0x234] sm:$0xf0]  ;;  %v1402_v52 = vor.u32 %v1667_v45, %v1401_v44  ;;  %v1641_v2 = vld [vmem:[%s2586_s1 + $0x8c] sm:$0xf] }
  0x29   :  { %616 = vmatpush.bf16.msrb.mxu1 %v1338_v61  ;;  %629 = vmatpush.bf16.msrb.mxu3 %v1466_v0  ;;  %v1257_v53 = vld [vmem:[%s2586_s1 + $0x28] sm:$0xf]  ;;  %v1631_v54 = vld [vmem:[%s2586_s1 + $0x34] sm:$0xf0]  ;;  %v1514_v55 = vor.u32 %v1695_v47, %v1513_v46  ;;  %v1307_v3 = vld [vmem:[%s2586_s1 + $0x98] sm:$0xf0] }
  0x2a   :  { %594 = vmatpush.bf16.msrb.mxu2 %v1398_v1  ;;  %v1385_v56 = vld [vmem:[%s2586_s1 + $0x128] sm:$0xf]  ;;  %v1663_v57 = vld [vmem:[%s2586_s1 + $0x134] sm:$0xf0]  ;;  %v1258_v0 = vor.u32 %v1631_v54, %v1257_v53  ;;  %v1483_v1 = vld [vmem:[%s2586_s1 + $0x1f8] sm:$0xf0] }
  0x2b   :  { %v1497_v60 = vld [vmem:[%s2586_s1 + $0x208] sm:$0xf]  ;;  %v1691_v61 = vld [vmem:[%s2586_s1 + $0x214] sm:$0xf0]  ;;  %v1386_v4 = vor.u32 %v1663_v57, %v1385_v56  ;;  %v1701_v10 = vld [vmem:[%s2586_s1 + $0x26c] sm:$0xf] }
  0x2c   :  { %608 = vmatpush.bf16.msrb.mxu0 %v1510_v8  ;;  %v1241_v5 = vld [vmem:[%s2586_s1 + $0x8] sm:$0xf]  ;;  %v1627_v6 = vld [vmem:[%s2586_s1 + $0x14] sm:$0xf0]  ;;  %v1498_v8 = vor.u32 %v1691_v61, %v1497_v60  ;;  %v1547_v11 = vld [vmem:[%s2586_s1 + $0x278] sm:$0xf0] }
  0x2d   :  { %617 = vmatpush.bf16.msrb.mxu1 %v1322_v9  ;;  %630 = vmatpush.bf16.msrb.mxu3 %v1450_v12  ;;  %v1369_v7 = vld [vmem:[%s2586_s1 + $0x108] sm:$0xf]  ;;  %v1659_v9 = vld [vmem:[%s2586_s1 + $0x114] sm:$0xf0]  ;;  %v1486_v12 = vor.u32 %v1685_v62, %v1483_v1  ;;  %v1581_v14 = vld [vmem:[%s2587_s2 + $0x30] sm:$0xf]  ;;  %v1242_v16 = vor.u32 %v1627_v6, %v1241_v5  ;;  %v1550_v20 = vor.u32 %v1701_v10, %v1547_v11 }
  0x2e   :  { %595 = vmatpush.bf16.msrb.mxu2 %v1382_v13  ;;  %v1310_v13 = vor.u32 %v1641_v2, %v1307_v3  ;;  %v1711_v15 = vld [vmem:[%s2587_s2 + $0x34] sm:$0xf0]  ;;  %v1681_v17 = vld [vmem:[%s2586_s1 + $0x1cc] sm:$0xf]  ;;  %v1467_v18 = vld [vmem:[%s2586_s1 + $0x1d8] sm:$0xf0]  ;;  %v1370_v19 = vor.u32 %v1659_v9, %v1369_v7 }
  0x2f   :  { %v1637_v21 = vld [vmem:[%s2586_s1 + $0x6c] sm:$0xf]  ;;  %v1531_v25 = vld [vmem:[%s2586_s1 + $0x258] sm:$0xf0]  ;;  %v1573_v28 = vld [vmem:[%s2587_s2 + $0x20] sm:$0xf] }
  0x30   :  { %609 = vmatpush.bf16.msrb.mxu0 %v1494_v22  ;;  %v1291_v22 = vld [vmem:[%s2586_s1 + $0x78] sm:$0xf0]  ;;  %v1697_v24 = vld [vmem:[%s2586_s1 + $0x24c] sm:$0xf]  ;;  %v1709_v29 = vld [vmem:[%s2587_s2 + $0x24] sm:$0xf0] }
  0x31   :  { %618 = vmatpush.bf16.msrb.mxu1 %v1306_v23  ;;  %631 = vmatpush.bf16.msrb.mxu3 %v1434_v26  ;;  %v2312_v23 = vor.u32 %v1711_v15, %v1581_v14  ;;  %v1470_v26 = vor.u32 %v1681_v17, %v1467_v18  ;;  %v1294_v31 = vor.u32 %v1637_v21, %v1291_v22 }
  0x32   :  { %596 = vmatpush.bf16.msrb.mxu2 %v1366_v30  ;;  %v1451_v30 = vld [vmem:[%s2586_s1 + $0x1b8] sm:$0xf0] }
  0x33   :  { %1552 = vmatmul.msk.bf16.vlgmr.msrb.gmra.mxu0 %vm533_vm0, %v2091_v37 }
  0x34   :  { %645 = vmatpush.bf16.msra.mxu0 %v1546_v27  ;;  %v1677_v27 = vld [vmem:[%s2586_s1 + $0x1ac] sm:$0xf] }
  0x35   :  { %619 = vmatpush.bf16.msrb.mxu1 %v1290_v36  ;;  %632 = vmatpush.bf16.msrb.mxu3 %v1418_v40 }
  0x36   :  { %654 = vmatpush.bf16.msra.mxu2 %v1358_v35 }
  0x37   :  { %597 = vmatmul.bf16.vlgmr.msrb.gmra.mxu2 %v2130_v59 }
  0x38   :  { %646 = vmatpush.bf16.msra.mxu0 %v1530_v43 }
  0x39   :  { %620 = vmatpush.bf16.msrb.mxu1 %v1274_v49  ;;  %633 = vmatpush.bf16.msrb.mxu3 %v1402_v52 }
  0x3a   :  { %655 = vmatpush.bf16.msra.mxu2 %v1342_v48 }
  0x3c   :  { %647 = vmatpush.bf16.msra.mxu0 %v1514_v55 }
  0x3d   :  { %621 = vmatpush.bf16.msrb.mxu1 %v1258_v0  ;;  %634 = vmatpush.bf16.msrb.mxu3 %v1386_v4 }
  0x3e   :  { %656 = vmatpush.bf16.msra.mxu2 %v1326_v63 }
  0x40   :  { %648 = vmatpush.bf16.msra.mxu0 %v1498_v8 }
  0x41   :  { %622 = vmatpush.bf16.msrb.mxu1 %v1242_v16 }
  0x42   :  { %657 = vmatpush.bf16.msra.mxu2 %v1310_v13 }
  0x44   :  { %667 = vmatpush.bf16.msrb.mxu0 %v1486_v12 }
  0x45   :  { %15 = vsyncpa [#allocation5], 0  ;;  %635 = vmatpush.bf16.msrb.mxu3 %v1370_v19  ;;  %684 = vmatpush.bf16.msra.mxu1 %v1550_v20  ;;  %v1534_v32 = vor.u32 %v1697_v24, %v1531_v25  ;;  %v1633_v33 = vld [vmem:[%s2586_s1 + $0x4c] sm:$0xf]  ;;  %v1275_v34 = vld [vmem:[%s2586_s1 + $0x58] sm:$0xf0]  ;;  %v2339_v35 = vor.u32 %v1709_v29, %v1573_v28  ;;  %v1454_v39 = vor.u32 %v1677_v27, %v1451_v30 }
  0x46   :  { %v1693_v36 = vld [vmem:[%s2586_s1 + $0x22c] sm:$0xf]  ;;  %v1515_v38 = vld [vmem:[%s2586_s1 + $0x238] sm:$0xf0]  ;;  %623 = vmatmul.bf16.vlgmr.msrb.gmra.mxu1 %v2128_v58  ;;  %v1565_v40 = vld [vmem:[%s2587_s2 + $0x10] sm:$0xf]  ;;  %658 = vmatpush.bf16.msra.mxu2 %v1294_v31  ;;  %v1278_v44 = vor.u32 %v1633_v33, %v1275_v34 }
  0x47   :  { %v1707_v41 = vld [vmem:[%s2587_s2 + $0x14] sm:$0xf0]  ;;  %v1673_v42 = vld [vmem:[%s2586_s1 + $0x18c] sm:$0xf]  ;;  %v1435_v43 = vld [vmem:[%s2586_s1 + $0x198] sm:$0xf0]  ;;  %v1518_v45 = vor.u32 %v1693_v36, %v1515_v38  ;;  %1553 = vmatmul.msk.bf16.vlgmr.msra.gmra.mxu0 %vm533_vm0, %v2091_v37 }
  0x48   :  { %668 = vmatpush.bf16.msrb.mxu0 %v1470_v26  ;;  %636 = vmatmul.bf16.vlgmr.msrb.gmra.mxu3 %v2130_v59  ;;  %v1629_v46 = vld [vmem:[%s2586_s1 + $0x2c] sm:$0xf]  ;;  %v1259_v47 = vld [vmem:[%s2586_s1 + $0x38] sm:$0xf0]  ;;  %v2368_v48 = vor.u32 %v1707_v41, %v1565_v40  ;;  %v1557_v49 = vld [vmem:[%s2587_s2] sm:$0xf]  ;;  %v1438_v52 = vor.u32 %v1673_v42, %v1435_v43 }
  0x49   :  { %756 = vmatpush.bf16.msra.mxu3 %v2312_v23  ;;  %685 = vmatpush.bf16.msra.mxu1 %v1534_v32  ;;  %v1689_v50 = vld [vmem:[%s2586_s1 + $0x20c] sm:$0xf]  ;;  %v1499_v51 = vld [vmem:[%s2586_s1 + $0x218] sm:$0xf0]  ;;  %v1705_v53 = vld [vmem:[%s2587_s2 + $0x4] sm:$0xf0]  ;;  %v1262_v60 = vor.u32 %v1629_v46, %v1259_v47 }
  0x4a   :  { %v1710_v54 = vld [vmem:[%s2587_s2 + $0x34] sm:$0xf]  ;;  %v1583_v55 = vld [vmem:[%s2587_s2 + $0x38] sm:$0xf0]  ;;  %659 = vmatpush.bf16.msra.mxu2 %v1278_v44  ;;  %v1669_v56 = vld [vmem:[%s2586_s1 + $0x16c] sm:$0xf]  ;;  %v1502_v61 = vor.u32 %v1689_v50, %v1499_v51  ;;  %v1558_v0 = vor.u32 %v1705_v53, %v1557_v49 }
  0x4b   :  { %v1419_v57 = vld [vmem:[%s2586_s1 + $0x178] sm:$0xf0]  ;;  %v1625_v62 = vld [vmem:[%s2586_s1 + $0xc] sm:$0xf]  ;;  %v1586_v1 = vor.u32 %v1710_v54, %v1583_v55  ;;  %v1708_v3 = vld [vmem:[%s2587_s2 + $0x24] sm:$0xf] }
  0x4c   :  { %669 = vmatpush.bf16.msrb.mxu0 %v1454_v39  ;;  %v1243_v63 = vld [vmem:[%s2586_s1 + $0x18] sm:$0xf0]  ;;  %v1422_v2 = vor.u32 %v1669_v56, %v1419_v57  ;;  %v1575_v4 = vld [vmem:[%s2587_s2 + $0x28] sm:$0xf0]  ;;  %v1706_v10 = vld [vmem:[%s2587_s2 + $0x14] sm:$0xf] }
  0x4d   :  { %757 = vmatpush.bf16.msra.mxu3 %v2339_v35  ;;  %686 = vmatpush.bf16.msra.mxu1 %v1518_v45  ;;  %v1665_v5 = vld [vmem:[%s2586_s1 + $0x14c] sm:$0xf]  ;;  %v1403_v6 = vld [vmem:[%s2586_s1 + $0x158] sm:$0xf0]  ;;  %v1246_v7 = vor.u32 %v1625_v62, %v1243_v63  ;;  %v1578_v8 = vor.u32 %v1708_v3, %v1575_v4  ;;  %v1704_v17 = vld [vmem:[%s2587_s2 + $0x4] sm:$0xf] }
  0x4e   :  { %660 = vmatpush.bf16.msra.mxu2 %v1262_v60  ;;  %v1406_v9 = vor.u32 %v1665_v5, %v1403_v6  ;;  %v1567_v11 = vld [vmem:[%s2587_s2 + $0x18] sm:$0xf0]  ;;  %v1661_v12 = vld [vmem:[%s2586_s1 + $0x12c] sm:$0xf]  ;;  %v1829_v19 = vmov 0   ;;  %s1831_s21 = smov [#allocation4]  }
  0x4f   :  { %v1387_v13 = vld [vmem:[%s2586_s1 + $0x138] sm:$0xf0]  ;;  %v1570_v14 = vor.u32 %v1706_v10, %v1567_v11  ;;  %v1657_v16 = vld [vmem:[%s2586_s1 + $0x10c] sm:$0xf]  ;;  %v1718_v20 = vld [vmem:[%s2588_s3 + $0x34] sm:$0xf] }
  0x50   :  { %670 = vmatpush.bf16.msrb.mxu0 %v1438_v52  ;;  %v1390_v15 = vor.u32 %v1661_v12, %v1387_v13  ;;  %v1559_v18 = vld [vmem:[%s2587_s2 + $0x8] sm:$0xf0]  ;;  %v1617_v21 = vld [vmem:[%s2588_s3 + $0x38] sm:$0xf0]  ;;  %v1615_v22 = vld [vmem:[%s2588_s3 + $0x30] sm:$0xf] }
  0x51   :  { %758 = vmatpush.bf16.msra.mxu3 %v2368_v48  ;;  %687 = vmatpush.bf16.msra.mxu1 %v1502_v61  ;;  %v1620_v25 = vor.u32 %v1718_v20, %v1617_v21  ;;  %v1716_v27 = vld [vmem:[%s2588_s3 + $0x24] sm:$0xf]  ;;  %v1609_v28 = vld [vmem:[%s2588_s3 + $0x28] sm:$0xf0]  ;;  %v1607_v29 = vld [vmem:[%s2588_s3 + $0x20] sm:$0xf] }
  0x52   :  { %661 = vmatpush.bf16.msra.mxu2 %v1246_v7  ;;  %v1717_v30 = vld [vmem:[%s2588_s3 + $0x24] sm:$0xf0]  ;;  %v1612_v31 = vor.u32 %v1716_v27, %v1609_v28  ;;  %v1599_v33 = vld [vmem:[%s2588_s3 + $0x10] sm:$0xf]  ;;  %v1715_v34 = vld [vmem:[%s2588_s3 + $0x14] sm:$0xf0] }
  0x53   :  { %v1608_v32 = vor.u32 %v1717_v30, %v1607_v29  ;;  %v1601_v36 = vld [vmem:[%s2588_s3 + $0x18] sm:$0xf0]  ;;  %v1600_v38 = vor.u32 %v1715_v34, %v1599_v33  ;;  %v1591_v39 = vld [vmem:[%s2588_s3] sm:$0xf]  ;;  %v1713_v41 = vld [vmem:[%s2588_s3 + $0x4] sm:$0xf0] }
  0x54   :  { %671 = vmatpush.bf16.msrb.mxu0 %v1422_v2  ;;  %v1712_v42 = vld [vmem:[%s2588_s3 + $0x4] sm:$0xf]  ;;  %v1592_v43 = vor.u32 %v1713_v41, %v1591_v39  ;;  %v113_v63 = vld [vmem:[%s2589_s4] sm:$0xf]  ;;  %s1830_s4 = smov 64   ;;  %s1215_s22 = sshll.u32 %s1831_s21, 4  ;;  %s1216_s22 = int_to_ptr.vmem [resolvable:$true] %s1215_s22 }
  0x55   :  { %759 = vmatpush.bf16.msra.mxu3 %v1558_v0  ;;  %769 = vmatpush.bf16.msrb.mxu1 %v1586_v1  ;;  %s1832_s25 = smov [#allocation2]   ;;  %s1206_s27 = sshll.u32 %s2592_s7, 4  ;;  %s1207_s27 = int_to_ptr.hbm [resolvable:$true] %s1206_s27 }
  0x56   :  { %839 = vmatpush.bf16.msrb.mxu2 %v2312_v23  ;;  %1554 = vmatmul.msk.bf16.vlgmr.msra.gmra.mxu1 %vm533_vm0, %v2091_v37  ;;  %v1371_v37 = vld [vmem:[%s2586_s1 + $0x118] sm:$0xf0]  ;;  %v1562_v23 = vor.u32 %v1704_v17, %v1559_v18  ;;  %v117_v17 = vperm.slane %v113_v63, 2  ;;  %s1204_s26 = sshll.u32 %s1832_s25, 4  ;;  %s1205_s26 = int_to_ptr.vmem [resolvable:$true] %s1204_s26 }
  0x57   :  { %662 = vmatmul.bf16.vlgmr.msra.gmra.mxu2 %v2128_v58  ;;  %v1719_v58 = vld [vmem:[%s2588_s3 + $0x34] sm:$0xf0]  ;;  %v1374_v24 = vor.u32 %v1657_v16, %v1371_v37 }
  0x58   :  { %672 = vmatpush.bf16.msrb.mxu0 %v1406_v9  ;;  %760 = vmatmul.bf16.vlgmr.msra.gmra.mxu3 %v1829_v19  ;;  %v1616_v26 = vor.u32 %v1719_v58, %v1615_v22 }
  0x59   :  { %852 = vmatpush.bf16.msrb.mxu3 %v1586_v1  ;;  %770 = vmatpush.bf16.msrb.mxu1 %v1578_v8 }
  0x5a   :  { %840 = vmatpush.bf16.msrb.mxu2 %v2339_v35  ;;  %v1714_v35 = vld [vmem:[%s2588_s3 + $0x14] sm:$0xf] }
  0x5b   :  { %v1604_v40 = vor.u32 %v1714_v35, %v1601_v36 }
  0x5c   :  { %673 = vmatpush.bf16.msrb.mxu0 %v1390_v15 }
  0x5d   :  { %853 = vmatpush.bf16.msrb.mxu3 %v1578_v8  ;;  %771 = vmatpush.bf16.msrb.mxu1 %v1570_v14 }
  0x5e   :  { %841 = vmatpush.bf16.msrb.mxu2 %v2368_v48 }
  0x60   :  { %674 = vmatpush.bf16.msrb.mxu0 %v1374_v24 }
  0x61   :  { %854 = vmatpush.bf16.msrb.mxu3 %v1570_v14  ;;  %772 = vmatpush.bf16.msrb.mxu1 %v1562_v23  ;;  %v116_v14 = vperm.slane %v113_v63, 1 }
  0x62   :  { %842 = vmatpush.bf16.msrb.mxu2 %v1558_v0  ;;  %v115_v0 = vperm.slane %v113_v63, 0 }
  0x63   :  { %675 = vmatmul.bf16.vlgmr.msrb.gmra.mxu0 %v2130_v59  ;;  %v1593_v59 = vld [vmem:[%s2588_s3 + $0x8] sm:$0xf0] }
  0x64   :  { %964 = vmatpush.bf16.msra.mxu0 %v1616_v26  ;;  %v1596_v44 = vor.u32 %v1712_v42, %v1593_v59  ;;  %v118_v59 = vperm.slane %v113_v63, 3 }
  0x65   :  { %977 = vmatpush.bf16.msra.mxu1 %v1620_v25  ;;  %855 = vmatpush.bf16.msrb.mxu3 %v1562_v23 }
  0x66   :  { %1054 = vmatpush.bf16.msra.mxu2 %v1616_v26  ;;  %773 = vmatmul.bf16.vlgmr.msrb.gmra.mxu1 %v1829_v19 }
  0x68   :  { %965 = vmatpush.bf16.msra.mxu0 %v1608_v32 }
  0x69   :  { %978 = vmatpush.bf16.msra.mxu1 %v1612_v31  ;;  %1067 = vmatpush.bf16.msra.mxu3 %v1620_v25 }
  0x6a   :  { %1055 = vmatpush.bf16.msra.mxu2 %v1608_v32 }
  0x6c   :  { %966 = vmatpush.bf16.msra.mxu0 %v1600_v38 }
  0x6d   :  { %1068 = vmatpush.bf16.msra.mxu3 %v1612_v31  ;;  %979 = vmatpush.bf16.msra.mxu1 %v1604_v40 }
  0x6e   :  { %1056 = vmatpush.bf16.msra.mxu2 %v1600_v38 }
  0x70   :  { %967 = vmatpush.bf16.msra.mxu0 %v1592_v43 }
  0x71   :  { %1069 = vmatpush.bf16.msra.mxu3 %v1604_v40  ;;  %980 = vmatpush.bf16.msra.mxu1 %v1596_v44 }
  0x72   :  { %1057 = vmatpush.bf16.msra.mxu2 %v1592_v43 }
  0x73   :  { %968 = vmatmul.bf16.vlgmr.msra.gmra.mxu0 %v1829_v19 }
  0x75   :  { %1070 = vmatpush.bf16.msra.mxu3 %v1596_v44 }
  0x76   :  { %981 = vmatmul.bf16.vlgmr.msra.gmra.mxu1 %v1829_v19 }
  0x9e   :  { %v572_v46 = vpop.f32.mrf.mxu2 }
  0xa0   :  { %v546_v45 = vpop.f32.mrf.mxu0 }
  0xa1   :  { %v547_v2 = vadd.f32 %v546_v45, %v115_v0 }
  0xa3   :  { %v559_v47 = vpop.f32.mrf.mxu1 }
  0xa4   :  { %v560_v5 = vadd.f32 %v559_v47, %v547_v2 }
  0xa6   :  { %v574_v50 = vpop.f32.mrf.mxu2  ;;  %v2499_v6 = vadd.f32 %v572_v46, %v560_v5 }
  0xa7   :  { %v585_v48 = vpop.f32.mrf.mxu3 }
  0xa8   :  { %v548_v49 = vpop.f32.mrf.mxu0  ;;  %v586_v19 = vadd.f32 %v585_v48, %v116_v14 }
  0xab   :  { %v561_v51 = vpop.f32.mrf.mxu1 }
  0xaf   :  { %v587_v52 = vpop.f32.mrf.mxu3 }
  0xb0   :  { %v611_v53 = vpop.f32.mrf.mxu0 }
  0xb8   :  { %v613_v55 = vpop.f32.mrf.mxu0 }
  0xba   :  { %v598_v54 = vpop.f32.mrf.mxu2 }
  0xbb   :  { %v599_v58 = vadd.f32 %v598_v54, %v586_v19 }
  0xbd   :  { %v2502_v25 = vadd.f32 %v611_v53, %v599_v58 }
  0xc2   :  { %v600_v57 = vpop.f32.mrf.mxu2 }
  0xc3   :  { %v624_v56 = vpop.f32.mrf.mxu1 }
  0xc4   :  { %v650_v60 = vpop.f32.mrf.mxu0  ;;  %v625_v21 = vadd.f32 %v624_v56, %v117_v17 }
  0xcb   :  { %v637_v61 = vpop.f32.mrf.mxu3  ;;  %v626_v62 = vpop.f32.mrf.mxu1 }
  0xcc   :  { %v652_v1 = vpop.f32.mrf.mxu0  ;;  %v638_v23 = vadd.f32 %v637_v61, %v625_v21 }
  0xce   :  { %v2504_v27 = vadd.f32 %v650_v60, %v638_v23 }
  0xd3   :  { %v639_v3 = vpop.f32.mrf.mxu3  ;;  %v2497_v4 = vpop.f32.mrf.mxu1 }
  0xda   :  { %v663_v8 = vpop.f32.mrf.mxu2 }
  0xdb   :  { %v761_v7 = vpop.f32.mrf.mxu3  ;;  %v691_v10 = vpop.f32.mrf.mxu1  ;;  %v664_v49 = vadd.f32 %v663_v8, %v118_v59 }
  0xdc   :  { %v778_v9 = vadd.f32 %v761_v7, %v2499_v6 }
  0xde   :  { %v780_v11 = vsub.f32 0.0, %v778_v9 }
  0xe0   :  { %v676_v12 = vpop.f32.mrf.mxu0  ;;  %v781_v13 = vmul.f32 1.442695, %v780_v11 }
  0xe1   :  { %v677_v52 = vadd.f32 %v676_v12, %v664_v49 }
  0xe2   :  { %1725 = vpow2.f32 %v781_v13  ;;  %v665_v16 = vpop.f32.mrf.mxu2 }
  0xe3   :  { %v763_v15 = vpop.f32.mrf.mxu3  ;;  %v774_v18 = vpop.f32.mrf.mxu1  ;;  %v2510_v54 = vadd.f32 %v2497_v4, %v677_v52 }
  0xe4   :  { %v779_v30 = vadd.f32 %v774_v18, %v2502_v25 }
  0xe6   :  { %v800_v7 = vsub.f32 0.0, %v779_v30 }
  0xe8   :  { %v678_v37 = vpop.f32.mrf.mxu0  ;;  %v1726_v20 = vpop.eup %1725  ;;  %v801_v8 = vmul.f32 1.442695, %v800_v7 }
  0xe9   :  { %v783_v22 = vadd.f32 1.0, %v1726_v20 }
  0xeb   :  { %1727 = vrcp.f32 %v783_v22  ;;  %v776_v24 = vpop.f32.mrf.mxu1  ;;  %v795_v36 = vand.u32 2147483648, %v783_v22  ;;  %v793_v40 = vand.u32 2147483647, %v783_v22  ;;  %vm789_vm2 = vweird.f32 %v783_v22 }
  0xec   :  { %1729 = vtanh.f32 %v779_v30 }
  0xed   :  { %v796_v43 = vor.u32 1.1754944e-38, %v795_v36  ;;  %vm794_vm4 = vcmp.eq.f32.partialorder %v793_v40, 8.507059e+37 }
  0xf0   :  { %v969_v26 = vpop.f32.mrf.mxu0 }
  0xf1   :  { %v988_v28 = vrot.slane %v969_v26, 4  ;;  %v1728_v29 = vpop.eup %1727 }
  0xf2   :  { %v785_v32 = vmul.f32 %v1728_v29, %v783_v22  ;;  %vm790_vm1 = vweird.f32 %v1728_v29  ;;  %v1730_v45 = vpop.eup %1729 }
  0xf3   :  { %v992_v31 = vadd.f32 %v988_v28, %v2504_v27  ;;  %v982_v34 = vpop.f32.mrf.mxu1  ;;  %vm791_vm3 = vmor %vm789_vm2, %vm790_vm1 }
  0xf4   :  { %v786_v35 = vsub.f32 1.0, %v785_v32  ;;  %v989_v53 = vrot.slane %v982_v34, 4 }
  0xf5   :  { %v994_v33 = vsub.f32 0.0, %v992_v31 }
  0xf6   :  { %v787_v39 = vmul.f32 %v1728_v29, %v786_v35  ;;  %v993_v56 = vadd.f32 %v989_v53, %v2510_v54 }
  0xf7   :  { %v995_v38 = vmul.f32 1.442695, %v994_v33 }
  0xf8   :  { %v971_v41 = vpop.f32.mrf.mxu0  ;;  %v788_v42 = vadd.f32 %v1728_v29, %v787_v39  ;;  %v1014_v11 = vsub.f32 0.0, %v993_v56 }
  0xf9   :  { %1731 = vpow2.f32 %v995_v38 }
  0xfa   :  { %v792_v44 = vsel %vm791_vm3, %v1728_v29, %v788_v42  ;;  %v1015_v12 = vmul.f32 1.442695, %v1014_v11 }
  0xfb   :  { %v797_v46 = vsel %vm794_vm4, %v796_v43, %v792_v44  ;;  %v984_v48 = vpop.f32.mrf.mxu1 }
  0xfc   :  { %v820_v47 = vmul.f32 %v1730_v45, %v797_v46  ;;  %v819_v19 = vmul.f32 0.0, %v797_v46 }
  0xfe   :  { %822 = vrot.lane.b32.xlu0 %v820_v47, %s1830_s4 }
  0xff   :  { %v1732_v50 = vpop.eup %1731 }
 0x100   :  { %v997_v51 = vadd.f32 1.0, %v1732_v50 }
 0x102   :  { %1733 = vrcp.f32 %v997_v51  ;;  %v1009_v61 = vand.u32 2147483648, %v997_v51  ;;  %v1007_v63 = vand.u32 2147483647, %v997_v51  ;;  %vm1003_vm6 = vweird.f32 %v997_v51 }
 0x103   :  { %1735 = vtanh.f32 %v993_v56 }
 0x104   :  { %v1010_v1 = vor.u32 1.1754944e-38, %v1009_v61  ;;  %vm1008_vm8 = vcmp.eq.f32.partialorder %v1007_v63, 8.507059e+37  ;;  %1737 = vpow2.f32 %v801_v8 }
 0x108   :  { %v1734_v55 = vpop.eup %1733 }
 0x109   :  { %v999_v57 = vmul.f32 %v1734_v55, %v997_v51  ;;  %vm1004_vm5 = vweird.f32 %v1734_v55  ;;  %v1736_v3 = vpop.eup %1735 }
 0x10a   :  { %vm1005_vm7 = vmor %vm1003_vm6, %vm1004_vm5  ;;  %v1738_v9 = vpop.eup %1737 }
 0x10b   :  { %v1000_v60 = vsub.f32 1.0, %v999_v57  ;;  %v803_v10 = vadd.f32 1.0, %v1738_v9 }
 0x10d   :  { %v1001_v62 = vmul.f32 %v1734_v55, %v1000_v60  ;;  %1739 = vrcp.f32 %v803_v10  ;;  %v815_v22 = vand.u32 2147483648, %v803_v10  ;;  %vm809_vm10 = vweird.f32 %v803_v10 }
 0x10e   :  { %1741 = vpow2.f32 %v1015_v12  ;;  %v813_v58 = vand.u32 2147483647, %v803_v10 }
 0x10f   :  { %v1002_v0 = vadd.f32 %v1734_v55, %v1001_v62  ;;  %v816_v24 = vor.u32 1.1754944e-38, %v815_v22 }
 0x110   :  { %vm814_vm12 = vcmp.eq.f32.partialorder %v813_v58, 8.507059e+37 }
 0x111   :  { %v1006_v2 = vsel %vm1005_vm7, %v1734_v55, %v1002_v0 }
 0x112   :  { %v1011_v5 = vsel %vm1008_vm8, %v1010_v1, %v1006_v2 }
 0x113   :  { %v1034_v4 = vmul.f32 %v1736_v3, %v1011_v5  ;;  %v1740_v13 = vpop.eup %1739  ;;  %v1033_v35 = vmul.f32 0.0, %v1011_v5 }
 0x114   :  { %v805_v14 = vmul.f32 %v1740_v13, %v803_v10  ;;  %v1742_v16 = vpop.eup %1741  ;;  %vm810_vm9 = vweird.f32 %v1740_v13 }
 0x115   :  { %1036 = vrot.lane.b32.xlu0 %v1034_v4, %s1830_s4  ;;  %v1017_v17 = vadd.f32 1.0, %v1742_v16  ;;  %vm811_vm11 = vmor %vm809_vm10, %vm810_vm9 }
 0x116   :  { %v806_v15 = vsub.f32 1.0, %v805_v14 }
 0x117   :  { %1743 = vrcp.f32 %v1017_v17  ;;  %v1029_v40 = vand.u32 2147483648, %v1017_v17  ;;  %vm1023_vm14 = vweird.f32 %v1017_v17  ;;  %v1027_v41 = vand.u32 2147483647, %v1017_v17 }
 0x118   :  { %v807_v18 = vmul.f32 %v1740_v13, %v806_v15 }
 0x119   :  { %v1030_v59 = vor.u32 1.1754944e-38, %v1029_v40  ;;  %vm1028_vm1 = vcmp.eq.f32.partialorder %v1027_v41, 8.507059e+37 }
 0x11a   :  { %v808_v21 = vadd.f32 %v1740_v13, %v807_v18 }
 0x11c   :  { %v812_v23 = vsel %vm811_vm11, %v1740_v13, %v808_v21 }
 0x11d   :  { %v1744_v26 = vpop.eup %1743  ;;  %v817_v29 = vsel %vm814_vm12, %v816_v24, %v812_v23 }
 0x11e   :  { %v1019_v32 = vmul.f32 %v1744_v26, %v1017_v17  ;;  %vm1024_vm13 = vweird.f32 %v1744_v26 }
 0x11f   :  { %vm1025_vm15 = vmor %vm1023_vm14, %vm1024_vm13  ;;  %vm1135_vm14 = vcmask 1040384  }
 0x120   :  { %v1020_v33 = vsub.f32 1.0, %v1019_v32 }
 0x122   :  { %v1021_v34 = vmul.f32 %v1744_v26, %v1020_v33 }
 0x124   :  { %v1022_v39 = vadd.f32 %v1744_v26, %v1021_v34 }
 0x126   :  { %v1026_v42 = vsel %vm1025_vm15, %v1744_v26, %v1022_v39 }
 0x127   :  { %v1031_v44 = vsel %vm1028_vm1, %v1030_v59, %v1026_v42 }
 0x170   :  { %v823_v37 = vpop.permute.xlu0 %822 }
 0x171   :  { %v2514_v20 = vadd.f32 %v823_v37, %v819_v19 }
 0x173   :  { %1745 = vtanh.f32 %v2514_v20  ;;  %v909_v15 = vrot.slane %v2514_v20, 4 }
 0x179   :  { %v1746_v28 = vpop.eup %1745 }
 0x17a   :  { %v2517_v30 = vmul.f32 %v1746_v28, %v817_v29 }
 0x17c   :  { %v828_v31 = vpack.c.bf16 %v2517_v30, %v2517_v30 }
 0x17e   :  { %830 = vrot.lane.b32.xlu1 %v828_v31, %s1830_s4 }
 0x187   :  { %v1037_v36 = vpop.permute.xlu0 %1036 }
 0x188   :  { %v2522_v38 = vadd.f32 %v1037_v36, %v1033_v35 }
 0x18a   :  { %1747 = vtanh.f32 %v2522_v38  ;;  %v1118_v32 = vrot.slane %v2522_v38, 4 }
 0x190   :  { %v1748_v43 = vpop.eup %1747 }
 0x191   :  { %v2525_v45 = vmul.f32 %v1748_v43, %v1031_v44 }
 0x193   :  { %v1042_v46 = vpack.c.bf16 %v2525_v45, %v2525_v45 }
 0x195   :  { %v1044_v47 = vrot.slane %v1042_v46, 2 }
 0x197   :  { %1045 = vrot.lane.b32.xlu1 %v1044_v47, %s1830_s4 }
 0x1f0   :  { %v831_v48 = vpop.permute.xlu1 %830 }
 0x1f1   :  { %1587 = vmatmul.msk.bf16.vlgmr.msrb.gmra.mxu2 %vm533_vm0, %v831_v48  ;;  %1588 = vmatmul.msk.bf16.vlgmr.msrb.gmra.mxu3 %vm533_vm0, %v831_v48 }
 0x209   :  { %v1046_v49 = vpop.permute.xlu1 %1045 }
 0x20a   :  { %1621 = vmatmul.msk.bf16.vlgmr.msra.gmra.mxu2 %vm533_vm0, %v1046_v49  ;;  %1622 = vmatmul.msk.bf16.vlgmr.msra.gmra.mxu3 %vm533_vm0, %v1046_v49 }
 0x274   :  { %v844_v50 = vpop.f32.mrf.mxu2  ;;  %v857_v51 = vpop.f32.mrf.mxu3 }
 0x275   :  { %v863_v52 = vrot.slane %v844_v50, 4  ;;  %v864_v63 = vrot.slane %v857_v51, 4  ;;  %v1157_v51 = vld [vmem:[%s2590_s5 + $0x38] sm:$0xff] }
 0x276   :  { %1173 = vmatpush.msrb.mxu0 %v1157_v51 }
 0x277   :  { %v867_v53 = vadd.f32 %v863_v52, %v2499_v6  ;;  %v868_v1 = vadd.f32 %v864_v63, %v2502_v25  ;;  %v1156_v52 = vld [vmem:[%s2590_s5 + $0x30] sm:$0xff]  ;;  %v1153_v63 = vld [vmem:[%s2590_s5 + $0x18] sm:$0xff] }
 0x278   :  { %1174 = vmatpush.msrb.mxu0 %v1156_v52 }
 0x279   :  { %v869_v55 = vsub.f32 0.0, %v867_v53 }
 0x27b   :  { %v870_v56 = vmul.f32 1.442695, %v869_v55 }
 0x27c   :  { %v846_v57 = vpop.f32.mrf.mxu2  ;;  %v859_v60 = vpop.f32.mrf.mxu3 }
 0x27d   :  { %1749 = vpow2.f32 %v870_v56  ;;  %v1155_v56 = vld [vmem:[%s2590_s5 + $0x28] sm:$0xff] }
 0x27e   :  { %1175 = vmatpush.msrb.mxu0 %v1155_v56 }
 0x283   :  { %v1750_v61 = vpop.eup %1749 }
 0x284   :  { %v872_v62 = vadd.f32 1.0, %v1750_v61  ;;  %v1154_v61 = vld [vmem:[%s2590_s5 + $0x20] sm:$0xff] }
 0x285   :  { %1176 = vmatpush.msrb.mxu0 %v1154_v61 }
 0x286   :  { %1751 = vrcp.f32 %v872_v62  ;;  %v884_v6 = vand.u32 2147483648, %v872_v62  ;;  %v882_v11 = vand.u32 2147483647, %v872_v62  ;;  %vm878_vm3 = vweird.f32 %v872_v62 }
 0x287   :  { %1753 = vtanh.f32 %v868_v1  ;;  %1177 = vmatpush.msrb.mxu0 %v1153_v63 }
 0x288   :  { %v885_v25 = vor.u32 1.1754944e-38, %v884_v6  ;;  %vm883_vm5 = vcmp.eq.f32.partialorder %v882_v11, 8.507059e+37 }
 0x28c   :  { %v1752_v0 = vpop.eup %1751 }
 0x28d   :  { %v1059_v2 = vpop.f32.mrf.mxu2  ;;  %v1072_v3 = vpop.f32.mrf.mxu3  ;;  %v874_v4 = vmul.f32 %v1752_v0, %v872_v62  ;;  %vm879_vm2 = vweird.f32 %v1752_v0 }
 0x28e   :  { %v1076_v5 = vadd.f32 %v1059_v2, %v2504_v27  ;;  %vm880_vm4 = vmor %vm878_vm3, %vm879_vm2  ;;  %v1754_v27 = vpop.eup %1753  ;;  %v1077_v58 = vadd.f32 %v1072_v3, %v2510_v54  ;;  %v889_v54 = vsub.f32 0.0, %v868_v1  ;;  %v1152_v2 = vld [vmem:[%s2590_s5 + $0x10] sm:$0xff] }
 0x28f   :  { %v875_v8 = vsub.f32 1.0, %v874_v4  ;;  %1178 = vmatpush.msrb.mxu0 %v1152_v2 }
 0x290   :  { %v1078_v7 = vsub.f32 0.0, %v1076_v5  ;;  %v890_v40 = vmul.f32 1.442695, %v889_v54  ;;  %v1098_v59 = vsub.f32 0.0, %v1077_v58 }
 0x291   :  { %v876_v10 = vmul.f32 %v1752_v0, %v875_v8  ;;  %v1130_v8 = vrot.slane %v2517_v30, 3 }
 0x292   :  { %v1079_v9 = vmul.f32 1.442695, %v1078_v7  ;;  %v1099_v43 = vmul.f32 1.442695, %v1098_v59  ;;  %v1151_v7 = vld [vmem:[%s2590_s5 + $0x8] sm:$0xff] }
 0x293   :  { %v877_v12 = vadd.f32 %v1752_v0, %v876_v10  ;;  %v1150_v10 = vld [vmem:[%s2590_s5] sm:$0xff]  ;;  %1179 = vmatpush.msrb.mxu0 %v1151_v7 }
 0x294   :  { %1755 = vpow2.f32 %v1079_v9 }
 0x295   :  { %v1061_v13 = vpop.f32.mrf.mxu2  ;;  %v1074_v14 = vpop.f32.mrf.mxu3  ;;  %v881_v16 = vsel %vm880_vm4, %v1752_v0, %v877_v12  ;;  %1180 = vmatpush.msrb.mxu0 %v1150_v10  ;;  %vm1185_vm4 = vcmask 74752  }
 0x296   :  { %v886_v17 = vsel %vm883_vm5, %v885_v25, %v881_v16 }
 0x297   :  { %v912_v18 = vmul.f32 %v1754_v27, %v886_v17  ;;  %v911_v19 = vmul.f32 %v909_v15, %v886_v17 }
 0x299   :  { %914 = vrot.lane.b32.xlu2 %v912_v18, %s1830_s4 }
 0x29a   :  { %v1756_v37 = vpop.eup %1755 }
 0x29b   :  { %v1081_v21 = vadd.f32 1.0, %v1756_v37 }
 0x29d   :  { %1757 = vrcp.f32 %v1081_v21  ;;  %v1093_v26 = vand.u32 2147483648, %v1081_v21  ;;  %v1091_v20 = vand.u32 2147483647, %v1081_v21  ;;  %vm1087_vm7 = vweird.f32 %v1081_v21 }
 0x29e   :  { %1759 = vtanh.f32 %v1077_v58 }
 0x29f   :  { %v1094_v31 = vor.u32 1.1754944e-38, %v1093_v26  ;;  %vm1092_vm9 = vcmp.eq.f32.partialorder %v1091_v20, 8.507059e+37  ;;  %1761 = vpow2.f32 %v890_v40  ;;  %v1724_v26 = vld [vmem:[%s2591_s6] ss:$0 sm:$0xff]  ;;  %s1217_s6 = sshll.u32 %s2593_s8, 4  ;;  %s1218_s6 = int_to_ptr.hbm [resolvable:$true] %s1217_s6 }
 0x2a3   :  { %v1758_v22 = vpop.eup %1757 }
 0x2a4   :  { %v1083_v23 = vmul.f32 %v1758_v22, %v1081_v21  ;;  %vm1088_vm6 = vweird.f32 %v1758_v22  ;;  %v1760_v34 = vpop.eup %1759  ;;  %v1141_v21 = vrot.slane %v2525_v45, 6 }
 0x2a5   :  { %vm1089_vm8 = vmor %vm1087_vm7, %vm1088_vm6  ;;  %v1762_v41 = vpop.eup %1761 }
 0x2a6   :  { %v1084_v24 = vsub.f32 1.0, %v1083_v23  ;;  %v892_v42 = vadd.f32 1.0, %v1762_v41 }
 0x2a8   :  { %v1085_v28 = vmul.f32 %v1758_v22, %v1084_v24  ;;  %1763 = vrcp.f32 %v892_v42  ;;  %v904_v57 = vand.u32 2147483648, %v892_v42  ;;  %vm898_vm11 = vweird.f32 %v892_v42 }
 0x2a9   :  { %1765 = vpow2.f32 %v1099_v43  ;;  %v902_v60 = vand.u32 2147483647, %v892_v42 }
 0x2aa   :  { %v1086_v29 = vadd.f32 %v1758_v22, %v1085_v28  ;;  %v905_v0 = vor.u32 1.1754944e-38, %v904_v57 }
 0x2ab   :  { %vm903_vm13 = vcmp.eq.f32.partialorder %v902_v60, 8.507059e+37 }
 0x2ac   :  { %v1090_v33 = vsel %vm1089_vm8, %v1758_v22, %v1086_v29 }
 0x2ad   :  { %v1095_v35 = vsel %vm1092_vm9, %v1094_v31, %v1090_v33 }
 0x2ae   :  { %v1121_v36 = vmul.f32 %v1760_v34, %v1095_v35  ;;  %v1120_v39 = vmul.f32 %v1118_v32, %v1095_v35  ;;  %v1764_v44 = vpop.eup %1763 }
 0x2af   :  { %v894_v46 = vmul.f32 %v1764_v44, %v892_v42  ;;  %v1766_v47 = vpop.eup %1765  ;;  %vm899_vm10 = vweird.f32 %v1764_v44 }
 0x2b0   :  { %1123 = vrot.lane.b32.xlu2 %v1121_v36, %s1830_s4  ;;  %v1101_v48 = vadd.f32 1.0, %v1766_v47  ;;  %vm900_vm12 = vmor %vm898_vm11, %vm899_vm10 }
 0x2b1   :  { %v895_v38 = vsub.f32 1.0, %v894_v46 }
 0x2b2   :  { %1767 = vrcp.f32 %v1101_v48  ;;  %v1113_v16 = vand.u32 2147483648, %v1101_v48  ;;  %vm1107_vm1 = vweird.f32 %v1101_v48  ;;  %v1111_v30 = vand.u32 2147483647, %v1101_v48 }
 0x2b3   :  { %v896_v49 = vmul.f32 %v1764_v44, %v895_v38 }
 0x2b4   :  { %v1114_v17 = vor.u32 1.1754944e-38, %v1113_v16  ;;  %vm1112_vm3 = vcmp.eq.f32.partialorder %v1111_v30, 8.507059e+37 }
 0x2b5   :  { %v897_v55 = vadd.f32 %v1764_v44, %v896_v49 }
 0x2b7   :  { %v901_v62 = vsel %vm900_vm12, %v1764_v44, %v897_v55 }
 0x2b8   :  { %v1768_v1 = vpop.eup %1767  ;;  %v906_v5 = vsel %vm903_vm13, %v905_v0, %v901_v62 }
 0x2b9   :  { %v1103_v6 = vmul.f32 %v1768_v1, %v1101_v48  ;;  %vm1108_vm15 = vweird.f32 %v1768_v1 }
 0x2ba   :  { %vm1109_vm2 = vmor %vm1107_vm1, %vm1108_vm15 }
 0x2bb   :  { %v1104_v12 = vsub.f32 1.0, %v1103_v6 }
 0x2bd   :  { %v1105_v13 = vmul.f32 %v1768_v1, %v1104_v12 }
 0x2bf   :  { %v1106_v15 = vadd.f32 %v1768_v1, %v1105_v13 }
 0x2c1   :  { %v1110_v27 = vsel %vm1109_vm2, %v1768_v1, %v1106_v15 }
 0x2f3   :  { %v915_v50 = vpop.permute.xlu2 %914 }
 0x2f4   :  { %v917_v53 = vadd.f32 %v915_v50, %v911_v19  ;;  %v1115_v19 = vsel %vm1112_vm3, %v1114_v17, %v1110_v27 }
 0x2f6   :  { %1769 = vtanh.f32 %v917_v53 }
 0x2fc   :  { %v1770_v3 = vpop.eup %1769 }
 0x2fd   :  { %v919_v4 = vmul.f32 %v1770_v3, %v906_v5 }
 0x2ff   :  { %v1133_v9 = vrot.slane %v919_v4, 6 }
 0x301   :  { %v1136_v11 = vsel %vm1135_vm14, %v1130_v8, %v1133_v9 }
 0x302   :  { %1145 = vrot.lane.b32.xlu0 %v1136_v11, %s1830_s4 }
 0x30a   :  { %v1124_v14 = vpop.permute.xlu2 %1123 }
 0x30b   :  { %v1126_v25 = vadd.f32 %v1124_v14, %v1120_v39 }
 0x30d   :  { %1771 = vtanh.f32 %v1126_v25 }
 0x313   :  { %v1772_v18 = vpop.eup %1771 }
 0x314   :  { %v1128_v37 = vmul.f32 %v1772_v18, %v1115_v19 }
 0x316   :  { %v1138_v22 = vrot.slane %v1128_v37, 3 }
 0x318   :  { %v1143_v58 = vsel %vm1135_vm14, %v1138_v22, %v1141_v21 }
 0x374   :  { %v1146_v23 = vpop.permute.xlu0 %1145 }
 0x375   :  { %v1148_v24 = vsel %vm533_vm0, %v1146_v23, %v1143_v58 }
 0x376   :  { %1149 = vst [vmem:[#allocation4] sm:$0x3] %v1148_v24  ;;  %1623 = vmatmul.msk.f32.vlgmr.msrb.gmra.mxu0 %vm533_vm0, %v1148_v24 }
 0x377   :  { %1220 = dma.vmem_to_hbm [thread:$0]  %s1216_s22, 32, %s1218_s6, [#allocation5]  }
 0x3f3   :  { %v1182_v28 = vpop.f32.mrf.mxu0 }
 0x3f4   :  { %v1183_v20 = vadd.f32 %v1724_v26, %v1182_v28 }
 0x3f6   :  { %v1186_v29 = vsel %vm1185_vm4, %v1183_v20, -inf }
 0x3f7   :  { %1187 = vmax.xlane.f32.xlu1 %v1186_v29 }
 0x46a   :  { %v1188_v45 = vpop.xlane.xlu1 %1187 }
 0x46b   :  { %v1189_v31 = vsub.f32 %v1183_v20, %v1188_v45 }
 0x46d   :  { %v1190_v32 = vmul.f32 1.442695, %v1189_v31 }
 0x46f   :  { %1773 = vpow2.f32 %v1190_v32 }
 0x475   :  { %v1774_v33 = vpop.eup %1773 }
 0x476   :  { %v1192_v34 = vsel %vm1185_vm4, %v1774_v33, 0.0 }
 0x477   :  { %1193 = vadd.xlane.f32.xlu2 %v1192_v34 }
 0x4ea   :  { %v1194_v35 = vpop.xlane.xlu2 %1193 }
 0x4eb   :  { %1775 = vlog2.f32 %v1194_v35 }
 0x4f1   :  { %v1776_v36 = vpop.eup %1775 }
 0x4f2   :  { %v1196_v39 = vmul.f32 0.6931472, %v1776_v36 }
 0x4f4   :  { %v1197_v54 = vsub.f32 %v1189_v31, %v1196_v39 }
 0x4f6   :  { %1198 = vst.msk [vmem:[#allocation2] sm:$0x3] %vm1185_vm4, %v1197_v54 }
 0x4f7   :  { %1209 = dma.vmem_to_hbm [thread:$0]  %s1205_s26, 32, %s1207_s27, [#allocation3]  }
 0x4f8   :  { %1825 = dma.done.wait [#allocation3], 32  }
 0x4f9   :  { %1826 = vsyncadd [#allocation3], 4294967264 }
 0x4fa   :  { %1827 = dma.done.wait [#allocation5], 32  }
 0x4fb   :  { %1828 = vsyncadd [#allocation5], 4294967264 }
 0x4fc   :  { %1229 = vsyncpa [#allocation3], 1 }
 0x4fd   :  { %1230 = vsyncpa [#allocation5], 1 }

</bundles_post_ra>
